<compile_context>
chip_gen: v5e
topology: v5e:2x2
jax: 0.10.0
libtpu: 0.0.40
codegen_flags: <defaults>
</compile_context>

<pallas_src>
import functools

import jax
import jax.numpy as jnp
from jax import lax
from jax.experimental import pallas as pl
from jax.experimental.pallas import tpu as pltpu


def _cbam_kernel(x_ref, w1_ref, w2_ref, wmask_ref, o_ref, *,
                 bt, height, width, kernel_size, hw_valid):
    Bt, H, W, K = bt, height, width, kernel_size
    p = K // 2
    KK = K * K
    HWp = x_ref.shape[-1]          # lane-padded spatial length (multiple of 128)

    x = x_ref[...].astype(jnp.float32)                       # (Bt, C, HWp)

    # ---------------- channel attention ----------------
    if hw_valid != HWp:
        # Lane padding present: exclude padded lanes from max, divide sum by HW.
        lane = lax.broadcasted_iota(jnp.int32, (1, 1, HWp), 2)
        valid = lane < hw_valid
        max_p = jnp.max(jnp.where(valid, x, -jnp.inf), axis=-1)      # (Bt, C)
        avg_p = jnp.sum(x, axis=-1) * (1.0 / hw_valid)               # (Bt, C)
    else:
        max_p = jnp.max(x, axis=-1)                                   # lane reduce
        avg_p = jnp.mean(x, axis=-1)
    pooled = jnp.concatenate([avg_p, max_p], axis=0)                  # (2Bt, C)

    w1 = w1_ref[...].astype(jnp.float32)                              # (Cr, C)
    w2 = w2_ref[...].astype(jnp.float32)                              # (C, Cr)
    # Shared MLP on both pooled paths of all Bt images with one dot pair:
    #   h = relu(pooled @ w1.T);  o = h @ w2.T
    h = jnp.maximum(
        lax.dot_general(pooled, w1, (((1,), (1,)), ((), ())),
                        preferred_element_type=jnp.float32), 0.0)     # (2Bt, Cr)
    mlp_out = lax.dot_general(h, w2, (((1,), (1,)), ((), ())),
                              preferred_element_type=jnp.float32)     # (2Bt, C)
    ch_att = jax.nn.sigmoid(mlp_out[:Bt] + mlp_out[Bt:])              # (Bt, C)

    # Channel-scaled activations are only needed for the cross-channel
    # reductions; this temp dies before the conv (no o_ref park/reload).
    xc = x * ch_att[:, :, None]                                       # (Bt, C, HWp)
    avg_sp = jnp.mean(xc, axis=1)                                     # (Bt, HWp)
    max_sp = jnp.max(xc, axis=1)                                      # (Bt, HWp)
    maps = jnp.concatenate([avg_sp, max_sp], axis=0)                  # (2Bt, HWp)

    # -------- spatial attention: KxK "same" conv via lane-dense rolls --------
    # tap value at flat index i is maps[i + (dy-p)*W + (dx-p)]; out-of-grid
    # sources are zeroed by the host-precomputed masked weights (wmask).
    acc = jnp.zeros((Bt, HWp), jnp.float32)
    for dy in range(K):
        for dx in range(K):
            t = dy * K + dx
            shift = ((p - dy) * W + (p - dx)) % HWp
            rolled = maps if shift == 0 else pltpu.roll(maps, shift=shift, axis=1)
            wa = wmask_ref[pl.ds(t, 1), :]           # (1, HWp) masked avg-plane w
            wm = wmask_ref[pl.ds(KK + t, 1), :]      # (1, HWp) masked max-plane w
            acc = acc + wa * rolled[:Bt] + wm * rolled[Bt:]

    sp_att = jax.nn.sigmoid(acc)                                      # (Bt, HWp)

    # ---------------- fused final write ----------------
    # Re-read the input block (VMEM-resident, cheap) instead of reloading a
    # previously parked o_ref -> removes a full-block store + load per step.
    out = (x_ref[...].astype(jnp.float32)
           * ch_att[:, :, None] * sp_att[:, None, :])
    o_ref[...] = out.astype(o_ref.dtype)


def _vmem_capacity_bytes():
    """Per-core VMEM capacity; conservative fallback if the query fails."""
    try:
        cap = getattr(pltpu.get_tpu_info(), "vmem_capacity_bytes", None)
        if cap:
            return int(cap)
    except Exception:
        pass
    try:
        kind = jax.devices()[0].device_kind.lower()
    except Exception:
        kind = ""
    if any(t in kind for t in ("v5 lite", "v5e", "v5litepod", "v6", "trillium")):
        return 128 << 20
    return 64 << 20        # v7x has 64 MiB per TensorCore; safe default


def cbam_forward(x, w1, w2, wsp_flat, *, kernel_size=7, block_batch=None):
    """x: (B, C, H, W); w1: (C//r, C); w2: (C, C//r); wsp_flat: (2*K*K,)."""
    B, C, H, W = x.shape
    Cr = w1.shape[0]
    K = kernel_size
    p = K // 2
    KK = K * K
    HW = H * W
    HW_pad = max(128, ((HW + 127) // 128) * 128)      # lane-dense stores

    itemsize = x.dtype.itemsize
    cap = _vmem_capacity_bytes()
    # Per-image VMEM: double-buffered in + out HBM blocks plus the f32 working
    # copies (x cast, xc) the kernel materializes, plus small spatial temps.
    per_img = (4 * C * HW_pad * itemsize          # 2x in + 2x out (double-buffered)
               + 2 * C * HW_pad * 4               # f32 x / xc temporaries
               + 16 * HW_pad * 4)                 # maps / acc / sp_att / taps
    if block_batch is None:
        budget = int(cap * 0.55)
        bt = max(1, min(budget // max(per_img, 1), 256, B))
        if B >= 2:
            bt = min(bt, max(1, B // 2))          # >= 2 grid steps -> both TCs busy
        block_batch = bt
    Bt = int(block_batch)
    B_pad = ((B + Bt - 1) // Bt) * Bt

    # Lane-dense layout: last dim becomes H*W (padded to a multiple of 128).
    x_flat = x.reshape(B, C, HW)
    if B_pad != B or HW_pad != HW:
        x_flat = jnp.pad(x_flat, ((0, B_pad - B), (0, 0), (0, HW_pad - HW)))

    # Fold the KxK conv weights with their zero-padding boundary masks into
    # lane-dense planes:
    #   wmask[plane*KK + dy*K + dx, y*W + x] =
    #       w[plane, dy, dx]  if (y+dy-p, x+dx-p) lies inside HxW  else 0
    yy = jnp.arange(HW) // W
    xx = jnp.arange(HW) % W
    dys = jnp.repeat(jnp.arange(K), K)                                 # (KK,)
    dxs = jnp.tile(jnp.arange(K), K)                                   # (KK,)
    ry = yy[None, :] + dys[:, None] - p
    rx = xx[None, :] + dxs[:, None] - p
    valid = ((ry >= 0) & (ry < H) & (rx >= 0) & (rx < W)).astype(jnp.float32)
    w_sp = wsp_flat.astype(jnp.float32).reshape(2, KK)
    wmask = (w_sp[:, :, None] * valid[None, :, :]).reshape(2 * KK, HW)
    if HW_pad != HW:
        wmask = jnp.pad(wmask, ((0, 0), (0, HW_pad - HW)))

    kern = functools.partial(_cbam_kernel, bt=Bt, height=H, width=W,
                             kernel_size=K, hw_valid=HW)

    # Chip-adaptive scoped-VMEM budget: what this kernel actually needs,
    # clamped to ~85% of physical (<= ~54 MiB on v7x, <= 100 MiB on v5e/v6e).
    blk = Bt * C * HW_pad * itemsize
    temps = Bt * (2 * C + 16) * HW_pad * 4
    weights = (Cr * C + C * Cr) * 4 + 2 * KK * HW_pad * 4
    needed = 4 * blk + temps + 2 * weights + (4 << 20)
    vmem_hi = min(int(cap * 0.85), 100 << 20)
    vmem_limit = int(min(max(needed, 32 << 20), vmem_hi))

    out = pl.pallas_call(
        kern,
        out_shape=jax.ShapeDtypeStruct((B_pad, C, HW_pad), x.dtype),
        grid_spec=pltpu.PrefetchScalarGridSpec(
            num_scalar_prefetch=0,
            grid=(B_pad // Bt,),
            in_specs=[
                # TODO(synk): if profiling shows exposed input DMA, add
                # pipeline_mode=pl.Buffered(3) on this spec.
                pl.BlockSpec((Bt, C, HW_pad), lambda b: (b, 0, 0)),
                pl.BlockSpec((Cr, C), lambda b: (0, 0)),        # resident weights
                pl.BlockSpec((C, Cr), lambda b: (0, 0)),
                pl.BlockSpec((2 * KK, HW_pad), lambda b: (0, 0)),
            ],
            out_specs=pl.BlockSpec((Bt, C, HW_pad), lambda b: (b, 0, 0)),
        ),
        compiler_params=pltpu.CompilerParams(
            dimension_semantics=("parallel",),
            vmem_limit_bytes=vmem_limit),
    )(x_flat, w1, w2, wmask)

    return out[:B, :, :HW].reshape(B, C, H, W)


def cbam_reference(x, w1, w2, wsp_flat, *, kernel_size=7):
    """Pure-JAX reference matching the PyTorch CBAMBlock.forward semantics."""
    avg = jnp.mean(x, axis=(2, 3))                                    # (B, C)
    mx = jnp.max(x, axis=(2, 3))                                      # (B, C)

    def mlp(pooled):
        h = jnp.maximum(pooled @ w1.T, 0.0)
        return h @ w2.T

    ch = jax.nn.sigmoid(mlp(avg) + mlp(mx))[:, :, None, None]         # (B,C,1,1)
    xc = x * ch
    avg_sp = jnp.mean(xc, axis=1, keepdims=True)
    max_sp = jnp.max(xc, axis=1, keepdims=True)
    sp_in = jnp.concatenate([avg_sp, max_sp], axis=1)                 # (B,2,H,W)
    wconv = wsp_flat.reshape(1, 2, kernel_size, kernel_size)
    pad = kernel_size // 2
    conv = lax.conv_general_dilated(
        sp_in, wconv, window_strides=(1, 1),
        padding=[(pad, pad), (pad, pad)],
        dimension_numbers=("NCHW", "OIHW", "NCHW"))
    return xc * jax.nn.sigmoid(conv)


if __name__ == "__main__":
    # channels must be >= reduction so that channels // reduction >= 1
    B, C, H, W = 2, 32, 16, 16
    reduction, K = 16, 7
    Cr = C // reduction

    key = jax.random.PRNGKey(0)
    kx, k1, k2, k3 = jax.random.split(key, 4)
    x = jax.random.normal(kx, (B, C, H, W), jnp.float32)
    # Conv2d(C, C//r, 1, bias=False).weight -> (C//r, C, 1, 1) flattened to (C//r, C)
    w1 = jax.random.normal(k1, (Cr, C), jnp.float32) * (1.0 / jnp.sqrt(C))
    # Conv2d(C//r, C, 1, bias=False).weight -> (C, C//r, 1, 1) flattened to (C, C//r)
    w2 = jax.random.normal(k2, (C, Cr), jnp.float32) * (1.0 / jnp.sqrt(Cr))
    # Conv2d(2, 1, 7, padding=3, bias=False).weight -> (1, 2, 7, 7), flattened
    wsp = jax.random.normal(k3, (2 * K * K,), jnp.float32) * (1.0 / jnp.sqrt(2.0 * K * K))

    out = jax.block_until_ready(cbam_forward(x, w1, w2, wsp, kernel_size=K))

    ref = cbam_reference(x, w1, w2, wsp, kernel_size=K)
    max_err = float(jnp.max(jnp.abs(out - ref)))
    if not bool(jnp.allclose(out, ref, rtol=2e-3, atol=2e-3)):
        raise AssertionError(f"Pallas CBAM mismatch vs reference, max abs err={max_err}")
    print("KERNEL_OK")
</pallas_src>

<mosaic_0001>
module attributes {stable_mosaic.version = 11 : i64} {
  func.func @_cbam_kernel(%arg0: i32, %arg1: memref<1x32x256xf32, #tpu.memory_space<vmem>>, %arg2: memref<2x32xf32, #tpu.memory_space<vmem>>, %arg3: memref<32x2xf32, #tpu.memory_space<vmem>>, %arg4: memref<98x256xf32, #tpu.memory_space<vmem>>, %arg5: memref<1x32x256xf32, #tpu.memory_space<vmem>>) attributes {dimension_semantics = [#tpu.dimension_semantics<parallel>], iteration_bounds = array<i64: 2>, scalar_prefetch = 0 : i64, scratch_operands = 0 : i64, tpu.core_type = #tpu.core_type<tc>, window_params = [{transform_indices = @transform_0, window_bounds = array<i64: 1, 32, 256>}, {pipeline_mode = #tpu.pipeline_mode<synchronous>, transform_indices = @transform_1, window_bounds = array<i64: 2, 32>}, {pipeline_mode = #tpu.pipeline_mode<synchronous>, transform_indices = @transform_2, window_bounds = array<i64: 32, 2>}, {pipeline_mode = #tpu.pipeline_mode<synchronous>, transform_indices = @transform_3, window_bounds = array<i64: 98, 256>}, {transform_indices = @transform_4, window_bounds = array<i64: 1, 32, 256>}]} {
    %c0 = arith.constant 0 : index
    %c0_0 = arith.constant 0 : index
    %c0_1 = arith.constant 0 : index
    %0 = vector.load %arg1[%c0, %c0_0, %c0_1] : memref<1x32x256xf32, #tpu.memory_space<vmem>>, vector<1x32x256xf32>
    %cst = arith.constant dense<0xFF800000> : vector<1x32xf32>
    %1 = vector.multi_reduction <maximumf>, %0, %cst [2] : vector<1x32x256xf32> to vector<1x32xf32>
    %cst_2 = arith.constant dense<0.000000e+00> : vector<1x32xf32>
    %2 = vector.multi_reduction <add>, %0, %cst_2 [2] : vector<1x32x256xf32> to vector<1x32xf32>
    %cst_3 = arith.constant 2.560000e+02 : f32
    %3 = vector.broadcast %cst_3 : f32 to vector<1x32xf32>
    %4 = arith.divf %2, %3 : vector<1x32xf32>
    %5 = tpu.concatenate %4, %1 in 0 : vector<1x32xf32>, vector<1x32xf32> -> vector<2x32xf32>
    %c0_4 = arith.constant 0 : index
    %c0_5 = arith.constant 0 : index
    %6 = vector.load %arg2[%c0_4, %c0_5] : memref<2x32xf32, #tpu.memory_space<vmem>>, vector<2x32xf32>
    %c0_6 = arith.constant 0 : index
    %c0_7 = arith.constant 0 : index
    %7 = vector.load %arg3[%c0_6, %c0_7] : memref<32x2xf32, #tpu.memory_space<vmem>>, vector<32x2xf32>
    %cst_8 = arith.constant dense<0.000000e+00> : vector<2x2xf32>
    %8 = tpu.matmul %5, %6, %cst_8 {dimension_numbers = #tpu.dot_dimension_numbers<[1], [1], [0], [0], [0, 0, 1, 0], [], []>} : vector<2x32xf32>, vector<2x32xf32>, vector<2x2xf32> -> vector<2x2xf32>
    %cst_9 = arith.constant 0.000000e+00 : f32
    %9 = vector.broadcast %cst_9 : f32 to vector<2x2xf32>
    %10 = arith.maximumf %8, %9 : vector<2x2xf32>
    %cst_10 = arith.constant dense<0.000000e+00> : vector<2x32xf32>
    %11 = tpu.matmul %10, %7, %cst_10 {dimension_numbers = #tpu.dot_dimension_numbers<[1], [1], [0], [0], [0, 0, 1, 0], [], []>} : vector<2x2xf32>, vector<32x2xf32>, vector<2x32xf32> -> vector<2x32xf32>
    %12 = vector.extract_strided_slice %11 {offsets = [0, 0], sizes = [1, 32], strides = [1, 1]} : vector<2x32xf32> to vector<1x32xf32>
    %13 = vector.extract_strided_slice %11 {offsets = [1, 0], sizes = [1, 32], strides = [1, 1]} : vector<2x32xf32> to vector<1x32xf32>
    %14 = arith.addf %12, %13 : vector<1x32xf32>
    %15 = arith.negf %14 : vector<1x32xf32>
    %16 = math.exp %15 : vector<1x32xf32>
    %cst_11 = arith.constant 1.000000e+00 : f32
    %17 = vector.broadcast %cst_11 : f32 to vector<1x32xf32>
    %18 = arith.addf %17, %16 : vector<1x32xf32>
    %19 = arith.divf %17, %18 : vector<1x32xf32>
    %20 = vector.shape_cast %19 : vector<1x32xf32> to vector<1x32x1xf32>
    %21 = vector.broadcast %20 : vector<1x32x1xf32> to vector<1x32x256xf32>
    %22 = arith.mulf %0, %21 : vector<1x32x256xf32>
    %cst_12 = arith.constant dense<0.000000e+00> : vector<1x256xf32>
    %23 = vector.multi_reduction <add>, %22, %cst_12 [1] : vector<1x32x256xf32> to vector<1x256xf32>
    %cst_13 = arith.constant 3.200000e+01 : f32
    %24 = vector.broadcast %cst_13 : f32 to vector<1x256xf32>
    %25 = arith.divf %23, %24 : vector<1x256xf32>
    %cst_14 = arith.constant dense<0xFF800000> : vector<1x256xf32>
    %26 = vector.multi_reduction <maximumf>, %22, %cst_14 [1] : vector<1x32x256xf32> to vector<1x256xf32>
    %27 = tpu.concatenate %25, %26 in 0 : vector<1x256xf32>, vector<1x256xf32> -> vector<2x256xf32>
    %cst_15 = arith.constant 0.000000e+00 : f32
    %28 = vector.broadcast %cst_15 : f32 to vector<1x256xf32>
    %c51_i32 = arith.constant 51 : i32
    %29 = tpu.dynamic_rotate %27 by %c51_i32 dim 1 : vector<2x256xf32>, i32 -> vector<2x256xf32>
    %c0_16 = arith.constant 0 : index
    %c0_17 = arith.constant 0 : index
    %30 = vector.load %arg4[%c0_16, %c0_17] : memref<98x256xf32, #tpu.memory_space<vmem>>, vector<1x256xf32>
    %c49 = arith.constant 49 : index
    %c0_18 = arith.constant 0 : index
    %31 = vector.load %arg4[%c49, %c0_18] : memref<98x256xf32, #tpu.memory_space<vmem>>, vector<1x256xf32>
    %32 = vector.extract_strided_slice %29 {offsets = [0, 0], sizes = [1, 256], strides = [1, 1]} : vector<2x256xf32> to vector<1x256xf32>
    %33 = arith.mulf %30, %32 : vector<1x256xf32>
    %34 = arith.addf %28, %33 : vector<1x256xf32>
    %35 = vector.extract_strided_slice %29 {offsets = [1, 0], sizes = [1, 256], strides = [1, 1]} : vector<2x256xf32> to vector<1x256xf32>
    %36 = arith.mulf %31, %35 : vector<1x256xf32>
    %37 = arith.addf %34, %36 : vector<1x256xf32>
    %c50_i32 = arith.constant 50 : i32
    %38 = tpu.dynamic_rotate %27 by %c50_i32 dim 1 : vector<2x256xf32>, i32 -> vector<2x256xf32>
    %c1 = arith.constant 1 : index
    %c0_19 = arith.constant 0 : index
    %39 = vector.load %arg4[%c1, %c0_19] : memref<98x256xf32, #tpu.memory_space<vmem>>, vector<1x256xf32>
    %c50 = arith.constant 50 : index
    %c0_20 = arith.constant 0 : index
    %40 = vector.load %arg4[%c50, %c0_20] : memref<98x256xf32, #tpu.memory_space<vmem>>, vector<1x256xf32>
    %41 = vector.extract_strided_slice %38 {offsets = [0, 0], sizes = [1, 256], strides = [1, 1]} : vector<2x256xf32> to vector<1x256xf32>
    %42 = arith.mulf %39, %41 : vector<1x256xf32>
    %43 = arith.addf %37, %42 : vector<1x256xf32>
    %44 = vector.extract_strided_slice %38 {offsets = [1, 0], sizes = [1, 256], strides = [1, 1]} : vector<2x256xf32> to vector<1x256xf32>
    %45 = arith.mulf %40, %44 : vector<1x256xf32>
    %46 = arith.addf %43, %45 : vector<1x256xf32>
    %c49_i32 = arith.constant 49 : i32
    %47 = tpu.dynamic_rotate %27 by %c49_i32 dim 1 : vector<2x256xf32>, i32 -> vector<2x256xf32>
    %c2 = arith.constant 2 : index
    %c0_21 = arith.constant 0 : index
    %48 = vector.load %arg4[%c2, %c0_21] : memref<98x256xf32, #tpu.memory_space<vmem>>, vector<1x256xf32>
    %c51 = arith.constant 51 : index
    %c0_22 = arith.constant 0 : index
    %49 = vector.load %arg4[%c51, %c0_22] : memref<98x256xf32, #tpu.memory_space<vmem>>, vector<1x256xf32>
    %50 = vector.extract_strided_slice %47 {offsets = [0, 0], sizes = [1, 256], strides = [1, 1]} : vector<2x256xf32> to vector<1x256xf32>
    %51 = arith.mulf %48, %50 : vector<1x256xf32>
    %52 = arith.addf %46, %51 : vector<1x256xf32>
    %53 = vector.extract_strided_slice %47 {offsets = [1, 0], sizes = [1, 256], strides = [1, 1]} : vector<2x256xf32> to vector<1x256xf32>
    %54 = arith.mulf %49, %53 : vector<1x256xf32>
    %55 = arith.addf %52, %54 : vector<1x256xf32>
    %c48_i32 = arith.constant 48 : i32
    %56 = tpu.dynamic_rotate %27 by %c48_i32 dim 1 : vector<2x256xf32>, i32 -> vector<2x256xf32>
    %c3 = arith.constant 3 : index
    %c0_23 = arith.constant 0 : index
    %57 = vector.load %arg4[%c3, %c0_23] : memref<98x256xf32, #tpu.memory_space<vmem>>, vector<1x256xf32>
    %c52 = arith.constant 52 : index
    %c0_24 = arith.constant 0 : index
    %58 = vector.load %arg4[%c52, %c0_24] : memref<98x256xf32, #tpu.memory_space<vmem>>, vector<1x256xf32>
    %59 = vector.extract_strided_slice %56 {offsets = [0, 0], sizes = [1, 256], strides = [1, 1]} : vector<2x256xf32> to vector<1x256xf32>
    %60 = arith.mulf %57, %59 : vector<1x256xf32>
    %61 = arith.addf %55, %60 : vector<1x256xf32>
    %62 = vector.extract_strided_slice %56 {offsets = [1, 0], sizes = [1, 256], strides = [1, 1]} : vector<2x256xf32> to vector<1x256xf32>
    %63 = arith.mulf %58, %62 : vector<1x256xf32>
    %64 = arith.addf %61, %63 : vector<1x256xf32>
    %c47_i32 = arith.constant 47 : i32
    %65 = tpu.dynamic_rotate %27 by %c47_i32 dim 1 : vector<2x256xf32>, i32 -> vector<2x256xf32>
    %c4 = arith.constant 4 : index
    %c0_25 = arith.constant 0 : index
    %66 = vector.load %arg4[%c4, %c0_25] : memref<98x256xf32, #tpu.memory_space<vmem>>, vector<1x256xf32>
    %c53 = arith.constant 53 : index
    %c0_26 = arith.constant 0 : index
    %67 = vector.load %arg4[%c53, %c0_26] : memref<98x256xf32, #tpu.memory_space<vmem>>, vector<1x256xf32>
    %68 = vector.extract_strided_slice %65 {offsets = [0, 0], sizes = [1, 256], strides = [1, 1]} : vector<2x256xf32> to vector<1x256xf32>
    %69 = arith.mulf %66, %68 : vector<1x256xf32>
    %70 = arith.addf %64, %69 : vector<1x256xf32>
    %71 = vector.extract_strided_slice %65 {offsets = [1, 0], sizes = [1, 256], strides = [1, 1]} : vector<2x256xf32> to vector<1x256xf32>
    %72 = arith.mulf %67, %71 : vector<1x256xf32>
    %73 = arith.addf %70, %72 : vector<1x256xf32>
    %c46_i32 = arith.constant 46 : i32
    %74 = tpu.dynamic_rotate %27 by %c46_i32 dim 1 : vector<2x256xf32>, i32 -> vector<2x256xf32>
    %c5 = arith.constant 5 : index
    %c0_27 = arith.constant 0 : index
    %75 = vector.load %arg4[%c5, %c0_27] : memref<98x256xf32, #tpu.memory_space<vmem>>, vector<1x256xf32>
    %c54 = arith.constant 54 : index
    %c0_28 = arith.constant 0 : index
    %76 = vector.load %arg4[%c54, %c0_28] : memref<98x256xf32, #tpu.memory_space<vmem>>, vector<1x256xf32>
    %77 = vector.extract_strided_slice %74 {offsets = [0, 0], sizes = [1, 256], strides = [1, 1]} : vector<2x256xf32> to vector<1x256xf32>
    %78 = arith.mulf %75, %77 : vector<1x256xf32>
    %79 = arith.addf %73, %78 : vector<1x256xf32>
    %80 = vector.extract_strided_slice %74 {offsets = [1, 0], sizes = [1, 256], strides = [1, 1]} : vector<2x256xf32> to vector<1x256xf32>
    %81 = arith.mulf %76, %80 : vector<1x256xf32>
    %82 = arith.addf %79, %81 : vector<1x256xf32>
    %c45_i32 = arith.constant 45 : i32
    %83 = tpu.dynamic_rotate %27 by %c45_i32 dim 1 : vector<2x256xf32>, i32 -> vector<2x256xf32>
    %c6 = arith.constant 6 : index
    %c0_29 = arith.constant 0 : index
    %84 = vector.load %arg4[%c6, %c0_29] : memref<98x256xf32, #tpu.memory_space<vmem>>, vector<1x256xf32>
    %c55 = arith.constant 55 : index
    %c0_30 = arith.constant 0 : index
    %85 = vector.load %arg4[%c55, %c0_30] : memref<98x256xf32, #tpu.memory_space<vmem>>, vector<1x256xf32>
    %86 = vector.extract_strided_slice %83 {offsets = [0, 0], sizes = [1, 256], strides = [1, 1]} : vector<2x256xf32> to vector<1x256xf32>
    %87 = arith.mulf %84, %86 : vector<1x256xf32>
    %88 = arith.addf %82, %87 : vector<1x256xf32>
    %89 = vector.extract_strided_slice %83 {offsets = [1, 0], sizes = [1, 256], strides = [1, 1]} : vector<2x256xf32> to vector<1x256xf32>
    %90 = arith.mulf %85, %89 : vector<1x256xf32>
    %91 = arith.addf %88, %90 : vector<1x256xf32>
    %c35_i32 = arith.constant 35 : i32
    %92 = tpu.dynamic_rotate %27 by %c35_i32 dim 1 : vector<2x256xf32>, i32 -> vector<2x256xf32>
    %c7 = arith.constant 7 : index
    %c0_31 = arith.constant 0 : index
    %93 = vector.load %arg4[%c7, %c0_31] : memref<98x256xf32, #tpu.memory_space<vmem>>, vector<1x256xf32>
    %c56 = arith.constant 56 : index
    %c0_32 = arith.constant 0 : index
    %94 = vector.load %arg4[%c56, %c0_32] : memref<98x256xf32, #tpu.memory_space<vmem>>, vector<1x256xf32>
    %95 = vector.extract_strided_slice %92 {offsets = [0, 0], sizes = [1, 256], strides = [1, 1]} : vector<2x256xf32> to vector<1x256xf32>
    %96 = arith.mulf %93, %95 : vector<1x256xf32>
    %97 = arith.addf %91, %96 : vector<1x256xf32>
    %98 = vector.extract_strided_slice %92 {offsets = [1, 0], sizes = [1, 256], strides = [1, 1]} : vector<2x256xf32> to vector<1x256xf32>
    %99 = arith.mulf %94, %98 : vector<1x256xf32>
    %100 = arith.addf %97, %99 : vector<1x256xf32>
    %c34_i32 = arith.constant 34 : i32
    %101 = tpu.dynamic_rotate %27 by %c34_i32 dim 1 : vector<2x256xf32>, i32 -> vector<2x256xf32>
    %c8 = arith.constant 8 : index
    %c0_33 = arith.constant 0 : index
    %102 = vector.load %arg4[%c8, %c0_33] : memref<98x256xf32, #tpu.memory_space<vmem>>, vector<1x256xf32>
    %c57 = arith.constant 57 : index
    %c0_34 = arith.constant 0 : index
    %103 = vector.load %arg4[%c57, %c0_34] : memref<98x256xf32, #tpu.memory_space<vmem>>, vector<1x256xf32>
    %104 = vector.extract_strided_slice %101 {offsets = [0, 0], sizes = [1, 256], strides = [1, 1]} : vector<2x256xf32> to vector<1x256xf32>
    %105 = arith.mulf %102, %104 : vector<1x256xf32>
    %106 = arith.addf %100, %105 : vector<1x256xf32>
    %107 = vector.extract_strided_slice %101 {offsets = [1, 0], sizes = [1, 256], strides = [1, 1]} : vector<2x256xf32> to vector<1x256xf32>
    %108 = arith.mulf %103, %107 : vector<1x256xf32>
    %109 = arith.addf %106, %108 : vector<1x256xf32>
    %c33_i32 = arith.constant 33 : i32
    %110 = tpu.dynamic_rotate %27 by %c33_i32 dim 1 : vector<2x256xf32>, i32 -> vector<2x256xf32>
    %c9 = arith.constant 9 : index
    %c0_35 = arith.constant 0 : index
    %111 = vector.load %arg4[%c9, %c0_35] : memref<98x256xf32, #tpu.memory_space<vmem>>, vector<1x256xf32>
    %c58 = arith.constant 58 : index
    %c0_36 = arith.constant 0 : index
    %112 = vector.load %arg4[%c58, %c0_36] : memref<98x256xf32, #tpu.memory_space<vmem>>, vector<1x256xf32>
    %113 = vector.extract_strided_slice %110 {offsets = [0, 0], sizes = [1, 256], strides = [1, 1]} : vector<2x256xf32> to vector<1x256xf32>
    %114 = arith.mulf %111, %113 : vector<1x256xf32>
    %115 = arith.addf %109, %114 : vector<1x256xf32>
    %116 = vector.extract_strided_slice %110 {offsets = [1, 0], sizes = [1, 256], strides = [1, 1]} : vector<2x256xf32> to vector<1x256xf32>
    %117 = arith.mulf %112, %116 : vector<1x256xf32>
    %118 = arith.addf %115, %117 : vector<1x256xf32>
    %c32_i32 = arith.constant 32 : i32
    %119 = tpu.dynamic_rotate %27 by %c32_i32 dim 1 : vector<2x256xf32>, i32 -> vector<2x256xf32>
    %c10 = arith.constant 10 : index
    %c0_37 = arith.constant 0 : index
    %120 = vector.load %arg4[%c10, %c0_37] : memref<98x256xf32, #tpu.memory_space<vmem>>, vector<1x256xf32>
    %c59 = arith.constant 59 : index
    %c0_38 = arith.constant 0 : index
    %121 = vector.load %arg4[%c59, %c0_38] : memref<98x256xf32, #tpu.memory_space<vmem>>, vector<1x256xf32>
    %122 = vector.extract_strided_slice %119 {offsets = [0, 0], sizes = [1, 256], strides = [1, 1]} : vector<2x256xf32> to vector<1x256xf32>
    %123 = arith.mulf %120, %122 : vector<1x256xf32>
    %124 = arith.addf %118, %123 : vector<1x256xf32>
    %125 = vector.extract_strided_slice %119 {offsets = [1, 0], sizes = [1, 256], strides = [1, 1]} : vector<2x256xf32> to vector<1x256xf32>
    %126 = arith.mulf %121, %125 : vector<1x256xf32>
    %127 = arith.addf %124, %126 : vector<1x256xf32>
    %c31_i32 = arith.constant 31 : i32
    %128 = tpu.dynamic_rotate %27 by %c31_i32 dim 1 : vector<2x256xf32>, i32 -> vector<2x256xf32>
    %c11 = arith.constant 11 : index
    %c0_39 = arith.constant 0 : index
    %129 = vector.load %arg4[%c11, %c0_39] : memref<98x256xf32, #tpu.memory_space<vmem>>, vector<1x256xf32>
    %c60 = arith.constant 60 : index
    %c0_40 = arith.constant 0 : index
    %130 = vector.load %arg4[%c60, %c0_40] : memref<98x256xf32, #tpu.memory_space<vmem>>, vector<1x256xf32>
    %131 = vector.extract_strided_slice %128 {offsets = [0, 0], sizes = [1, 256], strides = [1, 1]} : vector<2x256xf32> to vector<1x256xf32>
    %132 = arith.mulf %129, %131 : vector<1x256xf32>
    %133 = arith.addf %127, %132 : vector<1x256xf32>
    %134 = vector.extract_strided_slice %128 {offsets = [1, 0], sizes = [1, 256], strides = [1, 1]} : vector<2x256xf32> to vector<1x256xf32>
    %135 = arith.mulf %130, %134 : vector<1x256xf32>
    %136 = arith.addf %133, %135 : vector<1x256xf32>
    %c30_i32 = arith.constant 30 : i32
    %137 = tpu.dynamic_rotate %27 by %c30_i32 dim 1 : vector<2x256xf32>, i32 -> vector<2x256xf32>
    %c12 = arith.constant 12 : index
    %c0_41 = arith.constant 0 : index
    %138 = vector.load %arg4[%c12, %c0_41] : memref<98x256xf32, #tpu.memory_space<vmem>>, vector<1x256xf32>
    %c61 = arith.constant 61 : index
    %c0_42 = arith.constant 0 : index
    %139 = vector.load %arg4[%c61, %c0_42] : memref<98x256xf32, #tpu.memory_space<vmem>>, vector<1x256xf32>
    %140 = vector.extract_strided_slice %137 {offsets = [0, 0], sizes = [1, 256], strides = [1, 1]} : vector<2x256xf32> to vector<1x256xf32>
    %141 = arith.mulf %138, %140 : vector<1x256xf32>
    %142 = arith.addf %136, %141 : vector<1x256xf32>
    %143 = vector.extract_strided_slice %137 {offsets = [1, 0], sizes = [1, 256], strides = [1, 1]} : vector<2x256xf32> to vector<1x256xf32>
    %144 = arith.mulf %139, %143 : vector<1x256xf32>
    %145 = arith.addf %142, %144 : vector<1x256xf32>
    %c29_i32 = arith.constant 29 : i32
    %146 = tpu.dynamic_rotate %27 by %c29_i32 dim 1 : vector<2x256xf32>, i32 -> vector<2x256xf32>
    %c13 = arith.constant 13 : index
    %c0_43 = arith.constant 0 : index
    %147 = vector.load %arg4[%c13, %c0_43] : memref<98x256xf32, #tpu.memory_space<vmem>>, vector<1x256xf32>
    %c62 = arith.constant 62 : index
    %c0_44 = arith.constant 0 : index
    %148 = vector.load %arg4[%c62, %c0_44] : memref<98x256xf32, #tpu.memory_space<vmem>>, vector<1x256xf32>
    %149 = vector.extract_strided_slice %146 {offsets = [0, 0], sizes = [1, 256], strides = [1, 1]} : vector<2x256xf32> to vector<1x256xf32>
    %150 = arith.mulf %147, %149 : vector<1x256xf32>
    %151 = arith.addf %145, %150 : vector<1x256xf32>
    %152 = vector.extract_strided_slice %146 {offsets = [1, 0], sizes = [1, 256], strides = [1, 1]} : vector<2x256xf32> to vector<1x256xf32>
    %153 = arith.mulf %148, %152 : vector<1x256xf32>
    %154 = arith.addf %151, %153 : vector<1x256xf32>
    %c19_i32 = arith.constant 19 : i32
    %155 = tpu.dynamic_rotate %27 by %c19_i32 dim 1 : vector<2x256xf32>, i32 -> vector<2x256xf32>
    %c14 = arith.constant 14 : index
    %c0_45 = arith.constant 0 : index
    %156 = vector.load %arg4[%c14, %c0_45] : memref<98x256xf32, #tpu.memory_space<vmem>>, vector<1x256xf32>
    %c63 = arith.constant 63 : index
    %c0_46 = arith.constant 0 : index
    %157 = vector.load %arg4[%c63, %c0_46] : memref<98x256xf32, #tpu.memory_space<vmem>>, vector<1x256xf32>
    %158 = vector.extract_strided_slice %155 {offsets = [0, 0], sizes = [1, 256], strides = [1, 1]} : vector<2x256xf32> to vector<1x256xf32>
    %159 = arith.mulf %156, %158 : vector<1x256xf32>
    %160 = arith.addf %154, %159 : vector<1x256xf32>
    %161 = vector.extract_strided_slice %155 {offsets = [1, 0], sizes = [1, 256], strides = [1, 1]} : vector<2x256xf32> to vector<1x256xf32>
    %162 = arith.mulf %157, %161 : vector<1x256xf32>
    %163 = arith.addf %160, %162 : vector<1x256xf32>
    %c18_i32 = arith.constant 18 : i32
    %164 = tpu.dynamic_rotate %27 by %c18_i32 dim 1 : vector<2x256xf32>, i32 -> vector<2x256xf32>
    %c15 = arith.constant 15 : index
    %c0_47 = arith.constant 0 : index
    %165 = vector.load %arg4[%c15, %c0_47] : memref<98x256xf32, #tpu.memory_space<vmem>>, vector<1x256xf32>
    %c64 = arith.constant 64 : index
    %c0_48 = arith.constant 0 : index
    %166 = vector.load %arg4[%c64, %c0_48] : memref<98x256xf32, #tpu.memory_space<vmem>>, vector<1x256xf32>
    %167 = vector.extract_strided_slice %164 {offsets = [0, 0], sizes = [1, 256], strides = [1, 1]} : vector<2x256xf32> to vector<1x256xf32>
    %168 = arith.mulf %165, %167 : vector<1x256xf32>
    %169 = arith.addf %163, %168 : vector<1x256xf32>
    %170 = vector.extract_strided_slice %164 {offsets = [1, 0], sizes = [1, 256], strides = [1, 1]} : vector<2x256xf32> to vector<1x256xf32>
    %171 = arith.mulf %166, %170 : vector<1x256xf32>
    %172 = arith.addf %169, %171 : vector<1x256xf32>
    %c17_i32 = arith.constant 17 : i32
    %173 = tpu.dynamic_rotate %27 by %c17_i32 dim 1 : vector<2x256xf32>, i32 -> vector<2x256xf32>
    %c16 = arith.constant 16 : index
    %c0_49 = arith.constant 0 : index
    %174 = vector.load %arg4[%c16, %c0_49] : memref<98x256xf32, #tpu.memory_space<vmem>>, vector<1x256xf32>
    %c65 = arith.constant 65 : index
    %c0_50 = arith.constant 0 : index
    %175 = vector.load %arg4[%c65, %c0_50] : memref<98x256xf32, #tpu.memory_space<vmem>>, vector<1x256xf32>
    %176 = vector.extract_strided_slice %173 {offsets = [0, 0], sizes = [1, 256], strides = [1, 1]} : vector<2x256xf32> to vector<1x256xf32>
    %177 = arith.mulf %174, %176 : vector<1x256xf32>
    %178 = arith.addf %172, %177 : vector<1x256xf32>
    %179 = vector.extract_strided_slice %173 {offsets = [1, 0], sizes = [1, 256], strides = [1, 1]} : vector<2x256xf32> to vector<1x256xf32>
    %180 = arith.mulf %175, %179 : vector<1x256xf32>
    %181 = arith.addf %178, %180 : vector<1x256xf32>
    %c16_i32 = arith.constant 16 : i32
    %182 = tpu.dynamic_rotate %27 by %c16_i32 dim 1 : vector<2x256xf32>, i32 -> vector<2x256xf32>
    %c17 = arith.constant 17 : index
    %c0_51 = arith.constant 0 : index
    %183 = vector.load %arg4[%c17, %c0_51] : memref<98x256xf32, #tpu.memory_space<vmem>>, vector<1x256xf32>
    %c66 = arith.constant 66 : index
    %c0_52 = arith.constant 0 : index
    %184 = vector.load %arg4[%c66, %c0_52] : memref<98x256xf32, #tpu.memory_space<vmem>>, vector<1x256xf32>
    %185 = vector.extract_strided_slice %182 {offsets = [0, 0], sizes = [1, 256], strides = [1, 1]} : vector<2x256xf32> to vector<1x256xf32>
    %186 = arith.mulf %183, %185 : vector<1x256xf32>
    %187 = arith.addf %181, %186 : vector<1x256xf32>
    %188 = vector.extract_strided_slice %182 {offsets = [1, 0], sizes = [1, 256], strides = [1, 1]} : vector<2x256xf32> to vector<1x256xf32>
    %189 = arith.mulf %184, %188 : vector<1x256xf32>
    %190 = arith.addf %187, %189 : vector<1x256xf32>
    %c15_i32 = arith.constant 15 : i32
    %191 = tpu.dynamic_rotate %27 by %c15_i32 dim 1 : vector<2x256xf32>, i32 -> vector<2x256xf32>
    %c18 = arith.constant 18 : index
    %c0_53 = arith.constant 0 : index
    %192 = vector.load %arg4[%c18, %c0_53] : memref<98x256xf32, #tpu.memory_space<vmem>>, vector<1x256xf32>
    %c67 = arith.constant 67 : index
    %c0_54 = arith.constant 0 : index
    %193 = vector.load %arg4[%c67, %c0_54] : memref<98x256xf32, #tpu.memory_space<vmem>>, vector<1x256xf32>
    %194 = vector.extract_strided_slice %191 {offsets = [0, 0], sizes = [1, 256], strides = [1, 1]} : vector<2x256xf32> to vector<1x256xf32>
    %195 = arith.mulf %192, %194 : vector<1x256xf32>
    %196 = arith.addf %190, %195 : vector<1x256xf32>
    %197 = vector.extract_strided_slice %191 {offsets = [1, 0], sizes = [1, 256], strides = [1, 1]} : vector<2x256xf32> to vector<1x256xf32>
    %198 = arith.mulf %193, %197 : vector<1x256xf32>
    %199 = arith.addf %196, %198 : vector<1x256xf32>
    %c14_i32 = arith.constant 14 : i32
    %200 = tpu.dynamic_rotate %27 by %c14_i32 dim 1 : vector<2x256xf32>, i32 -> vector<2x256xf32>
    %c19 = arith.constant 19 : index
    %c0_55 = arith.constant 0 : index
    %201 = vector.load %arg4[%c19, %c0_55] : memref<98x256xf32, #tpu.memory_space<vmem>>, vector<1x256xf32>
    %c68 = arith.constant 68 : index
    %c0_56 = arith.constant 0 : index
    %202 = vector.load %arg4[%c68, %c0_56] : memref<98x256xf32, #tpu.memory_space<vmem>>, vector<1x256xf32>
    %203 = vector.extract_strided_slice %200 {offsets = [0, 0], sizes = [1, 256], strides = [1, 1]} : vector<2x256xf32> to vector<1x256xf32>
    %204 = arith.mulf %201, %203 : vector<1x256xf32>
    %205 = arith.addf %199, %204 : vector<1x256xf32>
    %206 = vector.extract_strided_slice %200 {offsets = [1, 0], sizes = [1, 256], strides = [1, 1]} : vector<2x256xf32> to vector<1x256xf32>
    %207 = arith.mulf %202, %206 : vector<1x256xf32>
    %208 = arith.addf %205, %207 : vector<1x256xf32>
    %c13_i32 = arith.constant 13 : i32
    %209 = tpu.dynamic_rotate %27 by %c13_i32 dim 1 : vector<2x256xf32>, i32 -> vector<2x256xf32>
    %c20 = arith.constant 20 : index
    %c0_57 = arith.constant 0 : index
    %210 = vector.load %arg4[%c20, %c0_57] : memref<98x256xf32, #tpu.memory_space<vmem>>, vector<1x256xf32>
    %c69 = arith.constant 69 : index
    %c0_58 = arith.constant 0 : index
    %211 = vector.load %arg4[%c69, %c0_58] : memref<98x256xf32, #tpu.memory_space<vmem>>, vector<1x256xf32>
    %212 = vector.extract_strided_slice %209 {offsets = [0, 0], sizes = [1, 256], strides = [1, 1]} : vector<2x256xf32> to vector<1x256xf32>
    %213 = arith.mulf %210, %212 : vector<1x256xf32>
    %214 = arith.addf %208, %213 : vector<1x256xf32>
    %215 = vector.extract_strided_slice %209 {offsets = [1, 0], sizes = [1, 256], strides = [1, 1]} : vector<2x256xf32> to vector<1x256xf32>
    %216 = arith.mulf %211, %215 : vector<1x256xf32>
    %217 = arith.addf %214, %216 : vector<1x256xf32>
    %c3_i32 = arith.constant 3 : i32
    %218 = tpu.dynamic_rotate %27 by %c3_i32 dim 1 : vector<2x256xf32>, i32 -> vector<2x256xf32>
    %c21 = arith.constant 21 : index
    %c0_59 = arith.constant 0 : index
    %219 = vector.load %arg4[%c21, %c0_59] : memref<98x256xf32, #tpu.memory_space<vmem>>, vector<1x256xf32>
    %c70 = arith.constant 70 : index
    %c0_60 = arith.constant 0 : index
    %220 = vector.load %arg4[%c70, %c0_60] : memref<98x256xf32, #tpu.memory_space<vmem>>, vector<1x256xf32>
    %221 = vector.extract_strided_slice %218 {offsets = [0, 0], sizes = [1, 256], strides = [1, 1]} : vector<2x256xf32> to vector<1x256xf32>
    %222 = arith.mulf %219, %221 : vector<1x256xf32>
    %223 = arith.addf %217, %222 : vector<1x256xf32>
    %224 = vector.extract_strided_slice %218 {offsets = [1, 0], sizes = [1, 256], strides = [1, 1]} : vector<2x256xf32> to vector<1x256xf32>
    %225 = arith.mulf %220, %224 : vector<1x256xf32>
    %226 = arith.addf %223, %225 : vector<1x256xf32>
    %c2_i32 = arith.constant 2 : i32
    %227 = tpu.dynamic_rotate %27 by %c2_i32 dim 1 : vector<2x256xf32>, i32 -> vector<2x256xf32>
    %c22 = arith.constant 22 : index
    %c0_61 = arith.constant 0 : index
    %228 = vector.load %arg4[%c22, %c0_61] : memref<98x256xf32, #tpu.memory_space<vmem>>, vector<1x256xf32>
    %c71 = arith.constant 71 : index
    %c0_62 = arith.constant 0 : index
    %229 = vector.load %arg4[%c71, %c0_62] : memref<98x256xf32, #tpu.memory_space<vmem>>, vector<1x256xf32>
    %230 = vector.extract_strided_slice %227 {offsets = [0, 0], sizes = [1, 256], strides = [1, 1]} : vector<2x256xf32> to vector<1x256xf32>
    %231 = arith.mulf %228, %230 : vector<1x256xf32>
    %232 = arith.addf %226, %231 : vector<1x256xf32>
    %233 = vector.extract_strided_slice %227 {offsets = [1, 0], sizes = [1, 256], strides = [1, 1]} : vector<2x256xf32> to vector<1x256xf32>
    %234 = arith.mulf %229, %233 : vector<1x256xf32>
    %235 = arith.addf %232, %234 : vector<1x256xf32>
    %c1_i32 = arith.constant 1 : i32
    %236 = tpu.dynamic_rotate %27 by %c1_i32 dim 1 : vector<2x256xf32>, i32 -> vector<2x256xf32>
    %c23 = arith.constant 23 : index
    %c0_63 = arith.constant 0 : index
    %237 = vector.load %arg4[%c23, %c0_63] : memref<98x256xf32, #tpu.memory_space<vmem>>, vector<1x256xf32>
    %c72 = arith.constant 72 : index
    %c0_64 = arith.constant 0 : index
    %238 = vector.load %arg4[%c72, %c0_64] : memref<98x256xf32, #tpu.memory_space<vmem>>, vector<1x256xf32>
    %239 = vector.extract_strided_slice %236 {offsets = [0, 0], sizes = [1, 256], strides = [1, 1]} : vector<2x256xf32> to vector<1x256xf32>
    %240 = arith.mulf %237, %239 : vector<1x256xf32>
    %241 = arith.addf %235, %240 : vector<1x256xf32>
    %242 = vector.extract_strided_slice %236 {offsets = [1, 0], sizes = [1, 256], strides = [1, 1]} : vector<2x256xf32> to vector<1x256xf32>
    %243 = arith.mulf %238, %242 : vector<1x256xf32>
    %244 = arith.addf %241, %243 : vector<1x256xf32>
    %c24 = arith.constant 24 : index
    %c0_65 = arith.constant 0 : index
    %245 = vector.load %arg4[%c24, %c0_65] : memref<98x256xf32, #tpu.memory_space<vmem>>, vector<1x256xf32>
    %c73 = arith.constant 73 : index
    %c0_66 = arith.constant 0 : index
    %246 = vector.load %arg4[%c73, %c0_66] : memref<98x256xf32, #tpu.memory_space<vmem>>, vector<1x256xf32>
    %247 = vector.extract_strided_slice %27 {offsets = [0, 0], sizes = [1, 256], strides = [1, 1]} : vector<2x256xf32> to vector<1x256xf32>
    %248 = arith.mulf %245, %247 : vector<1x256xf32>
    %249 = arith.addf %244, %248 : vector<1x256xf32>
    %250 = vector.extract_strided_slice %27 {offsets = [1, 0], sizes = [1, 256], strides = [1, 1]} : vector<2x256xf32> to vector<1x256xf32>
    %251 = arith.mulf %246, %250 : vector<1x256xf32>
    %252 = arith.addf %249, %251 : vector<1x256xf32>
    %c255_i32 = arith.constant 255 : i32
    %253 = tpu.dynamic_rotate %27 by %c255_i32 dim 1 : vector<2x256xf32>, i32 -> vector<2x256xf32>
    %c25 = arith.constant 25 : index
    %c0_67 = arith.constant 0 : index
    %254 = vector.load %arg4[%c25, %c0_67] : memref<98x256xf32, #tpu.memory_space<vmem>>, vector<1x256xf32>
    %c74 = arith.constant 74 : index
    %c0_68 = arith.constant 0 : index
    %255 = vector.load %arg4[%c74, %c0_68] : memref<98x256xf32, #tpu.memory_space<vmem>>, vector<1x256xf32>
    %256 = vector.extract_strided_slice %253 {offsets = [0, 0], sizes = [1, 256], strides = [1, 1]} : vector<2x256xf32> to vector<1x256xf32>
    %257 = arith.mulf %254, %256 : vector<1x256xf32>
    %258 = arith.addf %252, %257 : vector<1x256xf32>
    %259 = vector.extract_strided_slice %253 {offsets = [1, 0], sizes = [1, 256], strides = [1, 1]} : vector<2x256xf32> to vector<1x256xf32>
    %260 = arith.mulf %255, %259 : vector<1x256xf32>
    %261 = arith.addf %258, %260 : vector<1x256xf32>
    %c254_i32 = arith.constant 254 : i32
    %262 = tpu.dynamic_rotate %27 by %c254_i32 dim 1 : vector<2x256xf32>, i32 -> vector<2x256xf32>
    %c26 = arith.constant 26 : index
    %c0_69 = arith.constant 0 : index
    %263 = vector.load %arg4[%c26, %c0_69] : memref<98x256xf32, #tpu.memory_space<vmem>>, vector<1x256xf32>
    %c75 = arith.constant 75 : index
    %c0_70 = arith.constant 0 : index
    %264 = vector.load %arg4[%c75, %c0_70] : memref<98x256xf32, #tpu.memory_space<vmem>>, vector<1x256xf32>
    %265 = vector.extract_strided_slice %262 {offsets = [0, 0], sizes = [1, 256], strides = [1, 1]} : vector<2x256xf32> to vector<1x256xf32>
    %266 = arith.mulf %263, %265 : vector<1x256xf32>
    %267 = arith.addf %261, %266 : vector<1x256xf32>
    %268 = vector.extract_strided_slice %262 {offsets = [1, 0], sizes = [1, 256], strides = [1, 1]} : vector<2x256xf32> to vector<1x256xf32>
    %269 = arith.mulf %264, %268 : vector<1x256xf32>
    %270 = arith.addf %267, %269 : vector<1x256xf32>
    %c253_i32 = arith.constant 253 : i32
    %271 = tpu.dynamic_rotate %27 by %c253_i32 dim 1 : vector<2x256xf32>, i32 -> vector<2x256xf32>
    %c27 = arith.constant 27 : index
    %c0_71 = arith.constant 0 : index
    %272 = vector.load %arg4[%c27, %c0_71] : memref<98x256xf32, #tpu.memory_space<vmem>>, vector<1x256xf32>
    %c76 = arith.constant 76 : index
    %c0_72 = arith.constant 0 : index
    %273 = vector.load %arg4[%c76, %c0_72] : memref<98x256xf32, #tpu.memory_space<vmem>>, vector<1x256xf32>
    %274 = vector.extract_strided_slice %271 {offsets = [0, 0], sizes = [1, 256], strides = [1, 1]} : vector<2x256xf32> to vector<1x256xf32>
    %275 = arith.mulf %272, %274 : vector<1x256xf32>
    %276 = arith.addf %270, %275 : vector<1x256xf32>
    %277 = vector.extract_strided_slice %271 {offsets = [1, 0], sizes = [1, 256], strides = [1, 1]} : vector<2x256xf32> to vector<1x256xf32>
    %278 = arith.mulf %273, %277 : vector<1x256xf32>
    %279 = arith.addf %276, %278 : vector<1x256xf32>
    %c243_i32 = arith.constant 243 : i32
    %280 = tpu.dynamic_rotate %27 by %c243_i32 dim 1 : vector<2x256xf32>, i32 -> vector<2x256xf32>
    %c28 = arith.constant 28 : index
    %c0_73 = arith.constant 0 : index
    %281 = vector.load %arg4[%c28, %c0_73] : memref<98x256xf32, #tpu.memory_space<vmem>>, vector<1x256xf32>
    %c77 = arith.constant 77 : index
    %c0_74 = arith.constant 0 : index
    %282 = vector.load %arg4[%c77, %c0_74] : memref<98x256xf32, #tpu.memory_space<vmem>>, vector<1x256xf32>
    %283 = vector.extract_strided_slice %280 {offsets = [0, 0], sizes = [1, 256], strides = [1, 1]} : vector<2x256xf32> to vector<1x256xf32>
    %284 = arith.mulf %281, %283 : vector<1x256xf32>
    %285 = arith.addf %279, %284 : vector<1x256xf32>
    %286 = vector.extract_strided_slice %280 {offsets = [1, 0], sizes = [1, 256], strides = [1, 1]} : vector<2x256xf32> to vector<1x256xf32>
    %287 = arith.mulf %282, %286 : vector<1x256xf32>
    %288 = arith.addf %285, %287 : vector<1x256xf32>
    %c242_i32 = arith.constant 242 : i32
    %289 = tpu.dynamic_rotate %27 by %c242_i32 dim 1 : vector<2x256xf32>, i32 -> vector<2x256xf32>
    %c29 = arith.constant 29 : index
    %c0_75 = arith.constant 0 : index
    %290 = vector.load %arg4[%c29, %c0_75] : memref<98x256xf32, #tpu.memory_space<vmem>>, vector<1x256xf32>
    %c78 = arith.constant 78 : index
    %c0_76 = arith.constant 0 : index
    %291 = vector.load %arg4[%c78, %c0_76] : memref<98x256xf32, #tpu.memory_space<vmem>>, vector<1x256xf32>
    %292 = vector.extract_strided_slice %289 {offsets = [0, 0], sizes = [1, 256], strides = [1, 1]} : vector<2x256xf32> to vector<1x256xf32>
    %293 = arith.mulf %290, %292 : vector<1x256xf32>
    %294 = arith.addf %288, %293 : vector<1x256xf32>
    %295 = vector.extract_strided_slice %289 {offsets = [1, 0], sizes = [1, 256], strides = [1, 1]} : vector<2x256xf32> to vector<1x256xf32>
    %296 = arith.mulf %291, %295 : vector<1x256xf32>
    %297 = arith.addf %294, %296 : vector<1x256xf32>
    %c241_i32 = arith.constant 241 : i32
    %298 = tpu.dynamic_rotate %27 by %c241_i32 dim 1 : vector<2x256xf32>, i32 -> vector<2x256xf32>
    %c30 = arith.constant 30 : index
    %c0_77 = arith.constant 0 : index
    %299 = vector.load %arg4[%c30, %c0_77] : memref<98x256xf32, #tpu.memory_space<vmem>>, vector<1x256xf32>
    %c79 = arith.constant 79 : index
    %c0_78 = arith.constant 0 : index
    %300 = vector.load %arg4[%c79, %c0_78] : memref<98x256xf32, #tpu.memory_space<vmem>>, vector<1x256xf32>
    %301 = vector.extract_strided_slice %298 {offsets = [0, 0], sizes = [1, 256], strides = [1, 1]} : vector<2x256xf32> to vector<1x256xf32>
    %302 = arith.mulf %299, %301 : vector<1x256xf32>
    %303 = arith.addf %297, %302 : vector<1x256xf32>
    %304 = vector.extract_strided_slice %298 {offsets = [1, 0], sizes = [1, 256], strides = [1, 1]} : vector<2x256xf32> to vector<1x256xf32>
    %305 = arith.mulf %300, %304 : vector<1x256xf32>
    %306 = arith.addf %303, %305 : vector<1x256xf32>
    %c240_i32 = arith.constant 240 : i32
    %307 = tpu.dynamic_rotate %27 by %c240_i32 dim 1 : vector<2x256xf32>, i32 -> vector<2x256xf32>
    %c31 = arith.constant 31 : index
    %c0_79 = arith.constant 0 : index
    %308 = vector.load %arg4[%c31, %c0_79] : memref<98x256xf32, #tpu.memory_space<vmem>>, vector<1x256xf32>
    %c80 = arith.constant 80 : index
    %c0_80 = arith.constant 0 : index
    %309 = vector.load %arg4[%c80, %c0_80] : memref<98x256xf32, #tpu.memory_space<vmem>>, vector<1x256xf32>
    %310 = vector.extract_strided_slice %307 {offsets = [0, 0], sizes = [1, 256], strides = [1, 1]} : vector<2x256xf32> to vector<1x256xf32>
    %311 = arith.mulf %308, %310 : vector<1x256xf32>
    %312 = arith.addf %306, %311 : vector<1x256xf32>
    %313 = vector.extract_strided_slice %307 {offsets = [1, 0], sizes = [1, 256], strides = [1, 1]} : vector<2x256xf32> to vector<1x256xf32>
    %314 = arith.mulf %309, %313 : vector<1x256xf32>
    %315 = arith.addf %312, %314 : vector<1x256xf32>
    %c239_i32 = arith.constant 239 : i32
    %316 = tpu.dynamic_rotate %27 by %c239_i32 dim 1 : vector<2x256xf32>, i32 -> vector<2x256xf32>
    %c32 = arith.constant 32 : index
    %c0_81 = arith.constant 0 : index
    %317 = vector.load %arg4[%c32, %c0_81] : memref<98x256xf32, #tpu.memory_space<vmem>>, vector<1x256xf32>
    %c81 = arith.constant 81 : index
    %c0_82 = arith.constant 0 : index
    %318 = vector.load %arg4[%c81, %c0_82] : memref<98x256xf32, #tpu.memory_space<vmem>>, vector<1x256xf32>
    %319 = vector.extract_strided_slice %316 {offsets = [0, 0], sizes = [1, 256], strides = [1, 1]} : vector<2x256xf32> to vector<1x256xf32>
    %320 = arith.mulf %317, %319 : vector<1x256xf32>
    %321 = arith.addf %315, %320 : vector<1x256xf32>
    %322 = vector.extract_strided_slice %316 {offsets = [1, 0], sizes = [1, 256], strides = [1, 1]} : vector<2x256xf32> to vector<1x256xf32>
    %323 = arith.mulf %318, %322 : vector<1x256xf32>
    %324 = arith.addf %321, %323 : vector<1x256xf32>
    %c238_i32 = arith.constant 238 : i32
    %325 = tpu.dynamic_rotate %27 by %c238_i32 dim 1 : vector<2x256xf32>, i32 -> vector<2x256xf32>
    %c33 = arith.constant 33 : index
    %c0_83 = arith.constant 0 : index
    %326 = vector.load %arg4[%c33, %c0_83] : memref<98x256xf32, #tpu.memory_space<vmem>>, vector<1x256xf32>
    %c82 = arith.constant 82 : index
    %c0_84 = arith.constant 0 : index
    %327 = vector.load %arg4[%c82, %c0_84] : memref<98x256xf32, #tpu.memory_space<vmem>>, vector<1x256xf32>
    %328 = vector.extract_strided_slice %325 {offsets = [0, 0], sizes = [1, 256], strides = [1, 1]} : vector<2x256xf32> to vector<1x256xf32>
    %329 = arith.mulf %326, %328 : vector<1x256xf32>
    %330 = arith.addf %324, %329 : vector<1x256xf32>
    %331 = vector.extract_strided_slice %325 {offsets = [1, 0], sizes = [1, 256], strides = [1, 1]} : vector<2x256xf32> to vector<1x256xf32>
    %332 = arith.mulf %327, %331 : vector<1x256xf32>
    %333 = arith.addf %330, %332 : vector<1x256xf32>
    %c237_i32 = arith.constant 237 : i32
    %334 = tpu.dynamic_rotate %27 by %c237_i32 dim 1 : vector<2x256xf32>, i32 -> vector<2x256xf32>
    %c34 = arith.constant 34 : index
    %c0_85 = arith.constant 0 : index
    %335 = vector.load %arg4[%c34, %c0_85] : memref<98x256xf32, #tpu.memory_space<vmem>>, vector<1x256xf32>
    %c83 = arith.constant 83 : index
    %c0_86 = arith.constant 0 : index
    %336 = vector.load %arg4[%c83, %c0_86] : memref<98x256xf32, #tpu.memory_space<vmem>>, vector<1x256xf32>
    %337 = vector.extract_strided_slice %334 {offsets = [0, 0], sizes = [1, 256], strides = [1, 1]} : vector<2x256xf32> to vector<1x256xf32>
    %338 = arith.mulf %335, %337 : vector<1x256xf32>
    %339 = arith.addf %333, %338 : vector<1x256xf32>
    %340 = vector.extract_strided_slice %334 {offsets = [1, 0], sizes = [1, 256], strides = [1, 1]} : vector<2x256xf32> to vector<1x256xf32>
    %341 = arith.mulf %336, %340 : vector<1x256xf32>
    %342 = arith.addf %339, %341 : vector<1x256xf32>
    %c227_i32 = arith.constant 227 : i32
    %343 = tpu.dynamic_rotate %27 by %c227_i32 dim 1 : vector<2x256xf32>, i32 -> vector<2x256xf32>
    %c35 = arith.constant 35 : index
    %c0_87 = arith.constant 0 : index
    %344 = vector.load %arg4[%c35, %c0_87] : memref<98x256xf32, #tpu.memory_space<vmem>>, vector<1x256xf32>
    %c84 = arith.constant 84 : index
    %c0_88 = arith.constant 0 : index
    %345 = vector.load %arg4[%c84, %c0_88] : memref<98x256xf32, #tpu.memory_space<vmem>>, vector<1x256xf32>
    %346 = vector.extract_strided_slice %343 {offsets = [0, 0], sizes = [1, 256], strides = [1, 1]} : vector<2x256xf32> to vector<1x256xf32>
    %347 = arith.mulf %344, %346 : vector<1x256xf32>
    %348 = arith.addf %342, %347 : vector<1x256xf32>
    %349 = vector.extract_strided_slice %343 {offsets = [1, 0], sizes = [1, 256], strides = [1, 1]} : vector<2x256xf32> to vector<1x256xf32>
    %350 = arith.mulf %345, %349 : vector<1x256xf32>
    %351 = arith.addf %348, %350 : vector<1x256xf32>
    %c226_i32 = arith.constant 226 : i32
    %352 = tpu.dynamic_rotate %27 by %c226_i32 dim 1 : vector<2x256xf32>, i32 -> vector<2x256xf32>
    %c36 = arith.constant 36 : index
    %c0_89 = arith.constant 0 : index
    %353 = vector.load %arg4[%c36, %c0_89] : memref<98x256xf32, #tpu.memory_space<vmem>>, vector<1x256xf32>
    %c85 = arith.constant 85 : index
    %c0_90 = arith.constant 0 : index
    %354 = vector.load %arg4[%c85, %c0_90] : memref<98x256xf32, #tpu.memory_space<vmem>>, vector<1x256xf32>
    %355 = vector.extract_strided_slice %352 {offsets = [0, 0], sizes = [1, 256], strides = [1, 1]} : vector<2x256xf32> to vector<1x256xf32>
    %356 = arith.mulf %353, %355 : vector<1x256xf32>
    %357 = arith.addf %351, %356 : vector<1x256xf32>
    %358 = vector.extract_strided_slice %352 {offsets = [1, 0], sizes = [1, 256], strides = [1, 1]} : vector<2x256xf32> to vector<1x256xf32>
    %359 = arith.mulf %354, %358 : vector<1x256xf32>
    %360 = arith.addf %357, %359 : vector<1x256xf32>
    %c225_i32 = arith.constant 225 : i32
    %361 = tpu.dynamic_rotate %27 by %c225_i32 dim 1 : vector<2x256xf32>, i32 -> vector<2x256xf32>
    %c37 = arith.constant 37 : index
    %c0_91 = arith.constant 0 : index
    %362 = vector.load %arg4[%c37, %c0_91] : memref<98x256xf32, #tpu.memory_space<vmem>>, vector<1x256xf32>
    %c86 = arith.constant 86 : index
    %c0_92 = arith.constant 0 : index
    %363 = vector.load %arg4[%c86, %c0_92] : memref<98x256xf32, #tpu.memory_space<vmem>>, vector<1x256xf32>
    %364 = vector.extract_strided_slice %361 {offsets = [0, 0], sizes = [1, 256], strides = [1, 1]} : vector<2x256xf32> to vector<1x256xf32>
    %365 = arith.mulf %362, %364 : vector<1x256xf32>
    %366 = arith.addf %360, %365 : vector<1x256xf32>
    %367 = vector.extract_strided_slice %361 {offsets = [1, 0], sizes = [1, 256], strides = [1, 1]} : vector<2x256xf32> to vector<1x256xf32>
    %368 = arith.mulf %363, %367 : vector<1x256xf32>
    %369 = arith.addf %366, %368 : vector<1x256xf32>
    %c224_i32 = arith.constant 224 : i32
    %370 = tpu.dynamic_rotate %27 by %c224_i32 dim 1 : vector<2x256xf32>, i32 -> vector<2x256xf32>
    %c38 = arith.constant 38 : index
    %c0_93 = arith.constant 0 : index
    %371 = vector.load %arg4[%c38, %c0_93] : memref<98x256xf32, #tpu.memory_space<vmem>>, vector<1x256xf32>
    %c87 = arith.constant 87 : index
    %c0_94 = arith.constant 0 : index
    %372 = vector.load %arg4[%c87, %c0_94] : memref<98x256xf32, #tpu.memory_space<vmem>>, vector<1x256xf32>
    %373 = vector.extract_strided_slice %370 {offsets = [0, 0], sizes = [1, 256], strides = [1, 1]} : vector<2x256xf32> to vector<1x256xf32>
    %374 = arith.mulf %371, %373 : vector<1x256xf32>
    %375 = arith.addf %369, %374 : vector<1x256xf32>
    %376 = vector.extract_strided_slice %370 {offsets = [1, 0], sizes = [1, 256], strides = [1, 1]} : vector<2x256xf32> to vector<1x256xf32>
    %377 = arith.mulf %372, %376 : vector<1x256xf32>
    %378 = arith.addf %375, %377 : vector<1x256xf32>
    %c223_i32 = arith.constant 223 : i32
    %379 = tpu.dynamic_rotate %27 by %c223_i32 dim 1 : vector<2x256xf32>, i32 -> vector<2x256xf32>
    %c39 = arith.constant 39 : index
    %c0_95 = arith.constant 0 : index
    %380 = vector.load %arg4[%c39, %c0_95] : memref<98x256xf32, #tpu.memory_space<vmem>>, vector<1x256xf32>
    %c88 = arith.constant 88 : index
    %c0_96 = arith.constant 0 : index
    %381 = vector.load %arg4[%c88, %c0_96] : memref<98x256xf32, #tpu.memory_space<vmem>>, vector<1x256xf32>
    %382 = vector.extract_strided_slice %379 {offsets = [0, 0], sizes = [1, 256], strides = [1, 1]} : vector<2x256xf32> to vector<1x256xf32>
    %383 = arith.mulf %380, %382 : vector<1x256xf32>
    %384 = arith.addf %378, %383 : vector<1x256xf32>
    %385 = vector.extract_strided_slice %379 {offsets = [1, 0], sizes = [1, 256], strides = [1, 1]} : vector<2x256xf32> to vector<1x256xf32>
    %386 = arith.mulf %381, %385 : vector<1x256xf32>
    %387 = arith.addf %384, %386 : vector<1x256xf32>
    %c222_i32 = arith.constant 222 : i32
    %388 = tpu.dynamic_rotate %27 by %c222_i32 dim 1 : vector<2x256xf32>, i32 -> vector<2x256xf32>
    %c40 = arith.constant 40 : index
    %c0_97 = arith.constant 0 : index
    %389 = vector.load %arg4[%c40, %c0_97] : memref<98x256xf32, #tpu.memory_space<vmem>>, vector<1x256xf32>
    %c89 = arith.constant 89 : index
    %c0_98 = arith.constant 0 : index
    %390 = vector.load %arg4[%c89, %c0_98] : memref<98x256xf32, #tpu.memory_space<vmem>>, vector<1x256xf32>
    %391 = vector.extract_strided_slice %388 {offsets = [0, 0], sizes = [1, 256], strides = [1, 1]} : vector<2x256xf32> to vector<1x256xf32>
    %392 = arith.mulf %389, %391 : vector<1x256xf32>
    %393 = arith.addf %387, %392 : vector<1x256xf32>
    %394 = vector.extract_strided_slice %388 {offsets = [1, 0], sizes = [1, 256], strides = [1, 1]} : vector<2x256xf32> to vector<1x256xf32>
    %395 = arith.mulf %390, %394 : vector<1x256xf32>
    %396 = arith.addf %393, %395 : vector<1x256xf32>
    %c221_i32 = arith.constant 221 : i32
    %397 = tpu.dynamic_rotate %27 by %c221_i32 dim 1 : vector<2x256xf32>, i32 -> vector<2x256xf32>
    %c41 = arith.constant 41 : index
    %c0_99 = arith.constant 0 : index
    %398 = vector.load %arg4[%c41, %c0_99] : memref<98x256xf32, #tpu.memory_space<vmem>>, vector<1x256xf32>
    %c90 = arith.constant 90 : index
    %c0_100 = arith.constant 0 : index
    %399 = vector.load %arg4[%c90, %c0_100] : memref<98x256xf32, #tpu.memory_space<vmem>>, vector<1x256xf32>
    %400 = vector.extract_strided_slice %397 {offsets = [0, 0], sizes = [1, 256], strides = [1, 1]} : vector<2x256xf32> to vector<1x256xf32>
    %401 = arith.mulf %398, %400 : vector<1x256xf32>
    %402 = arith.addf %396, %401 : vector<1x256xf32>
    %403 = vector.extract_strided_slice %397 {offsets = [1, 0], sizes = [1, 256], strides = [1, 1]} : vector<2x256xf32> to vector<1x256xf32>
    %404 = arith.mulf %399, %403 : vector<1x256xf32>
    %405 = arith.addf %402, %404 : vector<1x256xf32>
    %c211_i32 = arith.constant 211 : i32
    %406 = tpu.dynamic_rotate %27 by %c211_i32 dim 1 : vector<2x256xf32>, i32 -> vector<2x256xf32>
    %c42 = arith.constant 42 : index
    %c0_101 = arith.constant 0 : index
    %407 = vector.load %arg4[%c42, %c0_101] : memref<98x256xf32, #tpu.memory_space<vmem>>, vector<1x256xf32>
    %c91 = arith.constant 91 : index
    %c0_102 = arith.constant 0 : index
    %408 = vector.load %arg4[%c91, %c0_102] : memref<98x256xf32, #tpu.memory_space<vmem>>, vector<1x256xf32>
    %409 = vector.extract_strided_slice %406 {offsets = [0, 0], sizes = [1, 256], strides = [1, 1]} : vector<2x256xf32> to vector<1x256xf32>
    %410 = arith.mulf %407, %409 : vector<1x256xf32>
    %411 = arith.addf %405, %410 : vector<1x256xf32>
    %412 = vector.extract_strided_slice %406 {offsets = [1, 0], sizes = [1, 256], strides = [1, 1]} : vector<2x256xf32> to vector<1x256xf32>
    %413 = arith.mulf %408, %412 : vector<1x256xf32>
    %414 = arith.addf %411, %413 : vector<1x256xf32>
    %c210_i32 = arith.constant 210 : i32
    %415 = tpu.dynamic_rotate %27 by %c210_i32 dim 1 : vector<2x256xf32>, i32 -> vector<2x256xf32>
    %c43 = arith.constant 43 : index
    %c0_103 = arith.constant 0 : index
    %416 = vector.load %arg4[%c43, %c0_103] : memref<98x256xf32, #tpu.memory_space<vmem>>, vector<1x256xf32>
    %c92 = arith.constant 92 : index
    %c0_104 = arith.constant 0 : index
    %417 = vector.load %arg4[%c92, %c0_104] : memref<98x256xf32, #tpu.memory_space<vmem>>, vector<1x256xf32>
    %418 = vector.extract_strided_slice %415 {offsets = [0, 0], sizes = [1, 256], strides = [1, 1]} : vector<2x256xf32> to vector<1x256xf32>
    %419 = arith.mulf %416, %418 : vector<1x256xf32>
    %420 = arith.addf %414, %419 : vector<1x256xf32>
    %421 = vector.extract_strided_slice %415 {offsets = [1, 0], sizes = [1, 256], strides = [1, 1]} : vector<2x256xf32> to vector<1x256xf32>
    %422 = arith.mulf %417, %421 : vector<1x256xf32>
    %423 = arith.addf %420, %422 : vector<1x256xf32>
    %c209_i32 = arith.constant 209 : i32
    %424 = tpu.dynamic_rotate %27 by %c209_i32 dim 1 : vector<2x256xf32>, i32 -> vector<2x256xf32>
    %c44 = arith.constant 44 : index
    %c0_105 = arith.constant 0 : index
    %425 = vector.load %arg4[%c44, %c0_105] : memref<98x256xf32, #tpu.memory_space<vmem>>, vector<1x256xf32>
    %c93 = arith.constant 93 : index
    %c0_106 = arith.constant 0 : index
    %426 = vector.load %arg4[%c93, %c0_106] : memref<98x256xf32, #tpu.memory_space<vmem>>, vector<1x256xf32>
    %427 = vector.extract_strided_slice %424 {offsets = [0, 0], sizes = [1, 256], strides = [1, 1]} : vector<2x256xf32> to vector<1x256xf32>
    %428 = arith.mulf %425, %427 : vector<1x256xf32>
    %429 = arith.addf %423, %428 : vector<1x256xf32>
    %430 = vector.extract_strided_slice %424 {offsets = [1, 0], sizes = [1, 256], strides = [1, 1]} : vector<2x256xf32> to vector<1x256xf32>
    %431 = arith.mulf %426, %430 : vector<1x256xf32>
    %432 = arith.addf %429, %431 : vector<1x256xf32>
    %c208_i32 = arith.constant 208 : i32
    %433 = tpu.dynamic_rotate %27 by %c208_i32 dim 1 : vector<2x256xf32>, i32 -> vector<2x256xf32>
    %c45 = arith.constant 45 : index
    %c0_107 = arith.constant 0 : index
    %434 = vector.load %arg4[%c45, %c0_107] : memref<98x256xf32, #tpu.memory_space<vmem>>, vector<1x256xf32>
    %c94 = arith.constant 94 : index
    %c0_108 = arith.constant 0 : index
    %435 = vector.load %arg4[%c94, %c0_108] : memref<98x256xf32, #tpu.memory_space<vmem>>, vector<1x256xf32>
    %436 = vector.extract_strided_slice %433 {offsets = [0, 0], sizes = [1, 256], strides = [1, 1]} : vector<2x256xf32> to vector<1x256xf32>
    %437 = arith.mulf %434, %436 : vector<1x256xf32>
    %438 = arith.addf %432, %437 : vector<1x256xf32>
    %439 = vector.extract_strided_slice %433 {offsets = [1, 0], sizes = [1, 256], strides = [1, 1]} : vector<2x256xf32> to vector<1x256xf32>
    %440 = arith.mulf %435, %439 : vector<1x256xf32>
    %441 = arith.addf %438, %440 : vector<1x256xf32>
    %c207_i32 = arith.constant 207 : i32
    %442 = tpu.dynamic_rotate %27 by %c207_i32 dim 1 : vector<2x256xf32>, i32 -> vector<2x256xf32>
    %c46 = arith.constant 46 : index
    %c0_109 = arith.constant 0 : index
    %443 = vector.load %arg4[%c46, %c0_109] : memref<98x256xf32, #tpu.memory_space<vmem>>, vector<1x256xf32>
    %c95 = arith.constant 95 : index
    %c0_110 = arith.constant 0 : index
    %444 = vector.load %arg4[%c95, %c0_110] : memref<98x256xf32, #tpu.memory_space<vmem>>, vector<1x256xf32>
    %445 = vector.extract_strided_slice %442 {offsets = [0, 0], sizes = [1, 256], strides = [1, 1]} : vector<2x256xf32> to vector<1x256xf32>
    %446 = arith.mulf %443, %445 : vector<1x256xf32>
    %447 = arith.addf %441, %446 : vector<1x256xf32>
    %448 = vector.extract_strided_slice %442 {offsets = [1, 0], sizes = [1, 256], strides = [1, 1]} : vector<2x256xf32> to vector<1x256xf32>
    %449 = arith.mulf %444, %448 : vector<1x256xf32>
    %450 = arith.addf %447, %449 : vector<1x256xf32>
    %c206_i32 = arith.constant 206 : i32
    %451 = tpu.dynamic_rotate %27 by %c206_i32 dim 1 : vector<2x256xf32>, i32 -> vector<2x256xf32>
    %c47 = arith.constant 47 : index
    %c0_111 = arith.constant 0 : index
    %452 = vector.load %arg4[%c47, %c0_111] : memref<98x256xf32, #tpu.memory_space<vmem>>, vector<1x256xf32>
    %c96 = arith.constant 96 : index
    %c0_112 = arith.constant 0 : index
    %453 = vector.load %arg4[%c96, %c0_112] : memref<98x256xf32, #tpu.memory_space<vmem>>, vector<1x256xf32>
    %454 = vector.extract_strided_slice %451 {offsets = [0, 0], sizes = [1, 256], strides = [1, 1]} : vector<2x256xf32> to vector<1x256xf32>
    %455 = arith.mulf %452, %454 : vector<1x256xf32>
    %456 = arith.addf %450, %455 : vector<1x256xf32>
    %457 = vector.extract_strided_slice %451 {offsets = [1, 0], sizes = [1, 256], strides = [1, 1]} : vector<2x256xf32> to vector<1x256xf32>
    %458 = arith.mulf %453, %457 : vector<1x256xf32>
    %459 = arith.addf %456, %458 : vector<1x256xf32>
    %c205_i32 = arith.constant 205 : i32
    %460 = tpu.dynamic_rotate %27 by %c205_i32 dim 1 : vector<2x256xf32>, i32 -> vector<2x256xf32>
    %c48 = arith.constant 48 : index
    %c0_113 = arith.constant 0 : index
    %461 = vector.load %arg4[%c48, %c0_113] : memref<98x256xf32, #tpu.memory_space<vmem>>, vector<1x256xf32>
    %c97 = arith.constant 97 : index
    %c0_114 = arith.constant 0 : index
    %462 = vector.load %arg4[%c97, %c0_114] : memref<98x256xf32, #tpu.memory_space<vmem>>, vector<1x256xf32>
    %463 = vector.extract_strided_slice %460 {offsets = [0, 0], sizes = [1, 256], strides = [1, 1]} : vector<2x256xf32> to vector<1x256xf32>
    %464 = arith.mulf %461, %463 : vector<1x256xf32>
    %465 = arith.addf %459, %464 : vector<1x256xf32>
    %466 = vector.extract_strided_slice %460 {offsets = [1, 0], sizes = [1, 256], strides = [1, 1]} : vector<2x256xf32> to vector<1x256xf32>
    %467 = arith.mulf %462, %466 : vector<1x256xf32>
    %468 = arith.addf %465, %467 : vector<1x256xf32>
    %469 = arith.negf %468 : vector<1x256xf32>
    %470 = math.exp %469 : vector<1x256xf32>
    %cst_115 = arith.constant 1.000000e+00 : f32
    %471 = vector.broadcast %cst_115 : f32 to vector<1x256xf32>
    %472 = arith.addf %471, %470 : vector<1x256xf32>
    %473 = arith.divf %471, %472 : vector<1x256xf32>
    %c0_116 = arith.constant 0 : index
    %c0_117 = arith.constant 0 : index
    %c0_118 = arith.constant 0 : index
    %474 = vector.load %arg1[%c0_116, %c0_117, %c0_118] : memref<1x32x256xf32, #tpu.memory_space<vmem>>, vector<1x32x256xf32>
    %475 = vector.shape_cast %19 : vector<1x32xf32> to vector<1x32x1xf32>
    %476 = vector.broadcast %475 : vector<1x32x1xf32> to vector<1x32x256xf32>
    %477 = arith.mulf %474, %476 : vector<1x32x256xf32>
    %478 = vector.shape_cast %473 : vector<1x256xf32> to vector<1x1x256xf32>
    %479 = vector.broadcast %478 : vector<1x1x256xf32> to vector<1x32x256xf32>
    %480 = arith.mulf %477, %479 : vector<1x32x256xf32>
    %c0_119 = arith.constant 0 : index
    %c0_120 = arith.constant 0 : index
    %c0_121 = arith.constant 0 : index
    %481 = vector.load %arg5[%c0_119, %c0_120, %c0_121] : memref<1x32x256xf32, #tpu.memory_space<vmem>>, vector<1x32x256xf32>
    tpu.vector_store %arg5[%c0_119, %c0_120, %c0_121], %480 {strides = array<i32>} : memref<1x32x256xf32, #tpu.memory_space<vmem>>, vector<1x32x256xf32>,
    return
  }
  func.func @transform_0(%arg0: i32) -> (i32, i32, i32) {
    %c0_i32 = arith.constant 0 : i32
    %c0_i32_0 = arith.constant 0 : i32
    %c0_i32_1 = arith.constant 0 : i32
    return %arg0, %c0_i32, %c0_i32_0 : i32, i32, i32
  }
  func.func @transform_1(%arg0: i32) -> (i32, i32) {
    %c0_i32 = arith.constant 0 : i32
    %c0_i32_0 = arith.constant 0 : i32
    %c0_i32_1 = arith.constant 0 : i32
    return %c0_i32, %c0_i32_0 : i32, i32
  }
  func.func @transform_2(%arg0: i32) -> (i32, i32) {
    %c0_i32 = arith.constant 0 : i32
    %c0_i32_0 = arith.constant 0 : i32
    %c0_i32_1 = arith.constant 0 : i32
    return %c0_i32, %c0_i32_0 : i32, i32
  }
  func.func @transform_3(%arg0: i32) -> (i32, i32) {
    %c0_i32 = arith.constant 0 : i32
    %c0_i32_0 = arith.constant 0 : i32
    %c0_i32_1 = arith.constant 0 : i32
    return %c0_i32, %c0_i32_0 : i32, i32
  }
  func.func @transform_4(%arg0: i32) -> (i32, i32, i32) {
    %c0_i32 = arith.constant 0 : i32
    %c0_i32_0 = arith.constant 0 : i32
    %c0_i32_1 = arith.constant 0 : i32
    return %arg0, %c0_i32, %c0_i32_0 : i32, i32, i32
  }
}

</mosaic_0001>

<bundles_post_ra>
// kernel: tpu_custom_call.1
= control target key start
LH: loop header
LB: loop body
LE: loop exit
PB: predicated region body
PF: predicated region fallthrough
CT: control target
= control target key end

     0   :  { %9 = vsyncpa [#allocation3], 0  ;;  %s3071_s0 = inlined_call_operand.hbm [shape: f32[2,32,256], index: 0, kind: input, shape index: {}]   ;;  %s3072_s1 = inlined_call_operand.vmem [shape: f32[2,32], index: 1, kind: input, shape index: {}]   ;;  %s3073_s2 = inlined_call_operand.vmem [shape: f32[32,2], index: 2, kind: input, shape index: {}]   ;;  %s3074_s3 = inlined_call_operand.hbm [shape: f32[98,256], index: 3, kind: input, shape index: {}]   ;;  %s3075_s4 = inlined_call_operand.hbm [shape: f32[2,32,256], index: 4, kind: output, shape index: {}]  }
   0x1   :  { %11 = vsyncpa [#allocation3 + $0x1], 0 }
   0x2   :  { %12 = vsyncpa [#allocation6], 0 }
   0x3   :  { %13 = vsyncpa [#allocation4], 0 }
   0x4   :  { %15 = vsyncpa [#allocation4 + $0x1], 0  ;;  %s2205_s15 = smov 0   ;;  %s2207_s16 = smov 0  }
   0x5   :  { %s2209_s17 = smov 0   ;;  %s2211_s18 = smov 0  }
   0x6 LB: > { %s2226_s19 = sadd.s32 4294967295, %s2124_s18   ;;  %s1840_s20 = sadd.s32 4294967294, %s2124_s18   ;;  %s2124_s18 = sphi %s2211_s18, %s3085_s18   ;;  %s2120_s17 = sphi %s2209_s17, %s3084_s17   ;;  %s2116_s16 = sphi %s2207_s16, %s3083_s16   ;;  %s2112_s15 = sphi %s2205_s15, %s3082_s15  }
   0x7   : > { %p41_p0 = scmp.ne.s32.totalorder %s2116_s16, %s2112_s15  ;;  %p42_p1 = scmp.eq.s32.totalorder %s2226_s19, 0 }
   0x8   : > { %p128_p2 = scmp.eq.s32.totalorder %s2226_s19, 1  ;;  %p134_p3 = scmp.eq.s32.totalorder %s1840_s20, 1 }
   0x9   : > { %p2235_p4 = por %p42_p1, %p41_p0  ;;  %p1841_p5 = scmp.ge.s32.totalorder %s2124_s18, 1 }
   0xa   : > { %p2240_p6 = por %p134_p3, %p41_p0  ;;  %p141_p7 = scmp.lt.s32.totalorder %s2124_s18, 3 }
   0xb   : > { %s158_s25 = sshll.u32 %s3074_s3, 4  ;;  %s2126_s27 = smov [#allocation5]   ;;  %s159_s25 = int_to_ptr.hbm [resolvable:$true] %s158_s25 }
   0xc   : > { %p2248_p8 = pnand %p1841_p5, %p141_p7  ;;  %s160_s28 = sshll.u32 %s2126_s27, 4  ;;  %s161_s28 = int_to_ptr.vmem [resolvable:$true] %s160_s28 }
   0xd   : > { %s2258_s29 = sadd.s32 1, %s2124_s18   ;;  %s2127_s30 = smov 256  }
   0xe   : > { %p1875_p9 = pneg %p2248_p8  ;;  %s2128_s5 = smov 16  }
   0xf   : > { %s25_s6 = ssub.s32 %s2124_s18, %s2258_s29  ;;  %s28_s7 = sadd.s32 1, %s2120_s17 }
  0x10   : > { %p1876_p10 = pnand %p1875_p9, %p42_p1  ;;  %p26_p12 = scmp.eq.s32.totalorder %s25_s6, 0 }
  0x11   : > { %p35_p13 = scmp.ne.s32.totalorder %s2120_s17, %s2116_s16  ;;  %p36_p0 = scmp.eq.s32.totalorder %s2124_s18, 0 }
  0x12   : > { %1878 = dma.hbm_to_vmem [thread:$0]  (!%p1876_p10), %s159_s25, 3328, %s161_s28, [#allocation6], %s2127_s30, %s2127_s30, %s2128_s5  }
  0x13   : > { %s2270_s8 = scalar_select %p26_p12, %s2120_s17, %s28_s7  }
  0x14   : > { %p2274_p3 = por %p128_p2, %p35_p13  ;;  %p1888_p5 = scmp.lt.s32.totalorder %s2124_s18, 2 }
  0x15   : > { %s174_s10 = sand.u32 1, %s2120_s17   ;;  %s1865_s11 = sshll.u32 %s2124_s18, 6 }
  0x16   : > { %p37_p7 = por %p36_p0, %p35_p13  ;;  %s1844_s12 = sshll.u32 %s174_s10, 6 }
  0x17   : > { %s183_s20 = scalar_lea.hbm %s3071_s0, %s1865_s11  ;;  %s178_s24 = scalar_lea.vmem [#allocation2], %s1844_s12 }
  0x18   : > { %s184_s23 = sshll.u32 %s183_s20, 4  ;;  %s186_s25 = sshll.u32 %s178_s24, 4  ;;  %s185_s23 = int_to_ptr.hbm [resolvable:$true] %s184_s23  ;;  %s187_s25 = int_to_ptr.vmem [resolvable:$true] %s186_s25 }
  0x19   : > { %p2284_p9 = pnand %p1888_p5, %p37_p7  ;;  %s175_s28 = scalar_lea.sflag [#allocation3], %s174_s10 }
  0x1a   : > { %s2024_s6 = sshra.s32 %s185_s23, 4  ;;  %s2031_s12 = scalar_lea.hbm %s3071_s0, 128  ;;  %s2025_s6 = int_to_ptr.hbm [resolvable:$true] %s2024_s6 }
  0x1b   : > { %s2026_s7 = scalar_lea.hbm %s2025_s6, 64  ;;  %p2028_p10 = pneg %p2284_p9 }
  0x1c   : > { %p2027_p2 = scmp.ne.s32.totalorder %s2025_s6, %s2026_s7  ;;  %p2032_p0 = scmp.lt.s32.totalorder %s2025_s6, %s3071_s0 }
  0x1d   : > { %p2033_p5 = scmp.lt.s32.totalorder %s2031_s12, %s2026_s7 }
  0x1e   : > { %p2029_p12 = pnand %p2028_p10, %p2027_p2 }
  0x1f   : > { %p2034_p7 = por %p2033_p5, %p2032_p0 }
  0x20   : > { %p2030_p13 = pneg %p2029_p12 }
  0x22   : > { %p2035_p11 = pnand %p2034_p7, %p2030_p13 }
  0x24   : > { %2038 = shalt.err (!%p2035_p11)
}
  0x25   : > { %1882 = dma.hbm_to_vmem [thread:$0]  (!%p2284_p9), %s185_s23, 1024, %s187_s25, %s175_s28, %s2127_s30, %s2127_s30, %s2128_s5  }
  0x26   : > { %198 = sbr.rel (%p2248_p8) target bundleno = 1217 (0x4c1), region = 36  ;;  %s2304_s10 = sand.u32 (!%p2248_p8), 1, %s2116_s16  }
  0x27   : > { %s1848_s24 = sshll.u32 (!%p2248_p8), %s2304_s10, 6  ;;  %s201_s6 = scalar_lea.sflag (!%p2248_p8), [#allocation3], %s2304_s10 }
  0x28   : > { %s204_s7 = scalar_lea.vmem (!%p2248_p8), [#allocation2], %s1848_s24 }
  0x2b   : > { %2099 = dma.done.wait (%p2235_p4), %s201_s6, 1024  }
  0x2c   : > { %2101 = vsyncadd (%p2235_p4), %s201_s6, 4294966272 }
  0x2d   : > { %2103 = dma.done.wait (%p42_p1), [#allocation6], 3328  }
  0x2e   : > { %2105 = vsyncadd (%p42_p1), [#allocation6], 4294963968  ;;  %v2318_v0 = vld [vmem:[%s204_s7 + $0x20] sm:$0xff]  ;;  %v2320_v1 = vld [vmem:[%s204_s7 + $0x28] sm:$0xff]  ;;  %v2129_v16 = vmov 256.0   ;;  %vm317_vm0 = vcmask 261120   ;;  %v282_v29 = vlaneseq }
  0x2f   : > { %v2322_v2 = vld [vmem:[%s204_s7] sm:$0xff]  ;;  %v261_v3 = vadd.f32 %v2320_v1, %v2318_v0  ;;  %v2326_v4 = vld [vmem:[%s204_s7 + $0x8] sm:$0xff]  ;;  %v2328_v5 = vld [vmem:[%s204_s7 + $0x10] sm:$0xff]  ;;  %v249_v15 = vmax.f32 %v2318_v0, %v2320_v1  ;;  %1982 = vrcp.f32 %v2129_v16  ;;  %vm345_vm1 = vcmask 15360   ;;  %s2131_s12 = smov 51   ;;  %s2132_s14 = smov 49  }
  0x30   : > { %v2330_v6 = vld [vmem:[%s204_s7 + $0x18] sm:$0xff]  ;;  %v255_v7 = vadd.f32 %v2326_v4, %v2322_v2  ;;  %v2336_v9 = vld [vmem:[%s204_s7 + $0x30] sm:$0xff]  ;;  %v243_v11 = vmax.f32 %v2322_v2, %v2326_v4  ;;  %v315_v21 = vld [vmem:[%s3073_s2 + $0x10] sm:$0xff]  ;;  %v2366_v31 = vand.u32 127, %v282_v29  ;;  %vm287_vm3 = vcmask 130112   ;;  %s2133_s20 = smov 50  }
  0x31   : > { %v246_v8 = vmax.f32 %v2328_v5, %v2330_v6  ;;  %262 = vadd.xlane.f32.xlu1 %v261_v3  ;;  %v2338_v10 = vld [vmem:[%s204_s7 + $0x38] sm:$0xff]  ;;  %v258_v12 = vadd.f32 %v2330_v6, %v2328_v5  ;;  %v316_v20 = vld [vmem:[%s3073_s2 + $0x18] sm:$0xff]  ;;  %v314_v23 = vld [vmem:[%s3073_s2 + $0x8] sm:$0xff]  ;;  %vm291_vm4 = vcmask 195712   ;;  %vm295_vm5 = vcmask 261312   ;;  %s2134_s6 = smov 48  }
  0x32   : > { %256 = vadd.xlane.f32.xlu0 %v255_v7  ;;  %v264_v13 = vadd.f32 %v2338_v10, %v2336_v9  ;;  %v252_v14 = vmax.f32 %v2336_v9, %v2338_v10  ;;  %v312_v18 = vld [vmem:[%s3072_s1] sm:$0x3]  ;;  %1853 = vmatpush.xpose.msk.msra.mxu1 %vm345_vm1, %v316_v20  ;;  %v285_v35 = vadd.s32 4294967288, %v2366_v31  ;;  %v289_v38 = vadd.s32 4294967280, %v2366_v31  ;;  %s2135_s7 = smov 46   ;;  %s2136_s21 = smov 47  }
  0x33   : > { %247 = vmax.xlane.f32.xlu2 %v246_v8  ;;  %1851 = vmatpush.xpose.msk.msra.mxu0 %vm317_vm0, %v312_v18  ;;  %v293_v42 = vadd.s32 4294967272, %v2366_v31  ;;  %vm310_vm6 = vcmask 1040384   ;;  %v313_v59 = vld [vmem:[%s3073_s2] sm:$0xff]  ;;  %v406_v62 = vshrl.u32 %v282_v29, 7  ;;  %s2137_s26 = smov 45   ;;  %s2138_s30 = smov 34  }
  0x34   : > { %s2139_s5 = smov 35   ;;  %s2140_s23 = smov 33   ;;  %vm488_vm12 = vcmp.lt.s32.totalorder %v2366_v31, 51  ;;  %vm537_vm13 = vcmp.lt.s32.totalorder %v2366_v31, 49  ;;  %vm512_vm14 = vcmp.lt.s32.totalorder %v2366_v31, 50  ;;  %vm562_vm15 = vcmp.lt.s32.totalorder %v2366_v31, 48 }
  0x35   : > { %v1983_v17 = vpop.eup %1982  ;;  %1977 = vset.pattern.permute.xlu2 %v406_v62  ;;  %v419_v63 = vadd.s32 16, %v406_v62  ;;  %v413_v3 = vadd.s32 8, %v406_v62  ;;  %s2141_s25 = smov 31   ;;  %s2142_s27 = smov 32  }
  0x36   : > { %v268_v19 = vmul.f32 256.0, %v1983_v17  ;;  %1854 = vmatpush.xpose.msk.msra.mxu1 %vm345_vm1, %v315_v21  ;;  %vm272_vm2 = vweird.f32 %v1983_v17  ;;  %s2143_s28 = smov 30   ;;  %s2144_s11 = smov 19  }
  0x37   : > { %1979 = vset.pattern.permute.xlu1 %v419_v63  ;;  %1978 = vset.pattern.permute.xlu0 %v413_v3  ;;  %s2145_s13 = smov 29  }
  0x38   : > { %v269_v22 = vsub.f32 1.0, %v268_v19 }
  0x39   : > { %244 = vmax.xlane.f32.xlu1 %v243_v11 }
  0x3a   : > { %259 = vadd.xlane.f32.xlu0 %v258_v12  ;;  %v270_v24 = vmul.f32 %v1983_v17, %v269_v22  ;;  %1855 = vmatpush.xpose.msk.msra.mxu1 %vm345_vm1, %v314_v23 }
  0x3b   : > { %265 = vadd.xlane.f32.xlu2 %v264_v13 }
  0x3c   : > { %v271_v28 = vadd.f32 %v1983_v17, %v270_v24 }
  0x3e   : > { %v273_v30 = vsel %vm272_vm2, %v1983_v17, %v271_v28  ;;  %1856 = vmatpush.xpose.msk.msra.mxu1 %vm345_vm1, %v313_v59  ;;  %v2130_v28 = vmov 32.0   ;;  %vm637_vm2 = vcmp.lt.s32.totalorder %v2366_v31, 45 }
  0x41   : > { %253 = vmax.xlane.f32.xlu1 %v252_v14 }
  0x42   : > { %250 = vmax.xlane.f32.xlu0 %v249_v15 }
  0xa4   : > { %v263_v25 = vpop.xlane.xlu1 %262 }
  0xa5   : > { %v257_v26 = vpop.xlane.xlu0 %256  ;;  %v276_v39 = vmul.f32 %v273_v30, %v263_v25 }
  0xa6   : > { %v248_v27 = vpop.xlane.xlu2 %247  ;;  %v274_v33 = vmul.f32 %v273_v30, %v257_v26  ;;  %v425_v26 = vadd.s32 24, %v406_v62 }
  0xa7   : > { %v303_v44 = vperm.slane %v248_v27, %v285_v35  ;;  %v290_v47 = vperm.slane %v276_v39, %v289_v38 }
  0xa8   : > { %v284_v41 = vperm.slane %v274_v33, %v2366_v31 }
  0xac   : > { %v245_v32 = vpop.xlane.xlu1 %244 }
  0xad   : > { %v260_v34 = vpop.xlane.xlu0 %259  ;;  %v302_v46 = vperm.slane %v245_v32, %v2366_v31 }
  0xae   : > { %v275_v36 = vmul.f32 %v273_v30, %v260_v34  ;;  %v266_v37 = vpop.xlane.xlu2 %265 }
  0xaf   : > { %v277_v43 = vmul.f32 %v273_v30, %v266_v37  ;;  %v304_v54 = vsel %vm287_vm3, %v303_v44, %v302_v46 }
  0xb0   : > { %v286_v40 = vperm.slane %v275_v36, %v285_v35 }
  0xb1   : > { %v294_v49 = vperm.slane %v277_v43, %v293_v42 }
  0xb2   : > { %v288_v45 = vsel %vm287_vm3, %v286_v40, %v284_v41  ;;  %vm687_vm3 = vcmp.lt.s32.totalorder %v2366_v31, 34 }
  0xb3   : > { %v292_v53 = vsel %vm291_vm4, %v290_v47, %v288_v45 }
  0xb4   : > { %v254_v48 = vpop.xlane.xlu1 %253  ;;  %v296_v56 = vsel %vm295_vm5, %v294_v49, %v292_v53 }
  0xb5   : > { %v251_v50 = vpop.xlane.xlu0 %250  ;;  %v307_v51 = vperm.slane %v254_v48, %v293_v42 }
  0xb6   : > { %v305_v52 = vperm.slane %v251_v50, %v289_v38 }
  0xb8   : > { %v306_v55 = vsel %vm291_vm4, %v305_v52, %v304_v54  ;;  %vm662_vm4 = vcmp.lt.s32.totalorder %v2366_v31, 35 }
  0xb9   : > { %v308_v57 = vsel %vm295_vm5, %v307_v51, %v306_v55  ;;  %vm712_vm5 = vcmp.lt.s32.totalorder %v2366_v31, 33 }
  0xba   : > { %v311_v58 = vsel %vm310_vm6, %v296_v56, %v308_v57 }
  0xbb   : > { %1852 = vmatmul.msk.f32.vlgmr.msra.gmra.mxu0 %vm317_vm0, %v311_v58  ;;  %vm612_vm0 = vcmp.lt.s32.totalorder %v2366_v31, 46 }
 0x138   : > { %v341_v60 = vpop.f32.mrf.mxu0 }
 0x139   : > { %v344_v61 = vmax.f32 %v341_v60, 0.0 }
 0x13b   : > { %1857 = vmatmul.msk.f32.vlgmr.msra.gmra.mxu1 %vm345_vm1, %v344_v61  ;;  %vm587_vm1 = vcmp.lt.s32.totalorder %v2366_v31, 47 }
 0x1b8   : > { %v378_v7 = vpop.f32.mrf.mxu1 }
 0x1b9   : > { %v382_v8 = vrot.slane %v378_v7, 1 }
 0x1bb   : > { %v384_v11 = vadd.f32 %v382_v8, %v378_v7 }
 0x1bd   : > { %v1858_v12 = vmul.f32 -1.442695, %v384_v11 }
 0x1bf   : > { %1984 = vpow2.f32 %v1858_v12 }
 0x1c5   : > { %v1985_v13 = vpop.eup %1984 }
 0x1c6   : > { %v388_v14 = vadd.f32 1.0, %v1985_v13 }
 0x1c8   : > { %1986 = vrcp.f32 %v388_v14  ;;  %v400_v18 = vand.u32 2147483648, %v388_v14  ;;  %v398_v20 = vand.u32 2147483647, %v388_v14  ;;  %vm394_vm8 = vweird.f32 %v388_v14 }
 0x1c9   : > { %1988 = vrcp.f32 %v2130_v28 }
 0x1ca   : > { %v401_v22 = vor.u32 1.1754944e-38, %v400_v18  ;;  %vm399_vm10 = vcmp.eq.f32.partialorder %v398_v20, 8.507059e+37 }
 0x1ce   : > { %v1987_v15 = vpop.eup %1986 }
 0x1cf   : > { %v390_v16 = vmul.f32 %v1987_v15, %v388_v14  ;;  %vm395_vm7 = vweird.f32 %v1987_v15  ;;  %v1989_v29 = vpop.eup %1988 }
 0x1d0   : > { %vm396_vm9 = vmor %vm394_vm8, %vm395_vm7  ;;  %v456_v40 = vmul.f32 32.0, %v1989_v29  ;;  %vm460_vm11 = vweird.f32 %v1989_v29  ;;  %vm762_vm7 = vcmp.lt.s32.totalorder %v2366_v31, 31  ;;  %vm737_vm8 = vcmp.lt.s32.totalorder %v2366_v31, 32 }
 0x1d1   : > { %v391_v17 = vsub.f32 1.0, %v390_v16 }
 0x1d2   : > { %v457_v43 = vsub.f32 1.0, %v456_v40 }
 0x1d3   : > { %v392_v19 = vmul.f32 %v1987_v15, %v391_v17 }
 0x1d4   : > { %v458_v52 = vmul.f32 %v1989_v29, %v457_v43 }
 0x1d5   : > { %v393_v21 = vadd.f32 %v1987_v15, %v392_v19 }
 0x1d6   : > { %v459_v61 = vadd.f32 %v1989_v29, %v458_v52 }
 0x1d7   : > { %v397_v23 = vsel %vm396_vm9, %v1987_v15, %v393_v21  ;;  %vm787_vm9 = vcmp.lt.s32.totalorder %v2366_v31, 30 }
 0x1d8   : > { %v402_v24 = vsel %vm399_vm10, %v401_v22, %v397_v23  ;;  %v461_v14 = vsel %vm460_vm11, %v1989_v29, %v459_v61  ;;  %vm837_vm10 = vcmp.lt.s32.totalorder %v2366_v31, 19  ;;  %vm812_vm11 = vcmp.lt.s32.totalorder %v2366_v31, 29 }
 0x1d9   : > { %v404_v25 = vperm.slane %v402_v24, 0 }
 0x1db   : > { %421 = vperm.xlu1 %1979, %v404_v25   ;;  %415 = vperm.xlu0 %1978, %v404_v25  }
 0x1dc   : > { %409 = vperm.xlu2 %1977, %v404_v25  }
 0x1e3   : > { %1981 = vset.pattern.permute.xlu0 %v425_v26 }
 0x1e4   : > { %1980 = vset.pattern.permute.xlu2 %v425_v26 }
 0x1ec   : > { %427 = vperm.xlu2 %1980, %v404_v25  }
 0x236   : > { %v410_v27 = vpop.permute.xlu2 %409 }
 0x237   : > { %v2381_v32 = vmul.f32 %v410_v27, %v2322_v2  ;;  %v2384_v33 = vmul.f32 %v410_v27, %v2326_v4 }
 0x246   : > { %v428_v30 = vpop.permute.xlu2 %427 }
 0x247   : > { %v2399_v2 = vmul.f32 %v428_v30, %v2336_v9  ;;  %v2402_v4 = vmul.f32 %v428_v30, %v2338_v10 }
 0x24d   : > { %v422_v34 = vpop.permute.xlu1 %421  ;;  %v416_v35 = vpop.permute.xlu0 %415 }
 0x24e   : > { %v2387_v36 = vmul.f32 %v422_v34, %v2318_v0  ;;  %v2390_v37 = vmul.f32 %v422_v34, %v2320_v1  ;;  %v2393_v38 = vmul.f32 %v416_v35, %v2328_v5  ;;  %v2396_v39 = vmul.f32 %v416_v35, %v2330_v6 }
 0x250   : > { %v464_v0 = vmax.f32 %v2381_v32, %v2387_v36  ;;  %v473_v1 = vmax.f32 %v2384_v33, %v2390_v37  ;;  %v437_v5 = vadd.f32 %v2393_v38, %v2381_v32  ;;  %v446_v6 = vadd.f32 %v2396_v39, %v2384_v33 }
 0x251   : > { %v465_v9 = vmax.f32 %v2393_v38, %v2399_v2  ;;  %v474_v10 = vmax.f32 %v2396_v39, %v2402_v4 }
 0x252   : > { %v438_v41 = vadd.f32 %v437_v5, %v2387_v36  ;;  %v447_v42 = vadd.f32 %v446_v6, %v2390_v37  ;;  %v491_v6 = vld [vmem:[#allocation5] ss:$8 sm:$0x3] }
 0x253   : > { %v466_v44 = vmax.f32 %v464_v0, %v465_v9  ;;  %v475_v45 = vmax.f32 %v473_v1, %v474_v10  ;;  %v493_v9 = vld [vmem:[#allocation5 + $0x61] ss:$8 sm:$0x3] }
 0x254   : > { %v439_v46 = vadd.f32 %v438_v41, %v2399_v2  ;;  %v448_v47 = vadd.f32 %v447_v42, %v2402_v4 }
 0x255   : > { %v467_v48 = vrot.slane %v466_v44, 4  ;;  %v476_v49 = vrot.slane %v475_v45, 4 }
 0x256   : > { %v440_v50 = vrot.slane %v439_v46, 4  ;;  %v449_v51 = vrot.slane %v448_v47, 4 }
 0x257   : > { %v468_v53 = vmax.f32 %v466_v44, %v467_v48  ;;  %v477_v54 = vmax.f32 %v475_v45, %v476_v49 }
 0x258   : > { %v441_v55 = vadd.f32 %v440_v50, %v439_v46  ;;  %v450_v56 = vadd.f32 %v449_v51, %v448_v47  ;;  %v516_v46 = vld [vmem:[#allocation5 + $0x1] ss:$8 sm:$0x3] }
 0x259   : > { %v469_v57 = vrot.slane %v468_v53, 2  ;;  %v478_v58 = vrot.slane %v477_v54, 2 }
 0x25a   : > { %v442_v59 = vrot.slane %v441_v55, 2  ;;  %v451_v60 = vrot.slane %v450_v56, 2 }
 0x25b   : > { %v470_v62 = vmax.f32 %v468_v53, %v469_v57  ;;  %v479_v63 = vmax.f32 %v477_v54, %v478_v58 }
 0x25c   : > { %v443_v3 = vadd.f32 %v442_v59, %v441_v55  ;;  %v452_v7 = vadd.f32 %v451_v60, %v450_v56  ;;  %v518_v56 = vld [vmem:[#allocation5 + $0x62] ss:$8 sm:$0x3] }
 0x25d   : > { %v471_v12 = vrot.slane %v470_v62, 1  ;;  %v480_v13 = vrot.slane %v479_v63, 1 }
 0x25e   : > { %v444_v8 = vrot.slane %v443_v3, 1  ;;  %v453_v11 = vrot.slane %v452_v7, 1 }
 0x25f   : > { %v472_v19 = vmax.f32 %v470_v62, %v471_v12  ;;  %v481_v20 = vmax.f32 %v479_v63, %v480_v13  ;;  %v541_v62 = vld [vmem:[#allocation5 + $0x2] ss:$8 sm:$0x3] }
 0x260   : > { %v445_v15 = vadd.f32 %v444_v8, %v443_v3  ;;  %v454_v16 = vadd.f32 %v453_v11, %v452_v7 }
 0x262   : > { %v462_v17 = vmul.f32 %v461_v14, %v445_v15  ;;  %v463_v18 = vmul.f32 %v461_v14, %v454_v16 }
 0x264   : > { %v2421_v21 = vsel %vm310_vm6, %v462_v17, %v472_v19  ;;  %v2424_v22 = vsel %vm310_vm6, %v463_v18, %v481_v20  ;;  %v543_v20 = vld [vmem:[#allocation5 + $0x63] ss:$8 sm:$0x3] }
 0x265   : > { %486 = vrot.lane.b32.xlu1 %v2424_v22, %s2131_s12  ;;  %533 = vrot.lane.b32.xlu0 %v2421_v21, %s2132_s14 }
 0x266   : > { %484 = vrot.lane.b32.xlu2 %v2421_v21, %s2131_s12  ;;  %s2146_s12 = smov 18  }
 0x26d   : > { %510 = vrot.lane.b32.xlu1 %v2424_v22, %s2133_s20  ;;  %560 = vrot.lane.b32.xlu0 %v2424_v22, %s2134_s6 }
 0x26e   : > { %508 = vrot.lane.b32.xlu2 %v2421_v21, %s2133_s20  ;;  %s2148_s20 = smov 17  }
 0x275   : > { %558 = vrot.lane.b32.xlu1 %v2421_v21, %s2134_s6  ;;  %608 = vrot.lane.b32.xlu0 %v2421_v21, %s2135_s7  ;;  %s2149_s6 = smov 15  }
 0x276   : > { %535 = vrot.lane.b32.xlu2 %v2424_v22, %s2132_s14  ;;  %s2147_s14 = smov 16  }
 0x27d   : > { %585 = vrot.lane.b32.xlu1 %v2424_v22, %s2136_s21  ;;  %635 = vrot.lane.b32.xlu0 %v2424_v22, %s2137_s26 }
 0x27e   : > { %583 = vrot.lane.b32.xlu2 %v2421_v21, %s2136_s21  ;;  %s2151_s21 = smov 14  }
 0x285   : > { %633 = vrot.lane.b32.xlu1 %v2421_v21, %s2137_s26  ;;  %683 = vrot.lane.b32.xlu0 %v2421_v21, %s2138_s30  ;;  %s2152_s26 = smov 3  }
 0x286   : > { %610 = vrot.lane.b32.xlu2 %v2424_v22, %s2135_s7  ;;  %s2150_s7 = smov 13  }
 0x28d   : > { %660 = vrot.lane.b32.xlu1 %v2424_v22, %s2139_s5  ;;  %710 = vrot.lane.b32.xlu0 %v2424_v22, %s2140_s23 }
 0x28e   : > { %658 = vrot.lane.b32.xlu2 %v2421_v21, %s2139_s5  ;;  %s2154_s5 = smov 2  }
 0x295   : > { %708 = vrot.lane.b32.xlu1 %v2421_v21, %s2140_s23  ;;  %758 = vrot.lane.b32.xlu0 %v2421_v21, %s2141_s25  ;;  %s2155_s23 = smov 127  }
 0x296   : > { %685 = vrot.lane.b32.xlu2 %v2424_v22, %s2138_s30  ;;  %s2153_s30 = smov 1  }
 0x29d   : > { %735 = vrot.lane.b32.xlu1 %v2424_v22, %s2142_s27  ;;  %785 = vrot.lane.b32.xlu0 %v2424_v22, %s2143_s28 }
 0x29e   : > { %733 = vrot.lane.b32.xlu2 %v2421_v21, %s2142_s27  ;;  %s2157_s27 = smov 126  }
 0x2a5   : > { %783 = vrot.lane.b32.xlu1 %v2421_v21, %s2143_s28  ;;  %833 = vrot.lane.b32.xlu0 %v2421_v21, %s2144_s11  ;;  %s2158_s28 = smov 115  }
 0x2a6   : > { %760 = vrot.lane.b32.xlu2 %v2424_v22, %s2141_s25  ;;  %s2156_s25 = smov 125  }
 0x2ad   : > { %810 = vrot.lane.b32.xlu1 %v2424_v22, %s2145_s13  ;;  %860 = vrot.lane.b32.xlu0 %v2424_v22, %s2146_s12 }
 0x2ae   : > { %808 = vrot.lane.b32.xlu2 %v2421_v21, %s2145_s13  ;;  %s2160_s13 = smov 114  }
 0x2b5   : > { %858 = vrot.lane.b32.xlu1 %v2421_v21, %s2146_s12  ;;  %908 = vrot.lane.b32.xlu0 %v2421_v21, %s2147_s14  ;;  %s2161_s12 = smov 112  }
 0x2b6   : > { %835 = vrot.lane.b32.xlu2 %v2424_v22, %s2144_s11  ;;  %s2159_s11 = smov 113  }
 0x2bd   : > { %885 = vrot.lane.b32.xlu1 %v2424_v22, %s2148_s20  ;;  %935 = vrot.lane.b32.xlu0 %v2424_v22, %s2149_s6 }
 0x2be   : > { %883 = vrot.lane.b32.xlu2 %v2421_v21, %s2148_s20  ;;  %s2162_s20 = smov 110  }
 0x2c0   : > { %v485_v23 = vpop.permute.xlu2 %484 }
 0x2c5   : > { %933 = vrot.lane.b32.xlu1 %v2421_v21, %s2149_s6  ;;  %983 = vrot.lane.b32.xlu0 %v2421_v21, %s2150_s7  ;;  %s2163_s6 = smov 111  }
 0x2c6   : > { %910 = vrot.lane.b32.xlu2 %v2424_v22, %s2147_s14 }
 0x2c8   : > { %v509_v24 = vpop.permute.xlu2 %508 }
 0x2cd   : > { %960 = vrot.lane.b32.xlu1 %v2424_v22, %s2151_s21  ;;  %1010 = vrot.lane.b32.xlu0 %v2424_v22, %s2152_s26 }
 0x2ce   : > { %958 = vrot.lane.b32.xlu2 %v2421_v21, %s2151_s21  ;;  %s2165_s21 = smov 98  }
 0x2d0   : > { %v536_v25 = vpop.permute.xlu2 %535 }
 0x2d5   : > { %1008 = vrot.lane.b32.xlu1 %v2421_v21, %s2152_s26  ;;  %1058 = vrot.lane.b32.xlu0 %v2421_v21, %s2153_s30  ;;  %s2166_s26 = smov 99  }
 0x2d6   : > { %985 = vrot.lane.b32.xlu2 %v2424_v22, %s2150_s7  ;;  %s2164_s7 = smov 109  }
 0x2d7   : > { %v487_v26 = vpop.permute.xlu1 %486  ;;  %v534_v27 = vpop.permute.xlu0 %533 }
 0x2d8   : > { %v489_v28 = vsel %vm488_vm12, %v485_v23, %v487_v26  ;;  %v490_v29 = vsel %vm488_vm12, %v487_v26, %v485_v23  ;;  %v538_v30 = vsel %vm537_vm13, %v534_v27, %v536_v25  ;;  %v2476_v34 = vpop.permute.xlu2 %583  ;;  %v539_v0 = vsel %vm537_vm13, %v536_v25, %v534_v27  ;;  %v566_v26 = vld [vmem:[#allocation5 + $0x3] ss:$8 sm:$0x3] }
 0x2d9   : > { %v496_v35 = vrot.slane %v489_v28, 7  ;;  %501 = vst [vmem:[#allocation1] sm:$0xff] %v490_v29  ;;  %v546_v40 = vrot.slane %v538_v30, 7  ;;  %vm862_vm12 = vcmp.lt.s32.totalorder %v2366_v31, 18  ;;  %vm887_vm13 = vcmp.lt.s32.totalorder %v2366_v31, 17 }
 0x2da   : > { %502 = vst [vmem:[#allocation1 + $0x9] sm:$0xff] %v489_v28 }
 0x2db   : > { %v497_v1 = vsel %vm310_vm6, %v490_v29, %v496_v35  ;;  %v547_v5 = vsel %vm310_vm6, %v539_v0, %v546_v40 }
 0x2dc   : > { %v499_v48 = vmul.f32 %v497_v1, %v491_v6  ;;  %v549_v13 = vmul.f32 %v547_v5, %v541_v62 }
 0x2dd   : > { %1035 = vrot.lane.b32.xlu1 %v2424_v22, %s2154_s5  ;;  %1103 = vrot.lane.b32.xlu0 %v2424_v22, %s2155_s23 }
 0x2de   : > { %1033 = vrot.lane.b32.xlu2 %v2421_v21, %s2154_s5  ;;  %s2168_s5 = smov 95  }
 0x2df   : > { %v511_v10 = vpop.permute.xlu1 %510  ;;  %v561_v41 = vpop.permute.xlu0 %560 }
 0x2e0   : > { %v513_v42 = vsel %vm512_vm14, %v509_v24, %v511_v10  ;;  %v514_v43 = vsel %vm512_vm14, %v511_v10, %v509_v24  ;;  %v611_v44 = vpop.permute.xlu2 %610  ;;  %v568_v10 = vld [vmem:[#allocation5 + $0x64] ss:$8 sm:$0x3]  ;;  %vm912_vm14 = vcmp.lt.s32.totalorder %v2366_v31, 16 }
 0x2e1   : > { %v504_v45 = vld [vmem:[#allocation1 + $0x1] ss:$9 sm:$0xff]  ;;  %v521_v47 = vrot.slane %v513_v42, 7 }
 0x2e2   : > { %v506_v49 = vmul.f32 %v504_v45, %v493_v9  ;;  %526 = vst [vmem:[#allocation1] sm:$0xff] %v514_v43 }
 0x2e3   : > { %v522_v50 = vsel %vm310_vm6, %v514_v43, %v521_v47  ;;  %527 = vst [vmem:[#allocation1 + $0x9] sm:$0xff] %v513_v42 }
 0x2e4   : > { %v507_v51 = vadd.f32 %v506_v49, %v499_v48  ;;  %v524_v52 = vmul.f32 %v522_v50, %v516_v46  ;;  %v591_v46 = vld [vmem:[#allocation5 + $0x4] ss:$8 sm:$0x3] }
 0x2e5   : > { %1101 = vrot.lane.b32.xlu1 %v2421_v21, %s2155_s23  ;;  %1151 = vrot.lane.b32.xlu0 %v2421_v21, %s2156_s25  ;;  %s2169_s23 = smov 96  }
 0x2e6   : > { %v525_v53 = vadd.f32 %v524_v52, %v507_v51  ;;  %1060 = vrot.lane.b32.xlu2 %v2424_v22, %s2153_s30  ;;  %s2167_s30 = smov 97  }
 0x2e7   : > { %v559_v54 = vpop.permute.xlu1 %558  ;;  %v609_v55 = vpop.permute.xlu0 %608 }
 0x2e8   : > { %v563_v57 = vsel %vm562_vm15, %v559_v54, %v561_v41  ;;  %v2492_v58 = vsel %vm612_vm0, %v609_v55, %v611_v44  ;;  %v2494_v59 = vpop.permute.xlu2 %658  ;;  %v564_v3 = vsel %vm562_vm15, %v561_v41, %v559_v54  ;;  %v2497_v7 = vsel %vm612_vm0, %v611_v44, %v609_v55 }
 0x2e9   : > { %v571_v60 = vrot.slane %v563_v57, 7  ;;  %v621_v61 = vrot.slane %v2492_v58, 7  ;;  %vm937_vm15 = vcmp.lt.s32.totalorder %v2366_v31, 15  ;;  %vm962_vm0 = vcmp.lt.s32.totalorder %v2366_v31, 14 }
 0x2ea   : > { %v529_v63 = vld [vmem:[#allocation1 + $0x1] ss:$9 sm:$0xff] }
 0x2eb   : > { %v531_v8 = vmul.f32 %v529_v63, %v518_v56  ;;  %551 = vst [vmem:[#allocation1] sm:$0xff] %v539_v0  ;;  %v572_v11 = vsel %vm310_vm6, %v564_v3, %v571_v60  ;;  %v2502_v12 = vsel %vm310_vm6, %v2497_v7, %v621_v61  ;;  %v616_v61 = vld [vmem:[#allocation5 + $0x5] ss:$8 sm:$0x3] }
 0x2ec   : > { %552 = vst [vmem:[#allocation1 + $0x9] sm:$0xff] %v538_v30  ;;  %v574_v30 = vmul.f32 %v572_v11, %v566_v26 }
 0x2ed   : > { %v532_v14 = vadd.f32 %v531_v8, %v525_v53  ;;  %1128 = vrot.lane.b32.xlu1 %v2424_v22, %s2157_s27  ;;  %1178 = vrot.lane.b32.xlu0 %v2424_v22, %s2158_s28  ;;  %v624_v8 = vmul.f32 %v2502_v12, %v616_v61  ;;  %v691_v61 = vld [vmem:[#allocation5 + $0x10] ss:$8 sm:$0x3] }
 0x2ee   : > { %1126 = vrot.lane.b32.xlu2 %v2421_v21, %s2157_s27  ;;  %s2171_s27 = smov 83  }
 0x2ef   : > { %v550_v15 = vadd.f32 %v549_v13, %v532_v14  ;;  %v586_v16 = vpop.permute.xlu1 %585  ;;  %v636_v17 = vpop.permute.xlu0 %635 }
 0x2f0   : > { %v588_v18 = vsel %vm587_vm1, %v2476_v34, %v586_v16  ;;  %v686_v19 = vpop.permute.xlu2 %685  ;;  %v589_v24 = vsel %vm587_vm1, %v586_v16, %v2476_v34  ;;  %vm987_vm1 = vcmp.lt.s32.totalorder %v2366_v31, 13 }
 0x2f1   : > { %v596_v23 = vrot.slane %v588_v18, 7 }
 0x2f3   : > { %v554_v25 = vld [vmem:[#allocation1 + $0x1] ss:$9 sm:$0xff]  ;;  %v597_v27 = vsel %vm310_vm6, %v589_v24, %v596_v23 }
 0x2f4   : > { %v556_v28 = vmul.f32 %v554_v25, %v543_v20  ;;  %576 = vst [vmem:[#allocation1] sm:$0xff] %v564_v3  ;;  %v599_v49 = vmul.f32 %v597_v27, %v591_v46 }
 0x2f5   : > { %577 = vst [vmem:[#allocation1 + $0x9] sm:$0xff] %v563_v57  ;;  %1176 = vrot.lane.b32.xlu1 %v2421_v21, %s2158_s28  ;;  %1226 = vrot.lane.b32.xlu0 %v2421_v21, %s2159_s11  ;;  %v593_v57 = vld [vmem:[#allocation5 + $0x65] ss:$8 sm:$0x3]  ;;  %s2172_s28 = smov 93  }
 0x2f6   : > { %v557_v29 = vadd.f32 %v556_v28, %v550_v15  ;;  %1153 = vrot.lane.b32.xlu2 %v2424_v22, %s2156_s25  ;;  %s2170_s25 = smov 94  }
 0x2f7   : > { %v634_v34 = vpop.permute.xlu1 %633  ;;  %v684_v35 = vpop.permute.xlu0 %683 }
 0x2f8   : > { %v575_v40 = vadd.f32 %v574_v30, %v557_v29  ;;  %v2518_v0 = vsel %vm637_vm2, %v634_v34, %v636_v17  ;;  %v2520_v1 = vsel %vm687_vm3, %v684_v35, %v686_v19  ;;  %v2522_v5 = vpop.permute.xlu2 %733  ;;  %v639_v41 = vsel %vm637_vm2, %v636_v17, %v634_v34 }
 0x2f9   : > { %v646_v6 = vrot.slane %v2518_v0, 7  ;;  %v696_v9 = vrot.slane %v2520_v1, 7  ;;  %v2526_v42 = vsel %vm687_vm3, %v686_v19, %v684_v35  ;;  %v618_v19 = vld [vmem:[#allocation5 + $0x66] ss:$8 sm:$0x3]  ;;  %vm1012_vm2 = vcmp.lt.s32.totalorder %v2366_v31, 3 }
 0x2fa   : > { %vm1037_vm3 = vcmp.lt.s32.totalorder %v2366_v31, 2 }
 0x2fb   : > { %v2529_v43 = vsel %vm310_vm6, %v639_v41, %v646_v6  ;;  %v2533_v44 = vsel %vm310_vm6, %v2526_v42, %v696_v9  ;;  %v643_v9 = vld [vmem:[#allocation5 + $0x67] ss:$8 sm:$0x3] }
 0x2fc   : > { %v579_v45 = vld [vmem:[#allocation1 + $0x1] ss:$9 sm:$0xff] }
 0x2fd   : > { %v581_v47 = vmul.f32 %v579_v45, %v568_v10  ;;  %601 = vst [vmem:[#allocation1] sm:$0xff] %v589_v24  ;;  %1203 = vrot.lane.b32.xlu1 %v2424_v22, %s2160_s13  ;;  %1253 = vrot.lane.b32.xlu0 %v2424_v22, %s2161_s12  ;;  %v641_v24 = vld [vmem:[#allocation5 + $0x6] ss:$8 sm:$0x3] }
 0x2fe   : > { %602 = vst [vmem:[#allocation1 + $0x9] sm:$0xff] %v588_v18  ;;  %1201 = vrot.lane.b32.xlu2 %v2421_v21, %s2160_s13  ;;  %v649_v30 = vmul.f32 %v2529_v43, %v641_v24  ;;  %v666_v10 = vld [vmem:[#allocation5 + $0x7] ss:$8 sm:$0x3]  ;;  %s2174_s13 = smov 80  }
 0x2ff   : > { %v582_v48 = vadd.f32 %v581_v47, %v575_v40  ;;  %v661_v50 = vpop.permute.xlu1 %660  ;;  %v711_v51 = vpop.permute.xlu0 %710 }
 0x300   : > { %v2540_v52 = vsel %vm662_vm4, %v2494_v59, %v661_v50  ;;  %v2544_v55 = vsel %vm662_vm4, %v661_v50, %v2494_v59  ;;  %v761_v56 = vpop.permute.xlu2 %760  ;;  %vm1062_vm4 = vcmp.lt.s32.totalorder %v2366_v31, 1 }
 0x301   : > { %v600_v53 = vadd.f32 %v599_v49, %v582_v48  ;;  %v671_v54 = vrot.slane %v2540_v52, 7 }
 0x303   : > { %v2548_v60 = vsel %vm310_vm6, %v2544_v55, %v671_v54 }
 0x305   : > { %v604_v62 = vld [vmem:[#allocation1 + $0x1] ss:$9 sm:$0xff]  ;;  %1251 = vrot.lane.b32.xlu1 %v2421_v21, %s2161_s12  ;;  %1301 = vrot.lane.b32.xlu0 %v2421_v21, %s2162_s20  ;;  %s2175_s12 = smov 81  }
 0x306   : > { %v606_v59 = vmul.f32 %v604_v62, %v593_v57  ;;  %626 = vst [vmem:[#allocation1] sm:$0xff] %v2497_v7  ;;  %1228 = vrot.lane.b32.xlu2 %v2424_v22, %s2159_s11  ;;  %v668_v57 = vld [vmem:[#allocation5 + $0x70] ss:$8 sm:$0x3]  ;;  %s2173_s11 = smov 82  }
 0x307   : > { %627 = vst [vmem:[#allocation1 + $0x9] sm:$0xff] %v2492_v58  ;;  %v709_v63 = vpop.permute.xlu1 %708  ;;  %v759_v3 = vpop.permute.xlu0 %758 }
 0x308   : > { %v607_v11 = vadd.f32 %v606_v59, %v600_v53  ;;  %v2560_v13 = vsel %vm712_vm5, %v709_v63, %v711_v51  ;;  %v2562_v14 = vsel %vm762_vm7, %v759_v3, %v761_v56  ;;  %v2566_v7 = vsel %vm712_vm5, %v711_v51, %v709_v63  ;;  %v2578_v20 = vpop.permute.xlu2 %808 }
 0x309   : > { %v721_v15 = vrot.slane %v2560_v13, 7  ;;  %v771_v16 = vrot.slane %v2562_v14, 7  ;;  %v2568_v18 = vsel %vm762_vm7, %v761_v56, %v759_v3  ;;  %v674_v51 = vmul.f32 %v2548_v60, %v666_v10 }
 0x30a   : > { %v625_v17 = vadd.f32 %v624_v8, %v607_v11  ;;  %v699_v11 = vmul.f32 %v2533_v44, %v691_v61  ;;  %vm1105_vm5 = vcmp.lt.s32.totalorder %v2366_v31, 127  ;;  %vm1130_vm7 = vcmp.lt.s32.totalorder %v2366_v31, 126 }
 0x30b   : > { %v2572_v58 = vsel %vm310_vm6, %v2566_v7, %v721_v15  ;;  %v2576_v12 = vsel %vm310_vm6, %v2568_v18, %v771_v16 }
 0x30d   : > { %1278 = vrot.lane.b32.xlu1 %v2424_v22, %s2163_s6  ;;  %1328 = vrot.lane.b32.xlu0 %v2424_v22, %s2164_s7 }
 0x30e   : > { %v629_v23 = vld [vmem:[#allocation1 + $0x1] ss:$9 sm:$0xff]  ;;  %1276 = vrot.lane.b32.xlu2 %v2421_v21, %s2163_s6  ;;  %s2177_s6 = smov 77  }
 0x30f   : > { %v631_v25 = vmul.f32 %v629_v23, %v618_v19  ;;  %651 = vst [vmem:[#allocation1] sm:$0xff] %v639_v41  ;;  %v736_v26 = vpop.permute.xlu1 %735  ;;  %v786_v27 = vpop.permute.xlu0 %785  ;;  %v716_v23 = vld [vmem:[#allocation5 + $0x11] ss:$8 sm:$0x3] }
 0x310   : > { %652 = vst [vmem:[#allocation1 + $0x9] sm:$0xff] %v2518_v0  ;;  %v2586_v28 = vsel %vm737_vm8, %v2522_v5, %v736_v26  ;;  %v2591_v35 = vsel %vm737_vm8, %v736_v26, %v2522_v5  ;;  %v836_v0 = vpop.permute.xlu2 %835  ;;  %vm1155_vm8 = vcmp.lt.s32.totalorder %v2366_v31, 125 }
 0x311   : > { %v632_v29 = vadd.f32 %v631_v25, %v625_v17  ;;  %v746_v34 = vrot.slane %v2586_v28, 7 }
 0x313   : > { %v650_v40 = vadd.f32 %v649_v30, %v632_v29  ;;  %v2595_v6 = vsel %vm310_vm6, %v2591_v35, %v746_v34  ;;  %v724_v30 = vmul.f32 %v2572_v58, %v716_v23  ;;  %v741_v58 = vld [vmem:[#allocation5 + $0x12] ss:$8 sm:$0x3]  ;;  %v843_v23 = vld [vmem:[#allocation5 + $0x77] ss:$8 sm:$0x3] }
 0x315   : > { %1326 = vrot.lane.b32.xlu1 %v2421_v21, %s2164_s7  ;;  %1376 = vrot.lane.b32.xlu0 %v2421_v21, %s2165_s21  ;;  %s2178_s7 = smov 78  }
 0x316   : > { %1303 = vrot.lane.b32.xlu2 %v2424_v22, %s2162_s20  ;;  %s2176_s20 = smov 79  }
 0x317   : > { %v654_v5 = vld [vmem:[#allocation1 + $0x1] ss:$9 sm:$0xff]  ;;  %v784_v41 = vpop.permute.xlu1 %783  ;;  %v834_v43 = vpop.permute.xlu0 %833 }
 0x318   : > { %v656_v45 = vmul.f32 %v654_v5, %v643_v9  ;;  %676 = vst [vmem:[#allocation1] sm:$0xff] %v2544_v55  ;;  %v2607_v46 = vsel %vm787_vm9, %v784_v41, %v786_v27  ;;  %v2611_v47 = vsel %vm837_vm10, %v834_v43, %v836_v0  ;;  %v2619_v53 = vsel %vm787_vm9, %v786_v27, %v784_v41  ;;  %v884_v34 = vpop.permute.xlu2 %883 }
 0x319   : > { %677 = vst [vmem:[#allocation1 + $0x9] sm:$0xff] %v2540_v52  ;;  %v796_v48 = vrot.slane %v2607_v46, 7  ;;  %v846_v49 = vrot.slane %v2611_v47, 7  ;;  %v2623_v54 = vsel %vm837_vm10, %v836_v0, %v834_v43  ;;  %vm1180_vm9 = vcmp.lt.s32.totalorder %v2366_v31, 115 }
 0x31a   : > { %v657_v50 = vadd.f32 %v656_v45, %v650_v40  ;;  %v718_v40 = vld [vmem:[#allocation5 + $0x72] ss:$8 sm:$0x3]  ;;  %vm1205_vm10 = vcmp.lt.s32.totalorder %v2366_v31, 114 }
 0x31b   : > { %v2627_v55 = vsel %vm310_vm6, %v2619_v53, %v796_v48  ;;  %v2631_v52 = vsel %vm310_vm6, %v2623_v54, %v846_v49  ;;  %v749_v48 = vmul.f32 %v2595_v6, %v741_v58  ;;  %v893_v58 = vld [vmem:[#allocation5 + $0x81] ss:$8 sm:$0x3] }
 0x31c   : > { %v675_v56 = vadd.f32 %v674_v51, %v657_v50  ;;  %v743_v50 = vld [vmem:[#allocation5 + $0x73] ss:$8 sm:$0x3] }
 0x31d   : > { %1353 = vrot.lane.b32.xlu1 %v2424_v22, %s2166_s26  ;;  %1403 = vrot.lane.b32.xlu0 %v2424_v22, %s2167_s30 }
 0x31e   : > { %1351 = vrot.lane.b32.xlu2 %v2421_v21, %s2166_s26 }
 0x31f   : > { %v811_v60 = vpop.permute.xlu1 %810 }
 0x320   : > { %v679_v62 = vld [vmem:[#allocation1 + $0x1] ss:$9 sm:$0xff]  ;;  %v2638_v59 = vsel %vm812_vm11, %v2578_v20, %v811_v60  ;;  %v2644_v8 = vsel %vm812_vm11, %v811_v60, %v2578_v20  ;;  %vm1230_vm11 = vcmp.lt.s32.totalorder %v2366_v31, 113 }
 0x321   : > { %v681_v63 = vmul.f32 %v679_v62, %v668_v57  ;;  %701 = vst [vmem:[#allocation1] sm:$0xff] %v2526_v42  ;;  %v821_v3 = vrot.slane %v2638_v59, 7  ;;  %v861_v42 = vpop.permute.xlu0 %860  ;;  %v768_v60 = vld [vmem:[#allocation5 + $0x74] ss:$8 sm:$0x3] }
 0x322   : > { %702 = vst [vmem:[#allocation1 + $0x9] sm:$0xff] %v2520_v1  ;;  %v693_v1 = vld [vmem:[#allocation5 + $0x71] ss:$8 sm:$0x3] }
 0x323   : > { %v682_v15 = vadd.f32 %v681_v63, %v675_v56  ;;  %v2649_v16 = vsel %vm310_vm6, %v2644_v8, %v821_v3  ;;  %v791_v62 = vld [vmem:[#allocation5 + $0x14] ss:$8 sm:$0x3]  ;;  %v793_v3 = vld [vmem:[#allocation5 + $0x75] ss:$8 sm:$0x3] }
 0x325   : > { %v700_v17 = vadd.f32 %v699_v11, %v682_v15  ;;  %1401 = vrot.lane.b32.xlu1 %v2421_v21, %s2167_s30  ;;  %1451 = vrot.lane.b32.xlu0 %v2421_v21, %s2168_s5  ;;  %v816_v15 = vld [vmem:[#allocation5 + $0x15] ss:$8 sm:$0x3] }
 0x326   : > { %1378 = vrot.lane.b32.xlu2 %v2424_v22, %s2165_s21  ;;  %s1866_s21 = sshll.u32 %s2226_s19, 6 }
 0x327   : > { %v859_v44 = vpop.permute.xlu1 %858 }
 0x328   : > { %v2657_v19 = vsel %vm862_vm12, %v859_v44, %v861_v42  ;;  %v2661_v26 = vsel %vm862_vm12, %v861_v42, %v859_v44  ;;  %v841_v42 = vld [vmem:[#allocation5 + $0x16] ss:$8 sm:$0x3]  ;;  %vm1255_vm12 = vcmp.lt.s32.totalorder %v2366_v31, 112 }
 0x329   : > { %v704_v20 = vld [vmem:[#allocation1 + $0x1] ss:$9 sm:$0xff]  ;;  %v871_v24 = vrot.slane %v2657_v19, 7 }
 0x32a   : > { %v706_v25 = vmul.f32 %v704_v20, %v693_v1  ;;  %726 = vst [vmem:[#allocation1] sm:$0xff] %v2566_v7  ;;  %v818_v1 = vld [vmem:[#allocation5 + $0x76] ss:$8 sm:$0x3] }
 0x32b   : > { %727 = vst [vmem:[#allocation1 + $0x9] sm:$0xff] %v2560_v13  ;;  %v2666_v27 = vsel %vm310_vm6, %v2661_v26, %v871_v24 }
 0x32c   : > { %v707_v29 = vadd.f32 %v706_v25, %v700_v17  ;;  %v866_v25 = vld [vmem:[#allocation5 + $0x17] ss:$8 sm:$0x3] }
 0x32d   : > { %1428 = vrot.lane.b32.xlu1 %v2424_v22, %s2169_s23  ;;  %1478 = vrot.lane.b32.xlu0 %v2424_v22, %s2170_s25 }
 0x32e   : > { %v725_v7 = vadd.f32 %v724_v30, %v707_v29  ;;  %1426 = vrot.lane.b32.xlu2 %v2421_v21, %s2169_s23  ;;  %s234_s23 = scalar_lea.vmem [#allocation7], %s1848_s24  ;;  %s1742_s24 = scalar_lea.sflag [#allocation4], %s2304_s10 }
 0x32f   : > { %v886_v13 = vpop.permute.xlu1 %885  ;;  %s1754_s19 = sshll.u32 %s234_s23, 4  ;;  %s1755_s19 = int_to_ptr.vmem [resolvable:$true] %s1754_s19 }
 0x330   : > { %v2673_v9 = vsel %vm887_vm13, %v884_v34, %v886_v13  ;;  %v2676_v10 = vsel %vm887_vm13, %v886_v13, %v884_v34  ;;  %v909_v34 = vpop.permute.xlu0 %908  ;;  %v891_v13 = vld [vmem:[#allocation5 + $0x20] ss:$8 sm:$0x3]  ;;  %vm1280_vm13 = vcmp.lt.s32.totalorder %v2366_v31, 111 }
 0x331   : > { %v896_v0 = vrot.slane %v2673_v9, 7 }
 0x332   : > { %v729_v5 = vld [vmem:[#allocation1 + $0x1] ss:$9 sm:$0xff] }
 0x333   : > { %v731_v41 = vmul.f32 %v729_v5, %v718_v40  ;;  %751 = vst [vmem:[#allocation1] sm:$0xff] %v2591_v35  ;;  %v2681_v43 = vsel %vm310_vm6, %v2676_v10, %v896_v0  ;;  %v766_v35 = vld [vmem:[#allocation5 + $0x13] ss:$8 sm:$0x3]  ;;  %v911_v5 = vpop.permute.xlu2 %910 }
 0x334   : > { %752 = vst [vmem:[#allocation1 + $0x9] sm:$0xff] %v2586_v28  ;;  %v774_v28 = vmul.f32 %v2576_v12, %v766_v35 }
 0x335   : > { %v732_v45 = vadd.f32 %v731_v41, %v725_v7  ;;  %1476 = vrot.lane.b32.xlu1 %v2421_v21, %s2170_s25  ;;  %1526 = vrot.lane.b32.xlu0 %v2421_v21, %s2171_s27 }
 0x336   : > { %1453 = vrot.lane.b32.xlu2 %v2424_v22, %s2168_s5  ;;  %s1753_s5 = scalar_lea.hbm %s3075_s4, %s1866_s21 }
 0x337   : > { %v750_v49 = vadd.f32 %v749_v48, %v732_v45  ;;  %v934_v41 = vpop.permute.xlu1 %933  ;;  %v914_v45 = vsel %vm912_vm14, %v911_v5, %v909_v34  ;;  %s1756_s25 = sshll.u32 %s1753_s5, 4  ;;  %s1757_s25 = int_to_ptr.hbm [resolvable:$true] %s1756_s25 }
 0x33b   : > { %v754_v51 = vld [vmem:[#allocation1 + $0x1] ss:$9 sm:$0xff] }
 0x33c   : > { %v756_v56 = vmul.f32 %v754_v51, %v743_v50  ;;  %776 = vst [vmem:[#allocation1] sm:$0xff] %v2568_v18  ;;  %v799_v18 = vmul.f32 %v2627_v55, %v791_v62  ;;  %v824_v55 = vmul.f32 %v2649_v16, %v816_v15  ;;  %v936_v50 = vpop.permute.xlu0 %935  ;;  %v959_v15 = vpop.permute.xlu2 %958 }
 0x33d   : > { %777 = vst [vmem:[#allocation1 + $0x9] sm:$0xff] %v2562_v14  ;;  %1503 = vrot.lane.b32.xlu1 %v2424_v22, %s2172_s28  ;;  %1553 = vrot.lane.b32.xlu0 %v2424_v22, %s2173_s11 }
 0x33e   : > { %v757_v6 = vadd.f32 %v756_v56, %v750_v49  ;;  %1501 = vrot.lane.b32.xlu2 %v2421_v21, %s2172_s28 }
 0x340   : > { %v775_v57 = vadd.f32 %v774_v28, %v757_v6  ;;  %v918_v28 = vld [vmem:[#allocation5 + $0x82] ss:$8 sm:$0x3] }
 0x344   : > { %v779_v61 = vld [vmem:[#allocation1 + $0x1] ss:$9 sm:$0xff] }
 0x345   : > { %v781_v63 = vmul.f32 %v779_v61, %v768_v60  ;;  %801 = vst [vmem:[#allocation1] sm:$0xff] %v2619_v53  ;;  %1551 = vrot.lane.b32.xlu1 %v2421_v21, %s2173_s11  ;;  %1601 = vrot.lane.b32.xlu0 %v2421_v21, %s2174_s13  ;;  %v941_v61 = vld [vmem:[#allocation5 + $0x22] ss:$8 sm:$0x3] }
 0x346   : > { %802 = vst [vmem:[#allocation1 + $0x9] sm:$0xff] %v2607_v46  ;;  %1528 = vrot.lane.b32.xlu2 %v2424_v22, %s2171_s27  ;;  %s2068_s27 = sshra.s32 %s1757_s25, 4  ;;  %s2069_s27 = int_to_ptr.hbm [resolvable:$true] %s2068_s27 }
 0x347   : > { %v782_v14 = vadd.f32 %v781_v63, %v775_v57  ;;  %v939_v57 = vsel %vm937_vm15, %v936_v50, %v934_v41  ;;  %s2070_s28 = scalar_lea.hbm %s2069_s27, 64  ;;  %p2075_p11 = scmp.lt.s32.totalorder %s2069_s27, %s3075_s4 }
 0x348   : > { %p2071_p1 = scmp.ne.s32.totalorder %s2069_s27, %s2070_s28 }
 0x349   : > { %v800_v12 = vadd.f32 %v799_v18, %v782_v14 }
 0x34a   : > { %p2072_p4 = pnand %p2071_p1, %p2274_p3 }
 0x34c   : > { %p2073_p8 = pneg %p2072_p4 }
 0x34d   : > { %v804_v11 = vld [vmem:[#allocation1 + $0x1] ss:$9 sm:$0xff]  ;;  %1578 = vrot.lane.b32.xlu1 %v2424_v22, %s2175_s12  ;;  %1628 = vrot.lane.b32.xlu0 %v2424_v22, %s2176_s20 }
 0x34e   : > { %v806_v53 = vmul.f32 %v804_v11, %v793_v3  ;;  %826 = vst [vmem:[#allocation1] sm:$0xff] %v2644_v8  ;;  %1576 = vrot.lane.b32.xlu2 %v2421_v21, %s2175_s12  ;;  %v961_v11 = vpop.permute.xlu1 %960  ;;  %s2074_s12 = scalar_lea.hbm %s3075_s4, 128 }
 0x34f   : > { %827 = vst [vmem:[#allocation1 + $0x9] sm:$0xff] %v2638_v59  ;;  %v849_v59 = vmul.f32 %v2631_v52, %v841_v42  ;;  %v868_v52 = vld [vmem:[#allocation5 + $0x80] ss:$8 sm:$0x3]  ;;  %p2076_p9 = scmp.lt.s32.totalorder %s2074_s12, %s2070_s28 }
 0x350   : > { %v807_v46 = vadd.f32 %v806_v53, %v800_v12 }
 0x351   : > { %p2077_p2 = por %p2076_p9, %p2075_p11 }
 0x352   : > { %v825_v17 = vadd.f32 %v824_v55, %v807_v46  ;;  %v2735_v46 = vsel %vm962_vm0, %v961_v11, %v959_v15  ;;  %v2737_v55 = vsel %vm962_vm0, %v959_v15, %v961_v11  ;;  %v966_v15 = vld [vmem:[#allocation5 + $0x23] ss:$8 sm:$0x3]  ;;  %vm1355_vm0 = vcmp.lt.s32.totalorder %v2366_v31, 99 }
 0x353   : > { %p2078_p10 = pnand %p2077_p2, %p2073_p8 }
 0x355   : > { %1626 = vrot.lane.b32.xlu1 %v2421_v21, %s2176_s20  ;;  %1676 = vrot.lane.b32.xlu0 %v2421_v21, %s2177_s6 }
 0x356   : > { %v829_v44 = vld [vmem:[#allocation1 + $0x1] ss:$9 sm:$0xff]  ;;  %1603 = vrot.lane.b32.xlu2 %v2424_v22, %s2174_s13 }
 0x357   : > { %v831_v20 = vmul.f32 %v829_v44, %v818_v1  ;;  %851 = vst [vmem:[#allocation1] sm:$0xff] %v2623_v54  ;;  %v986_v1 = vpop.permute.xlu2 %985 }
 0x358   : > { %852 = vst [vmem:[#allocation1 + $0x9] sm:$0xff] %v2611_v47  ;;  %v874_v47 = vmul.f32 %v2666_v27, %v866_v25  ;;  %v913_v27 = vsel %vm912_vm14, %v909_v34, %v911_v5  ;;  %vm1305_vm14 = vcmp.lt.s32.totalorder %v2366_v31, 110 }
 0x359   : > { %v832_v8 = vadd.f32 %v831_v20, %v825_v17  ;;  %v921_v49 = vrot.slane %v913_v27, 7  ;;  %v984_v17 = vpop.permute.xlu0 %983 }
 0x35a   : > { %v2742_v42 = vsel %vm987_vm1, %v986_v1, %v984_v17  ;;  %v2746_v20 = vsel %vm987_vm1, %v984_v17, %v986_v1  ;;  %v968_v1 = vld [vmem:[#allocation5 + $0x84] ss:$8 sm:$0x3]  ;;  %vm1380_vm1 = vcmp.lt.s32.totalorder %v2366_v31, 98 }
 0x35b   : > { %v850_v16 = vadd.f32 %v849_v59, %v832_v8  ;;  %v922_v35 = vsel %vm310_vm6, %v914_v45, %v921_v49  ;;  %v1009_v59 = vpop.permute.xlu1 %1008 }
 0x35d   : > { %1653 = vrot.lane.b32.xlu1 %v2424_v22, %s2178_s7 }
 0x35e   : > { %1651 = vrot.lane.b32.xlu2 %v2421_v21, %s2178_s7 }
 0x35f   : > { %v854_v24 = vld [vmem:[#allocation1 + $0x1] ss:$9 sm:$0xff] }
 0x360   : > { %v856_v29 = vmul.f32 %v854_v24, %v843_v23  ;;  %876 = vst [vmem:[#allocation1] sm:$0xff] %v2661_v26  ;;  %v899_v26 = vmul.f32 %v2681_v43, %v891_v13  ;;  %v916_v43 = vld [vmem:[#allocation5 + $0x21] ss:$8 sm:$0x3] }
 0x361   : > { %877 = vst [vmem:[#allocation1 + $0x9] sm:$0xff] %v2657_v19  ;;  %v924_v6 = vmul.f32 %v922_v35, %v916_v43  ;;  %v1011_v8 = vpop.permute.xlu0 %1010 }
 0x362   : > { %v857_v54 = vadd.f32 %v856_v29, %v850_v16  ;;  %v2753_v23 = vsel %vm1012_vm2, %v1011_v8, %v1009_v59  ;;  %v2755_v24 = vsel %vm1012_vm2, %v1009_v59, %v1011_v8  ;;  %v1034_v29 = vpop.permute.xlu2 %1033  ;;  %v996_v8 = vrot.slane %v2746_v20, 7 }
 0x363   : > { %v1036_v25 = vpop.permute.xlu1 %1035  ;;  %vm1405_vm2 = vcmp.lt.s32.totalorder %v2366_v31, 97 }
 0x364   : > { %v875_v30 = vadd.f32 %v874_v47, %v857_v54  ;;  %v2762_v47 = vsel %vm1037_vm3, %v1036_v25, %v1034_v29 }
 0x366   : > { %1678 = vrot.lane.b32.xlu2 %v2424_v22, %s2177_s6 }
 0x368   : > { %v879_v7 = vld [vmem:[#allocation1 + $0x1] ss:$9 sm:$0xff] }
 0x369   : > { %v881_v40 = vmul.f32 %v879_v7, %v868_v52  ;;  %901 = vst [vmem:[#allocation1] sm:$0xff] %v2676_v10  ;;  %v1059_v52 = vpop.permute.xlu0 %1058 }
 0x36a   : > { %902 = vst [vmem:[#allocation1 + $0x9] sm:$0xff] %v2673_v9  ;;  %v938_v9 = vsel %vm937_vm15, %v934_v41, %v936_v50  ;;  %v1061_v7 = vpop.permute.xlu2 %1060  ;;  %vm1330_vm15 = vcmp.lt.s32.totalorder %v2366_v31, 109 }
 0x36b   : > { %v882_v0 = vadd.f32 %v881_v40, %v875_v30  ;;  %v946_v51 = vrot.slane %v938_v9, 7  ;;  %v2764_v30 = vsel %vm1037_vm3, %v1034_v29, %v1036_v25  ;;  %v2769_v34 = vsel %vm1062_vm4, %v1061_v7, %v1059_v52 }
 0x36c   : > { %v2773_v40 = vsel %vm1062_vm4, %v1059_v52, %v1061_v7  ;;  %v991_v7 = vld [vmem:[#allocation5 + $0x24] ss:$8 sm:$0x3]  ;;  %vm1430_vm3 = vcmp.lt.s32.totalorder %v2366_v31, 96  ;;  %vm1455_vm4 = vcmp.lt.s32.totalorder %v2366_v31, 95 }
 0x36d   : > { %v900_v19 = vadd.f32 %v899_v26, %v882_v0  ;;  %v947_v62 = vsel %vm310_vm6, %v939_v57, %v946_v51  ;;  %v1102_v26 = vpop.permute.xlu1 %1101 }
 0x36e   : > { %v949_v12 = vmul.f32 %v947_v62, %v941_v61  ;;  %v943_v61 = vld [vmem:[#allocation5 + $0x83] ss:$8 sm:$0x3] }
 0x371   : > { %v904_v48 = vld [vmem:[#allocation1 + $0x1] ss:$9 sm:$0xff] }
 0x372   : > { %926 = vst [vmem:[#allocation1] sm:$0xff] %v914_v45  ;;  %v906_v10 = vmul.f32 %v904_v48, %v893_v58  ;;  %v1127_v45 = vpop.permute.xlu2 %1126 }
 0x373   : > { %927 = vst [vmem:[#allocation1 + $0x9] sm:$0xff] %v913_v27 }
 0x374   : > { %v907_v56 = vadd.f32 %v906_v10, %v900_v19  ;;  %v1104_v19 = vpop.permute.xlu0 %1103 }
 0x375   : > { %v2784_v27 = vsel %vm1105_vm5, %v1102_v26, %v1104_v19  ;;  %v2786_v58 = vsel %vm1105_vm5, %v1104_v19, %v1102_v26  ;;  %v1129_v41 = vpop.permute.xlu1 %1128  ;;  %v997_v26 = vsel %vm310_vm6, %v2742_v42, %v996_v8  ;;  %v993_v19 = vld [vmem:[#allocation5 + $0x85] ss:$8 sm:$0x3]  ;;  %vm1480_vm5 = vcmp.lt.s32.totalorder %v2366_v31, 94 }
 0x376   : > { %v925_v63 = vadd.f32 %v924_v6, %v907_v56  ;;  %v2793_v49 = vsel %vm1130_vm7, %v1127_v45, %v1129_v41  ;;  %v2795_v50 = vsel %vm1130_vm7, %v1129_v41, %v1127_v45  ;;  %vm1505_vm7 = vcmp.lt.s32.totalorder %v2366_v31, 93 }
 0x37a   : > { %v929_v60 = vld [vmem:[#allocation1 + $0x1] ss:$9 sm:$0xff] }
 0x37b   : > { %v931_v14 = vmul.f32 %v929_v60, %v918_v28  ;;  %951 = vst [vmem:[#allocation1] sm:$0xff] %v939_v57 }
 0x37c   : > { %952 = vst [vmem:[#allocation1 + $0x9] sm:$0xff] %v938_v9  ;;  %v1152_v10 = vpop.permute.xlu0 %1151  ;;  %v1154_v9 = vpop.permute.xlu2 %1153 }
 0x37d   : > { %v932_v18 = vadd.f32 %v931_v14, %v925_v63  ;;  %v2800_v43 = vsel %vm1155_vm8, %v1152_v10, %v1154_v9  ;;  %v2804_v51 = vsel %vm1155_vm8, %v1154_v9, %v1152_v10  ;;  %v1177_v56 = vpop.permute.xlu1 %1176  ;;  %v971_v63 = vrot.slane %v2737_v55, 7 }
 0x37e   : > { %vm1530_vm8 = vcmp.lt.s32.totalorder %v2366_v31, 83 }
 0x37f   : > { %v2730_v3 = vadd.f32 %v949_v12, %v932_v18  ;;  %v972_v59 = vsel %vm310_vm6, %v2735_v46, %v971_v63 }
 0x383   : > { %v2733_v53 = vld [vmem:[#allocation1 + $0x1] ss:$9 sm:$0xff] }
 0x384   : > { %976 = vst [vmem:[#allocation1] sm:$0xff] %v2735_v46  ;;  %v1179_v28 = vpop.permute.xlu0 %1178  ;;  %v1202_v14 = vpop.permute.xlu2 %1201  ;;  %v956_v18 = vmul.f32 %v2733_v53, %v943_v61  ;;  %v974_v53 = vmul.f32 %v972_v59, %v966_v15  ;;  %v1018_v61 = vld [vmem:[#allocation5 + $0x86] ss:$8 sm:$0x3] }
 0x385   : > { %977 = vst [vmem:[#allocation1 + $0x9] sm:$0xff] %v2737_v55  ;;  %v2811_v57 = vsel %vm1180_vm9, %v1177_v56, %v1179_v28  ;;  %v2813_v60 = vsel %vm1180_vm9, %v1179_v28, %v1177_v56  ;;  %v1204_v62 = vpop.permute.xlu1 %1203  ;;  %vm1555_vm9 = vcmp.lt.s32.totalorder %v2366_v31, 82 }
 0x386   : > { %v2822_v11 = vsel %vm1205_vm10, %v1202_v14, %v1204_v62  ;;  %v2824_v17 = vsel %vm1205_vm10, %v1204_v62, %v1202_v14  ;;  %v957_v55 = vadd.f32 %v956_v18, %v2730_v3  ;;  %v1021_v3 = vrot.slane %v2755_v24, 7 }
 0x387   : > { %vm1580_vm10 = vcmp.lt.s32.totalorder %v2366_v31, 81 }
 0x388   : > { %v975_v52 = vadd.f32 %v974_v53, %v957_v55  ;;  %v1022_v28 = vsel %vm310_vm6, %v2753_v23, %v1021_v3  ;;  %v1041_v55 = vld [vmem:[#allocation5 + $0x26] ss:$8 sm:$0x3] }
 0x38c   : > { %v2744_v44 = vld [vmem:[#allocation1 + $0x1] ss:$9 sm:$0xff]  ;;  %v1227_v29 = vpop.permute.xlu0 %1226  ;;  %v1229_v41 = vpop.permute.xlu2 %1228 }
 0x38d   : > { %1001 = vst [vmem:[#allocation1] sm:$0xff] %v2742_v42  ;;  %v981_v25 = vmul.f32 %v2744_v44, %v968_v1  ;;  %v2836_v45 = vsel %vm1230_vm11, %v1227_v29, %v1229_v41  ;;  %v999_v44 = vmul.f32 %v997_v26, %v991_v7  ;;  %v1016_v42 = vld [vmem:[#allocation5 + $0x25] ss:$8 sm:$0x3]  ;;  %v1252_v62 = vpop.permute.xlu1 %1251 }
 0x38e   : > { %1002 = vst [vmem:[#allocation1 + $0x9] sm:$0xff] %v2746_v20  ;;  %v2841_v20 = vsel %vm1230_vm11, %v1229_v41, %v1227_v29  ;;  %v1024_v14 = vmul.f32 %v1022_v28, %v1016_v42  ;;  %v1084_v28 = vld [vmem:[#allocation5 + $0x30] ss:$8 sm:$0x3]  ;;  %vm1605_vm11 = vcmp.lt.s32.totalorder %v2366_v31, 80 }
 0x38f   : > { %v982_v46 = vadd.f32 %v981_v25, %v975_v52 }
 0x391   : > { %v1000_v56 = vadd.f32 %v999_v44, %v982_v46  ;;  %v1068_v46 = vld [vmem:[#allocation5 + $0x90] ss:$8 sm:$0x3] }
 0x394   : > { %v1254_v15 = vpop.permute.xlu0 %1253  ;;  %v1277_v26 = vpop.permute.xlu2 %1276 }
 0x395   : > { %v2751_v16 = vld [vmem:[#allocation1 + $0x1] ss:$9 sm:$0xff]  ;;  %v2855_v8 = vsel %vm1255_vm12, %v1254_v15, %v1252_v62  ;;  %v1279_v52 = vpop.permute.xlu1 %1278 }
 0x396   : > { %1026 = vst [vmem:[#allocation1] sm:$0xff] %v2753_v23  ;;  %v1006_v9 = vmul.f32 %v2751_v16, %v993_v19  ;;  %v2853_v16 = vsel %vm1255_vm12, %v1252_v62, %v1254_v15  ;;  %v1043_v23 = vld [vmem:[#allocation5 + $0x87] ss:$8 sm:$0x3]  ;;  %v2868_v44 = vsel %vm1280_vm13, %v1277_v26, %v1279_v52  ;;  %vm1630_vm12 = vcmp.lt.s32.totalorder %v2366_v31, 79 }
 0x397   : > { %1027 = vst [vmem:[#allocation1 + $0x9] sm:$0xff] %v2755_v24  ;;  %v1046_v24 = vrot.slane %v2764_v30, 7  ;;  %v1066_v19 = vld [vmem:[#allocation5 + $0x27] ss:$8 sm:$0x3] }
 0x398   : > { %v1007_v63 = vadd.f32 %v1006_v9, %v1000_v56  ;;  %v2871_v9 = vsel %vm1280_vm13, %v1279_v52, %v1277_v26  ;;  %v1134_v52 = vld [vmem:[#allocation5 + $0x32] ss:$8 sm:$0x3]  ;;  %vm1655_vm13 = vcmp.lt.s32.totalorder %v2366_v31, 78 }
 0x399   : > { %v1047_v53 = vsel %vm310_vm6, %v2762_v47, %v1046_v24 }
 0x39a   : > { %v1025_v59 = vadd.f32 %v1024_v14, %v1007_v63  ;;  %v1049_v25 = vmul.f32 %v1047_v53, %v1041_v55  ;;  %v1111_v53 = vld [vmem:[#allocation5 + $0x92] ss:$8 sm:$0x3] }
 0x39c   : > { %v1302_v63 = vpop.permute.xlu0 %1301 }
 0x39e   : > { %v2760_v54 = vld [vmem:[#allocation1 + $0x1] ss:$9 sm:$0xff] }
 0x39f   : > { %1051 = vst [vmem:[#allocation1] sm:$0xff] %v2762_v47  ;;  %v1031_v18 = vmul.f32 %v2760_v54, %v1018_v61  ;;  %v1071_v54 = vrot.slane %v2773_v40, 7 }
 0x3a0   : > { %1052 = vst [vmem:[#allocation1 + $0x9] sm:$0xff] %v2764_v30 }
 0x3a1   : > { %v1032_v30 = vadd.f32 %v1031_v18, %v1025_v59  ;;  %v1072_v41 = vsel %vm310_vm6, %v2769_v34, %v1071_v54  ;;  %v1304_v18 = vpop.permute.xlu2 %1303  ;;  %v1109_v59 = vld [vmem:[#allocation5 + $0x31] ss:$8 sm:$0x3] }
 0x3a2   : > { %v2881_v15 = vsel %vm1305_vm14, %v1302_v63, %v1304_v18 }
 0x3a3   : > { %v1050_v7 = vadd.f32 %v1049_v25, %v1032_v30  ;;  %v1327_v25 = vpop.permute.xlu1 %1326 }
 0x3a7   : > { %v2771_v13 = vld [vmem:[#allocation1 + $0x1] ss:$9 sm:$0xff] }
 0x3a8   : > { %1076 = vst [vmem:[#allocation1] sm:$0xff] %v2769_v34  ;;  %v1056_v29 = vmul.f32 %v2771_v13, %v1043_v23  ;;  %v1074_v13 = vmul.f32 %v1072_v41, %v1066_v19  ;;  %v1086_v34 = vld [vmem:[#allocation5 + $0x91] ss:$8 sm:$0x3]  ;;  %v2885_v23 = vsel %vm1305_vm14, %v1304_v18, %v1302_v63  ;;  %v1329_v19 = vpop.permute.xlu0 %1328  ;;  %vm1680_vm14 = vcmp.lt.s32.totalorder %v2366_v31, 77 }
 0x3a9   : > { %1077 = vst [vmem:[#allocation1 + $0x9] sm:$0xff] %v2773_v40  ;;  %v1089_v40 = vrot.slane %v2424_v22, 7 }
 0x3aa   : > { %v1057_v3 = vadd.f32 %v1056_v29, %v1050_v7  ;;  %v1136_v7 = vld [vmem:[#allocation5 + $0x93] ss:$8 sm:$0x3] }
 0x3ab   : > { %v1090_v61 = vsel %vm310_vm6, %v2421_v21, %v1089_v40 }
 0x3ac   : > { %v1075_v42 = vadd.f32 %v1074_v13, %v1057_v3  ;;  %v1092_v24 = vmul.f32 %v1090_v61, %v1084_v28  ;;  %v2901_v3 = vsel %vm1330_vm15, %v1329_v19, %v1327_v25  ;;  %v1352_v61 = vpop.permute.xlu2 %1351 }
 0x3b0   : > { %v2777_v0 = vld [vmem:[#allocation1 + $0x1] ss:$9 sm:$0xff] }
 0x3b1   : > { %1094 = vst [vmem:[#allocation1] sm:$0xff] %v2421_v21  ;;  %v1081_v56 = vmul.f32 %v2777_v0, %v1068_v46  ;;  %v2898_v46 = vsel %vm1330_vm15, %v1327_v25, %v1329_v19 }
 0x3b2   : > { %1095 = vst [vmem:[#allocation1 + $0x9] sm:$0xff] %v2424_v22  ;;  %v1114_v22 = vrot.slane %v2786_v58, 7 }
 0x3b3   : > { %v1082_v62 = vadd.f32 %v1081_v56, %v1075_v42  ;;  %v1159_v56 = vld [vmem:[#allocation5 + $0x33] ss:$8 sm:$0x3]  ;;  %v1161_v42 = vld [vmem:[#allocation5 + $0x94] ss:$8 sm:$0x3] }
 0x3b4   : > { %v1115_v21 = vsel %vm310_vm6, %v2784_v27, %v1114_v22  ;;  %v1379_v25 = vpop.permute.xlu2 %1378 }
 0x3b5   : > { %v1093_v55 = vadd.f32 %v1092_v24, %v1082_v62  ;;  %v1117_v30 = vmul.f32 %v1115_v21, %v1109_v59  ;;  %v1184_v24 = vld [vmem:[#allocation5 + $0x34] ss:$8 sm:$0x3]  ;;  %v1186_v59 = vld [vmem:[#allocation5 + $0x95] ss:$8 sm:$0x3] }
 0x3b9   : > { %v2782_v5 = vld [vmem:[#allocation1 + $0x1] ss:$9 sm:$0xff] }
 0x3ba   : > { %1119 = vst [vmem:[#allocation1] sm:$0xff] %v2784_v27  ;;  %v1099_v14 = vmul.f32 %v2782_v5, %v1086_v34  ;;  %v1139_v5 = vrot.slane %v2795_v50, 7  ;;  %v1354_v34 = vpop.permute.xlu1 %1353 }
 0x3bb   : > { %1120 = vst [vmem:[#allocation1 + $0x9] sm:$0xff] %v2786_v58  ;;  %v2915_v18 = vsel %vm1355_vm0, %v1354_v34, %v1352_v61 }
 0x3bc   : > { %v1100_v58 = vadd.f32 %v1099_v14, %v1093_v55  ;;  %v1140_v26 = vsel %vm310_vm6, %v2793_v49, %v1139_v5  ;;  %v1214_v55 = vrot.slane %v2824_v17, 7  ;;  %v1209_v5 = vld [vmem:[#allocation5 + $0x35] ss:$8 sm:$0x3] }
 0x3be   : > { %v1118_v29 = vadd.f32 %v1117_v30, %v1100_v58  ;;  %v1211_v30 = vld [vmem:[#allocation5 + $0x96] ss:$8 sm:$0x3] }
 0x3c2   : > { %v2791_v48 = vld [vmem:[#allocation1 + $0x1] ss:$9 sm:$0xff] }
 0x3c3   : > { %1144 = vst [vmem:[#allocation1] sm:$0xff] %v2793_v49  ;;  %v1124_v54 = vmul.f32 %v2791_v48, %v1111_v53  ;;  %v1142_v48 = vmul.f32 %v1140_v26, %v1134_v52  ;;  %v1377_v53 = vpop.permute.xlu0 %1376 }
 0x3c4   : > { %1145 = vst [vmem:[#allocation1 + $0x9] sm:$0xff] %v2795_v50  ;;  %v1164_v50 = vrot.slane %v2804_v51, 7 }
 0x3c5   : > { %v1125_v27 = vadd.f32 %v1124_v54, %v1118_v29  ;;  %v1215_v54 = vsel %vm310_vm6, %v2822_v11, %v1214_v55  ;;  %v2926_v29 = vsel %vm1380_vm1, %v1377_v53, %v1379_v25 }
 0x3c6   : > { %v1165_v49 = vsel %vm310_vm6, %v2800_v43, %v1164_v50  ;;  %v1236_v50 = vld [vmem:[#allocation5 + $0x97] ss:$8 sm:$0x3] }
 0x3c7   : > { %v1143_v13 = vadd.f32 %v1142_v48, %v1125_v27  ;;  %v1167_v62 = vmul.f32 %v1165_v49, %v1159_v56  ;;  %v1234_v27 = vld [vmem:[#allocation5 + $0x36] ss:$8 sm:$0x3]  ;;  %v1402_v48 = vpop.permute.xlu1 %1401 }
 0x3cb   : > { %v2802_v35 = vld [vmem:[#allocation1 + $0x1] ss:$9 sm:$0xff]  ;;  %v1404_v49 = vpop.permute.xlu0 %1403 }
 0x3cc   : > { %1169 = vst [vmem:[#allocation1] sm:$0xff] %v2800_v43  ;;  %v1149_v40 = vmul.f32 %v2802_v35, %v1136_v7  ;;  %v2913_v35 = vsel %vm1355_vm0, %v1352_v61, %v1354_v34  ;;  %v2931_v7 = vsel %vm1380_vm1, %v1379_v25, %v1377_v53  ;;  %v1261_v61 = vld [vmem:[#allocation5 + $0xa0] ss:$8 sm:$0x3] }
 0x3cd   : > { %1170 = vst [vmem:[#allocation1 + $0x9] sm:$0xff] %v2804_v51  ;;  %v1189_v51 = vrot.slane %v2813_v60, 7 }
 0x3ce   : > { %v1150_v28 = vadd.f32 %v1149_v40, %v1143_v13 }
 0x3cf   : > { %v1190_v43 = vsel %vm310_vm6, %v2811_v57, %v1189_v51  ;;  %v2945_v51 = vsel %vm1405_vm2, %v1404_v49, %v1402_v48 }
 0x3d0   : > { %v1168_v14 = vadd.f32 %v1167_v62, %v1150_v28  ;;  %v1259_v28 = vld [vmem:[#allocation5 + $0x37] ss:$8 sm:$0x3] }
 0x3d4   : > { %v2809_v6 = vld [vmem:[#allocation1 + $0x1] ss:$9 sm:$0xff] }
 0x3d5   : > { %1194 = vst [vmem:[#allocation1] sm:$0xff] %v2811_v57  ;;  %v1174_v63 = vmul.f32 %v2809_v6, %v1161_v42  ;;  %v1192_v6 = vmul.f32 %v1190_v43, %v1184_v24  ;;  %v1429_v24 = vpop.permute.xlu1 %1428  ;;  %v1427_v43 = vpop.permute.xlu2 %1426 }
 0x3d6   : > { %1195 = vst [vmem:[#allocation1 + $0x9] sm:$0xff] %v2813_v60  ;;  %v2961_v53 = vsel %vm1430_vm3, %v1429_v24, %v1427_v43 }
 0x3d7   : > { %v1175_v60 = vadd.f32 %v1174_v63, %v1168_v14 }
 0x3d9   : > { %v1193_v58 = vadd.f32 %v1192_v6, %v1175_v60  ;;  %v1286_v60 = vld [vmem:[#allocation5 + $0xa1] ss:$8 sm:$0x3] }
 0x3dd   : > { %v2820_v12 = vld [vmem:[#allocation1 + $0x1] ss:$9 sm:$0xff] }
 0x3de   : > { %1219 = vst [vmem:[#allocation1] sm:$0xff] %v2822_v11  ;;  %v1199_v21 = vmul.f32 %v2820_v12, %v1186_v59  ;;  %v1217_v12 = vmul.f32 %v1215_v54, %v1209_v5  ;;  %v1284_v59 = vld [vmem:[#allocation5 + $0x40] ss:$8 sm:$0x3] }
 0x3df   : > { %1220 = vst [vmem:[#allocation1 + $0x9] sm:$0xff] %v2824_v17  ;;  %v1239_v17 = vrot.slane %v2841_v20, 7  ;;  %v1311_v54 = vld [vmem:[#allocation5 + $0xa2] ss:$8 sm:$0x3] }
 0x3e0   : > { %v1200_v57 = vadd.f32 %v1199_v21, %v1193_v58  ;;  %v2958_v21 = vsel %vm1430_vm3, %v1427_v43, %v1429_v24  ;;  %v1384_v24 = vld [vmem:[#allocation5 + $0x44] ss:$8 sm:$0x3] }
 0x3e1   : > { %v1240_v11 = vsel %vm310_vm6, %v2836_v45, %v1239_v17 }
 0x3e2   : > { %v1218_v19 = vadd.f32 %v1217_v12, %v1200_v57  ;;  %v1242_v13 = vmul.f32 %v1240_v11, %v1234_v27  ;;  %v1452_v57 = vpop.permute.xlu0 %1451  ;;  %v1334_v27 = vld [vmem:[#allocation5 + $0x42] ss:$8 sm:$0x3] }
 0x3e6   : > { %v2838_v10 = vld [vmem:[#allocation1 + $0x1] ss:$9 sm:$0xff] }
 0x3e7   : > { %1244 = vst [vmem:[#allocation1] sm:$0xff] %v2836_v45  ;;  %v1224_v26 = vmul.f32 %v2838_v10, %v1211_v30  ;;  %v2943_v10 = vsel %vm1405_vm2, %v1402_v48, %v1404_v49  ;;  %v1309_v30 = vld [vmem:[#allocation5 + $0x41] ss:$8 sm:$0x3] }
 0x3e8   : > { %1245 = vst [vmem:[#allocation1 + $0x9] sm:$0xff] %v2841_v20  ;;  %v1264_v20 = vrot.slane %v2855_v8, 7  ;;  %v1336_v48 = vld [vmem:[#allocation5 + $0xa3] ss:$8 sm:$0x3] }
 0x3e9   : > { %v1225_v40 = vadd.f32 %v1224_v26, %v1218_v19  ;;  %v1454_v26 = vpop.permute.xlu2 %1453  ;;  %v1359_v49 = vld [vmem:[#allocation5 + $0x43] ss:$8 sm:$0x3] }
 0x3ea   : > { %v1265_v45 = vsel %vm310_vm6, %v2853_v16, %v1264_v20  ;;  %v2971_v19 = vsel %vm1455_vm4, %v1452_v57, %v1454_v26 }
 0x3eb   : > { %v1243_v34 = vadd.f32 %v1242_v13, %v1225_v40  ;;  %v1267_v62 = vmul.f32 %v1265_v45, %v1259_v28  ;;  %v1477_v13 = vpop.permute.xlu1 %1476  ;;  %v1361_v28 = vld [vmem:[#allocation5 + $0xa4] ss:$8 sm:$0x3]  ;;  %v1479_v45 = vpop.permute.xlu0 %1478 }
 0x3ef   : > { %v2851_v1 = vld [vmem:[#allocation1 + $0x1] ss:$9 sm:$0xff] }
 0x3f0   : > { %1269 = vst [vmem:[#allocation1] sm:$0xff] %v2853_v16  ;;  %v1249_v56 = vmul.f32 %v2851_v1, %v1236_v50  ;;  %v1289_v1 = vrot.slane %v2871_v9, 7  ;;  %v2975_v50 = vsel %vm1455_vm4, %v1454_v26, %v1452_v57 }
 0x3f1   : > { %1270 = vst [vmem:[#allocation1 + $0x9] sm:$0xff] %v2855_v8 }
 0x3f2   : > { %v1250_v8 = vadd.f32 %v1249_v56, %v1243_v34  ;;  %v1290_v55 = vsel %vm310_vm6, %v2868_v44, %v1289_v1  ;;  %v1389_v1 = vrot.slane %v2931_v7, 7 }
 0x3f4   : > { %v1268_v14 = vadd.f32 %v1267_v62, %v1250_v8  ;;  %v2986_v8 = vsel %vm1480_vm5, %v1477_v13, %v1479_v45 }
 0x3f8   : > { %v2866_v47 = vld [vmem:[#allocation1 + $0x1] ss:$9 sm:$0xff] }
 0x3f9   : > { %1294 = vst [vmem:[#allocation1] sm:$0xff] %v2868_v44  ;;  %v1274_v63 = vmul.f32 %v2866_v47, %v1261_v61  ;;  %v1292_v47 = vmul.f32 %v1290_v55, %v1284_v59  ;;  %v1504_v59 = vpop.permute.xlu1 %1503 }
 0x3fa   : > { %1295 = vst [vmem:[#allocation1 + $0x9] sm:$0xff] %v2871_v9  ;;  %v1314_v9 = vrot.slane %v2885_v23, 7 }
 0x3fb   : > { %v1275_v16 = vadd.f32 %v1274_v63, %v1268_v14  ;;  %v1386_v14 = vld [vmem:[#allocation5 + $0xa5] ss:$8 sm:$0x3] }
 0x3fc   : > { %v1315_v44 = vsel %vm310_vm6, %v2881_v15, %v1314_v9 }
 0x3fd   : > { %v1293_v5 = vadd.f32 %v1292_v47, %v1275_v16  ;;  %v1317_v17 = vmul.f32 %v1315_v44, %v1309_v30  ;;  %v1409_v47 = vld [vmem:[#allocation5 + $0x45] ss:$8 sm:$0x3]  ;;  %v1411_v30 = vld [vmem:[#allocation5 + $0xa6] ss:$8 sm:$0x3] }
 0x401   : > { %v2883_v0 = vld [vmem:[#allocation1 + $0x1] ss:$9 sm:$0xff] }
 0x402   : > { %1319 = vst [vmem:[#allocation1] sm:$0xff] %v2881_v15  ;;  %v1299_v58 = vmul.f32 %v2883_v0, %v1286_v60  ;;  %v1502_v60 = vpop.permute.xlu2 %1501 }
 0x403   : > { %1320 = vst [vmem:[#allocation1 + $0x9] sm:$0xff] %v2885_v23  ;;  %v1339_v23 = vrot.slane %v2901_v3, 7 }
 0x404   : > { %v1300_v25 = vadd.f32 %v1299_v58, %v1293_v5  ;;  %v1507_v5 = vsel %vm1505_vm7, %v1504_v59, %v1502_v60 }
 0x405   : > { %v1340_v15 = vsel %vm310_vm6, %v2898_v46, %v1339_v23  ;;  %v1434_v23 = vld [vmem:[#allocation5 + $0x46] ss:$8 sm:$0x3] }
 0x406   : > { %v1318_v11 = vadd.f32 %v1317_v17, %v1300_v25  ;;  %v1342_v40 = vmul.f32 %v1340_v15, %v1334_v27  ;;  %v1436_v17 = vld [vmem:[#allocation5 + $0xa7] ss:$8 sm:$0x3]  ;;  %v1464_v15 = vrot.slane %v2975_v50, 7 }
 0x40a   : > { %v2896_v41 = vld [vmem:[#allocation1 + $0x1] ss:$9 sm:$0xff]  ;;  %v1529_v26 = vpop.permute.xlu2 %1528 }
 0x40b   : > { %1344 = vst [vmem:[#allocation1] sm:$0xff] %v2898_v46  ;;  %v1324_v12 = vmul.f32 %v2896_v41, %v1311_v54  ;;  %v1364_v41 = vrot.slane %v2915_v18, 7  ;;  %v1439_v54 = vrot.slane %v2961_v53, 7 }
 0x40c   : > { %1345 = vst [vmem:[#allocation1 + $0x9] sm:$0xff] %v2901_v3 }
 0x40d   : > { %v1325_v3 = vadd.f32 %v1324_v12, %v1318_v11  ;;  %v1365_v34 = vsel %vm310_vm6, %v2913_v35, %v1364_v41  ;;  %v1440_v12 = vsel %vm310_vm6, %v2958_v21, %v1439_v54  ;;  %v1459_v41 = vld [vmem:[#allocation5 + $0x47] ss:$8 sm:$0x3] }
 0x40f   : > { %v1343_v56 = vadd.f32 %v1342_v40, %v1325_v3  ;;  %v1465_v40 = vsel %vm310_vm6, %v2971_v19, %v1464_v15  ;;  %v1561_v15 = vld [vmem:[#allocation5 + $0xb4] ss:$8 sm:$0x3] }
 0x413   : > { %v2911_v22 = vld [vmem:[#allocation1 + $0x1] ss:$9 sm:$0xff] }
 0x414   : > { %1369 = vst [vmem:[#allocation1] sm:$0xff] %v2913_v35  ;;  %v1349_v20 = vmul.f32 %v2911_v22, %v1336_v48  ;;  %v1367_v22 = vmul.f32 %v1365_v34, %v1359_v49  ;;  %v1390_v35 = vsel %vm310_vm6, %v2926_v29, %v1389_v1  ;;  %v1467_v49 = vmul.f32 %v1465_v40, %v1459_v41  ;;  %v1584_v40 = vld [vmem:[#allocation5 + $0x54] ss:$8 sm:$0x3] }
 0x415   : > { %1370 = vst [vmem:[#allocation1 + $0x9] sm:$0xff] %v2915_v18  ;;  %v2989_v18 = vsel %vm1480_vm5, %v1479_v45, %v1477_v13  ;;  %v1392_v55 = vmul.f32 %v1390_v35, %v1384_v24  ;;  %v1552_v13 = vpop.permute.xlu1 %1551 }
 0x416   : > { %v1350_v46 = vadd.f32 %v1349_v20, %v1343_v56  ;;  %v1461_v20 = vld [vmem:[#allocation5 + $0xb0] ss:$8 sm:$0x3]  ;;  %v1489_v56 = vrot.slane %v2989_v18, 7 }
 0x418   : > { %v1368_v63 = vadd.f32 %v1367_v22, %v1350_v46  ;;  %v1484_v46 = vld [vmem:[#allocation5 + $0x50] ss:$8 sm:$0x3]  ;;  %v1490_v22 = vsel %vm310_vm6, %v2986_v8, %v1489_v56 }
 0x419   : > { %v1492_v24 = vmul.f32 %v1490_v22, %v1484_v46 }
 0x41c   : > { %v2928_v52 = vld [vmem:[#allocation1 + $0x1] ss:$9 sm:$0xff] }
 0x41d   : > { %1394 = vst [vmem:[#allocation1] sm:$0xff] %v2926_v29  ;;  %v1374_v62 = vmul.f32 %v2928_v52, %v1361_v28  ;;  %v1506_v52 = vsel %vm1505_vm7, %v1502_v60, %v1504_v59  ;;  %v1511_v59 = vld [vmem:[#allocation5 + $0xb2] ss:$8 sm:$0x3] }
 0x41e   : > { %1395 = vst [vmem:[#allocation1 + $0x9] sm:$0xff] %v2931_v7  ;;  %v1414_v7 = vrot.slane %v2945_v51, 7 }
 0x41f   : > { %v1375_v43 = vadd.f32 %v1374_v62, %v1368_v63  ;;  %v1514_v63 = vrot.slane %v1507_v5, 7 }
 0x420   : > { %v1415_v29 = vsel %vm310_vm6, %v2943_v10, %v1414_v7 }
 0x421   : > { %v1393_v58 = vadd.f32 %v1392_v55, %v1375_v43  ;;  %v1417_v25 = vmul.f32 %v1415_v29, %v1409_v47  ;;  %v1509_v43 = vld [vmem:[#allocation5 + $0x51] ss:$8 sm:$0x3]  ;;  %v1515_v7 = vsel %vm310_vm6, %v1506_v52, %v1514_v63 }
 0x425   : > { %v2941_v42 = vld [vmem:[#allocation1 + $0x1] ss:$9 sm:$0xff] }
 0x426   : > { %1419 = vst [vmem:[#allocation1] sm:$0xff] %v2943_v10  ;;  %v1399_v16 = vmul.f32 %v2941_v42, %v1386_v14  ;;  %v1527_v42 = vpop.permute.xlu0 %1526  ;;  %v1577_v14 = vpop.permute.xlu2 %1576 }
 0x427   : > { %1420 = vst [vmem:[#allocation1 + $0x9] sm:$0xff] %v2945_v51  ;;  %v1531_v10 = vsel %vm1530_vm8, %v1527_v42, %v1529_v26  ;;  %v1532_v48 = vsel %vm1530_vm8, %v1529_v26, %v1527_v42 }
 0x428   : > { %v1400_v44 = vadd.f32 %v1399_v16, %v1393_v58  ;;  %v1539_v47 = vrot.slane %v1532_v48, 7  ;;  %v1517_v58 = vmul.f32 %v1515_v7, %v1509_v43 }
 0x42a   : > { %v1418_v57 = vadd.f32 %v1417_v25, %v1400_v44  ;;  %v1536_v44 = vld [vmem:[#allocation5 + $0xb3] ss:$8 sm:$0x3] }
 0x42e   : > { %v2956_v6 = vld [vmem:[#allocation1 + $0x1] ss:$9 sm:$0xff]  ;;  %v1554_v28 = vpop.permute.xlu0 %1553  ;;  %v1604_v42 = vpop.permute.xlu2 %1603 }
 0x42f   : > { %1444 = vst [vmem:[#allocation1] sm:$0xff] %v2958_v21  ;;  %v1424_v51 = vmul.f32 %v2956_v6, %v1411_v30  ;;  %v1556_v45 = vsel %vm1555_vm9, %v1552_v13, %v1554_v28  ;;  %v1557_v1 = vsel %vm1555_vm9, %v1554_v28, %v1552_v13  ;;  %v1540_v30 = vsel %vm310_vm6, %v1531_v10, %v1539_v47 }
 0x430   : > { %1445 = vst [vmem:[#allocation1 + $0x9] sm:$0xff] %v2961_v53  ;;  %v1442_v53 = vmul.f32 %v1440_v12, %v1434_v23  ;;  %v1559_v12 = vld [vmem:[#allocation5 + $0x53] ss:$8 sm:$0x3] }
 0x431   : > { %v1425_v27 = vadd.f32 %v1424_v51, %v1418_v57  ;;  %v1564_v51 = vrot.slane %v1557_v1, 7 }
 0x433   : > { %v1443_v3 = vadd.f32 %v1442_v53, %v1425_v27 }
 0x436   : > { %v1602_v25 = vpop.permute.xlu0 %1601 }
 0x437   : > { %v2973_v0 = vld [vmem:[#allocation1 + $0x1] ss:$9 sm:$0xff]  ;;  %v1606_v23 = vsel %vm1605_vm11, %v1602_v25, %v1604_v42  ;;  %v1607_v27 = vsel %vm1605_vm11, %v1604_v42, %v1602_v25  ;;  %v1661_v25 = vld [vmem:[#allocation5 + $0xc0] ss:$8 sm:$0x3] }
 0x438   : > { %1469 = vst [vmem:[#allocation1] sm:$0xff] %v2971_v19  ;;  %v1449_v6 = vmul.f32 %v2973_v0, %v1436_v17  ;;  %v1486_v19 = vld [vmem:[#allocation5 + $0xb1] ss:$8 sm:$0x3]  ;;  %v1614_v28 = vrot.slane %v1607_v27, 7 }
 0x439   : > { %1470 = vst [vmem:[#allocation1 + $0x9] sm:$0xff] %v2975_v50 }
 0x43a   : > { %v1450_v21 = vadd.f32 %v1449_v6, %v1443_v3  ;;  %v1615_v22 = vsel %vm310_vm6, %v1606_v23, %v1614_v28 }
 0x43c   : > { %v1468_v0 = vadd.f32 %v1467_v49, %v1450_v21 }
 0x43e   : > { %v1629_v21 = vpop.permute.xlu0 %1628 }
 0x440   : > { %v1472_v61 = vld [vmem:[#allocation1 + $0x1] ss:$9 sm:$0xff] }
 0x441   : > { %1494 = vst [vmem:[#allocation1] sm:$0xff] %v2986_v8  ;;  %v1474_v50 = vmul.f32 %v1472_v61, %v1461_v20  ;;  %v1586_v20 = vld [vmem:[#allocation5 + $0xb5] ss:$8 sm:$0x3] }
 0x442   : > { %1495 = vst [vmem:[#allocation1 + $0x9] sm:$0xff] %v2989_v18  ;;  %v1579_v18 = vpop.permute.xlu1 %1578 }
 0x443   : > { %v1475_v62 = vadd.f32 %v1474_v50, %v1468_v0  ;;  %v1581_v16 = vsel %vm1580_vm10, %v1577_v14, %v1579_v18  ;;  %v1582_v8 = vsel %vm1580_vm10, %v1579_v18, %v1577_v14 }
 0x445   : > { %v1493_v61 = vadd.f32 %v1492_v24, %v1475_v62  ;;  %v1611_v62 = vld [vmem:[#allocation5 + $0xb6] ss:$8 sm:$0x3] }
 0x449   : > { %v1497_v9 = vld [vmem:[#allocation1 + $0x1] ss:$9 sm:$0xff] }
 0x44a   : > { %1519 = vst [vmem:[#allocation1] sm:$0xff] %v1506_v52  ;;  %v1499_v35 = vmul.f32 %v1497_v9, %v1486_v19  ;;  %v1534_v9 = vld [vmem:[#allocation5 + $0x52] ss:$8 sm:$0x3]  ;;  %v1627_v3 = vpop.permute.xlu1 %1626  ;;  %v1652_v19 = vpop.permute.xlu2 %1651 }
 0x44b   : > { %1520 = vst [vmem:[#allocation1 + $0x9] sm:$0xff] %v1507_v5  ;;  %v1542_v52 = vmul.f32 %v1540_v30, %v1534_v9  ;;  %v1631_v50 = vsel %vm1630_vm12, %v1627_v3, %v1629_v21 }
 0x44c   : > { %v1500_v60 = vadd.f32 %v1499_v35, %v1493_v61 }
 0x44e   : > { %v1518_v5 = vadd.f32 %v1517_v58, %v1500_v60 }
 0x452   : > { %v1522_v11 = vld [vmem:[#allocation1 + $0x1] ss:$9 sm:$0xff]  ;;  %v1654_v24 = vpop.permute.xlu1 %1653  ;;  %v1679_v9 = vpop.permute.xlu2 %1678 }
 0x453   : > { %1544 = vst [vmem:[#allocation1] sm:$0xff] %v1531_v10  ;;  %v1524_v29 = vmul.f32 %v1522_v11, %v1511_v59  ;;  %v1565_v11 = vsel %vm310_vm6, %v1556_v45, %v1564_v51  ;;  %v1656_v43 = vsel %vm1655_vm13, %v1652_v19, %v1654_v24  ;;  %v1634_v59 = vld [vmem:[#allocation5 + $0x56] ss:$8 sm:$0x3]  ;;  %v1657_v60 = vsel %vm1655_vm13, %v1654_v24, %v1652_v19 }
 0x454   : > { %1545 = vst [vmem:[#allocation1 + $0x9] sm:$0xff] %v1532_v48  ;;  %v1589_v48 = vrot.slane %v1582_v8, 7  ;;  %v1567_v53 = vmul.f32 %v1565_v11, %v1559_v12  ;;  %v1664_v58 = vrot.slane %v1657_v60, 7 }
 0x455   : > { %v1525_v54 = vadd.f32 %v1524_v29, %v1518_v5 }
 0x456   : > { %v1590_v13 = vsel %vm310_vm6, %v1581_v16, %v1589_v48  ;;  %v1665_v51 = vsel %vm310_vm6, %v1656_v43, %v1664_v58 }
 0x457   : > { %v1543_v26 = vadd.f32 %v1542_v52, %v1525_v54  ;;  %v1659_v54 = vld [vmem:[#allocation5 + $0x57] ss:$8 sm:$0x3] }
 0x45b   : > { %v1547_v34 = vld [vmem:[#allocation1 + $0x1] ss:$9 sm:$0xff] }
 0x45c   : > { %1569 = vst [vmem:[#allocation1] sm:$0xff] %v1556_v45  ;;  %v1549_v57 = vmul.f32 %v1547_v34, %v1536_v44  ;;  %v1632_v34 = vsel %vm1630_vm12, %v1629_v21, %v1627_v3  ;;  %v1592_v45 = vmul.f32 %v1590_v13, %v1584_v40 }
 0x45d   : > { %1570 = vst [vmem:[#allocation1 + $0x9] sm:$0xff] %v1557_v1  ;;  %v1609_v1 = vld [vmem:[#allocation5 + $0x55] ss:$8 sm:$0x3]  ;;  %v1639_v35 = vrot.slane %v1632_v34, 7 }
 0x45e   : > { %v1550_v10 = vadd.f32 %v1549_v57, %v1543_v26  ;;  %v1617_v18 = vmul.f32 %v1615_v22, %v1609_v1  ;;  %v1684_v26 = vld [vmem:[#allocation5 + $0x60] ss:$8 sm:$0x3] }
 0x460   : > { %v1568_v41 = vadd.f32 %v1567_v53, %v1550_v10 }
 0x464   : > { %v1572_v55 = vld [vmem:[#allocation1 + $0x1] ss:$9 sm:$0xff] }
 0x465   : > { %1594 = vst [vmem:[#allocation1] sm:$0xff] %v1581_v16  ;;  %v1574_v6 = vmul.f32 %v1572_v55, %v1561_v15  ;;  %v1640_v55 = vsel %vm310_vm6, %v1631_v50, %v1639_v35  ;;  %v1636_v16 = vld [vmem:[#allocation5 + $0xb7] ss:$8 sm:$0x3] }
 0x466   : > { %1595 = vst [vmem:[#allocation1 + $0x9] sm:$0xff] %v1582_v8  ;;  %v1677_v8 = vpop.permute.xlu0 %1676  ;;  %v1642_v29 = vmul.f32 %v1640_v55, %v1634_v59  ;;  %v1686_v15 = vld [vmem:[#allocation5 + $0xc1] ss:$8 sm:$0x3] }
 0x467   : > { %v1575_v56 = vadd.f32 %v1574_v6, %v1568_v41  ;;  %v1682_v44 = vsel %vm1680_vm14, %v1679_v9, %v1677_v8  ;;  %v1681_v52 = vsel %vm1680_vm14, %v1677_v8, %v1679_v9 }
 0x469   : > { %v1593_v0 = vadd.f32 %v1592_v45, %v1575_v56 }
 0x46d   : > { %v1597_v17 = vld [vmem:[#allocation1 + $0x1] ss:$9 sm:$0xff] }
 0x46e   : > { %1619 = vst [vmem:[#allocation1] sm:$0xff] %v1606_v23  ;;  %v1599_v46 = vmul.f32 %v1597_v17, %v1586_v20  ;;  %v1689_v23 = vrot.slane %v1682_v44, 7  ;;  %v1667_v17 = vmul.f32 %v1665_v51, %v1659_v54 }
 0x46f   : > { %1620 = vst [vmem:[#allocation1 + $0x9] sm:$0xff] %v1607_v27 }
 0x470   : > { %v1600_v63 = vadd.f32 %v1599_v46, %v1593_v0  ;;  %v1690_v27 = vsel %vm310_vm6, %v1681_v52, %v1689_v23 }
 0x471   : > { %v1692_v10 = vmul.f32 %v1690_v27, %v1684_v26 }
 0x472   : > { %v1618_v7 = vadd.f32 %v1617_v18, %v1600_v63 }
 0x476   : > { %v1622_v49 = vld [vmem:[#allocation1 + $0x1] ss:$9 sm:$0xff] }
 0x477   : > { %1644 = vst [vmem:[#allocation1] sm:$0xff] %v1631_v50  ;;  %v1624_v61 = vmul.f32 %v1622_v49, %v1611_v62 }
 0x478   : > { %1645 = vst [vmem:[#allocation1 + $0x9] sm:$0xff] %v1632_v34 }
 0x479   : > { %v1625_v47 = vadd.f32 %v1624_v61, %v1618_v7 }
 0x47b   : > { %v1643_v30 = vadd.f32 %v1642_v29, %v1625_v47 }
 0x47f   : > { %v1647_v14 = vld [vmem:[#allocation1 + $0x1] ss:$9 sm:$0xff] }
 0x480   : > { %1669 = vst [vmem:[#allocation1] sm:$0xff] %v1656_v43  ;;  %v1649_v5 = vmul.f32 %v1647_v14, %v1636_v16 }
 0x481   : > { %1670 = vst [vmem:[#allocation1 + $0x9] sm:$0xff] %v1657_v60 }
 0x482   : > { %v1650_v42 = vadd.f32 %v1649_v5, %v1643_v30 }
 0x484   : > { %v1668_v31 = vadd.f32 %v1667_v17, %v1650_v42 }
 0x488   : > { %v1672_v57 = vld [vmem:[#allocation1 + $0x1] ss:$9 sm:$0xff] }
 0x489   : > { %1694 = vst [vmem:[#allocation1] sm:$0xff] %v1681_v52  ;;  %v1674_v12 = vmul.f32 %v1672_v57, %v1661_v25 }
 0x48a   : > { %1695 = vst [vmem:[#allocation1 + $0x9] sm:$0xff] %v1682_v44 }
 0x48b   : > { %v1675_v11 = vadd.f32 %v1674_v12, %v1668_v31 }
 0x48d   : > { %v1693_v53 = vadd.f32 %v1692_v10, %v1675_v11 }
 0x491   : > { %v1697_v48 = vld [vmem:[#allocation1 + $0x1] ss:$9 sm:$0xff] }
 0x492   : > { %v1699_v6 = vmul.f32 %v1697_v48, %v1686_v15 }
 0x494   : > { %v1700_v3 = vadd.f32 %v1699_v6, %v1693_v53 }
 0x496   : > { %v1859_v41 = vmul.f32 -1.442695, %v1700_v3 }
 0x498   : > { %1990 = vpow2.f32 %v1859_v41 }
 0x49e   : > { %v1991_v40 = vpop.eup %1990 }
 0x49f   : > { %v1704_v20 = vadd.f32 1.0, %v1991_v40 }
 0x4a1   : > { %1992 = vrcp.f32 %v1704_v20  ;;  %v1716_v49 = vand.u32 2147483648, %v1704_v20  ;;  %v1714_v28 = vand.u32 2147483647, %v1704_v20  ;;  %vm1710_vm6 = vweird.f32 %v1704_v20 }
 0x4a3   : > { %v1717_v45 = vor.u32 1.1754944e-38, %v1716_v49  ;;  %vm1715_vm1 = vcmp.eq.f32.partialorder %v1714_v28, 8.507059e+37 }
 0x4a7   : > { %v1993_v13 = vpop.eup %1992 }
 0x4a8   : > { %v1706_v21 = vmul.f32 %v1993_v13, %v1704_v20  ;;  %vm1711_vm15 = vweird.f32 %v1993_v13 }
 0x4a9   : > { %vm1712_vm0 = vmor %vm1710_vm6, %vm1711_vm15 }
 0x4aa   : > { %v1707_v56 = vsub.f32 1.0, %v1706_v21 }
 0x4ac   : > { %v1708_v50 = vmul.f32 %v1993_v13, %v1707_v56 }
 0x4ae   : > { %v1709_v34 = vadd.f32 %v1993_v13, %v1708_v50 }
 0x4b0   : > { %v1713_v46 = vsel %vm1712_vm0, %v1993_v13, %v1709_v34 }
 0x4b1   : > { %v1718_v0 = vsel %vm1715_vm1, %v1717_v45, %v1713_v46 }
 0x4b2   : > { %v1721_v1 = vperm.slane %v1718_v0, 0  ;;  %v1722_v22 = vperm.slane %v1718_v0, 1 }
 0x4b4   : > { %v1725_v19 = vmul.f32 %v1721_v1, %v2381_v32  ;;  %v1726_v62 = vmul.f32 %v1722_v22, %v2384_v33  ;;  %v1727_v63 = vmul.f32 %v1721_v1, %v2393_v38  ;;  %v1728_v24 = vmul.f32 %v1722_v22, %v2396_v39 }
 0x4b5   : > { %v1729_v35 = vmul.f32 %v1721_v1, %v2387_v36  ;;  %v1730_v18 = vmul.f32 %v1722_v22, %v2390_v37  ;;  %v1731_v32 = vmul.f32 %v1721_v1, %v2399_v2  ;;  %v1732_v33 = vmul.f32 %v1722_v22, %v2402_v4 }
 0x4b6   : > { %1733 = vst [vmem:[%s234_s23] sm:$0xff] %v1725_v19 }
 0x4b7   : > { %1734 = vst [vmem:[%s234_s23 + $0x8] sm:$0xff] %v1726_v62 }
 0x4b8   : > { %1735 = vst [vmem:[%s234_s23 + $0x10] sm:$0xff] %v1727_v63 }
 0x4b9   : > { %1736 = vst [vmem:[%s234_s23 + $0x18] sm:$0xff] %v1728_v24 }
 0x4ba   : > { %1737 = vst [vmem:[%s234_s23 + $0x20] sm:$0xff] %v1729_v35 }
 0x4bb   : > { %1738 = vst [vmem:[%s234_s23 + $0x28] sm:$0xff] %v1730_v18 }
 0x4bc   : > { %1739 = vst [vmem:[%s234_s23 + $0x30] sm:$0xff] %v1731_v32 }
 0x4bd   : > { %1740 = vst [vmem:[%s234_s23 + $0x38] sm:$0xff] %v1732_v33 }
 0x4be   : > { %2081 = shalt.err (!%p2078_p10)
}
 0x4bf   : > { %s2179_s10 = smov 256  }
 0x4c0   : > { %1873 = dma.vmem_to_hbm [thread:$0]  (%p2274_p3), %s1755_s19, 1024, %s1757_s25, %s1742_s24, %s2179_s10, %s2179_s10, %s2147_s14  }
 0x4c1 PF: > { %s1771_s7 = sand.u32 1, %s2112_s15   ;;  %p3081_p12 = scmp.ge.s32.totalorder %s2124_s18, 2 }
 0x4c2   : > { %s1772_s21 = scalar_lea.sflag [#allocation4], %s1771_s7 }
 0x4c3   : > { %p1884_p13 = pnand %p3081_p12, %p2240_p6 }
 0x4c5   : > { %p1885_p0 = pneg %p1884_p13 }
 0x4c7   : > { %2107 = dma.done.wait (%p1885_p0), %s1772_s21, 1024  }
 0x4c8   : > { %2109 = vsyncadd (%p1885_p0), %s1772_s21, 4294966272  ;;  %p18_p5 = scmp.ge.s32.totalorder %s2258_s29, 4   ;;  %s3082_s15 = smov %s2116_s16 }
 0x4c9   : > { %s3083_s16 = smov %s2120_s17  ;;  %s3084_s17 = smov %s2270_s8 }
 0x4ca   : > { %s3085_s18 = smov %s2258_s29  ;;  %20 = sbr.rel (!%p18_p5) target bundleno = 6 (0x6), region = 231 }
 0x4cf   :  { %1778 = vsyncpa [#allocation3], 1 }
 0x4d0   :  { %1780 = vsyncpa [#allocation3 + $0x1], 1 }
 0x4d1   :  { %1781 = vsyncpa [#allocation6], 1 }
 0x4d2   :  { %1782 = vsyncpa [#allocation4], 1 }
 0x4d3   :  { %1784 = vsyncpa [#allocation4 + $0x1], 1 }

</bundles_post_ra>
